<compile_context>
chip_gen: v5e
topology: v5e:2x2
jax: 0.10.0
libtpu: 0.0.40
codegen_flags: <defaults>
</compile_context>

<pallas_src>
import functools
import math

import jax
import jax.numpy as jnp
from jax import lax
from jax.experimental import pallas as pl
from jax.experimental.pallas import tpu as pltpu

# ----------------------------- configuration -------------------------------
N_EMBD = 32          # n_embd
N_LAYER = 4          # n_layer
LAYER_ID = 0         # layer_id (== 0 -> ln0 is applied)
HIDDEN_RATE = 4
SHIFT_PIXEL = 1
CHANNEL_GAMMA = 1.0 / 4.0
B = 2
H, W = 8, 8
T = H * W
HID = HIDDEN_RATE * N_EMBD
EPS = 1e-5
# bi_T_token_shift: first 2*gamma*C channels shift forward along T, the rest
# shift backward (zero padded at the boundaries).
# TODO(synk): bi_T_token_shift is not defined in the provided source; this is
# the standard bidirectional token-shift used by bi-RWKV variants.
C_SPLIT = int(N_EMBD * CHANNEL_GAMMA * 2)


# ----------------------------- in-kernel helpers ----------------------------
def _layernorm(x, w, b):
    # x: (T, C); w, b: (1, C)
    mu = jnp.mean(x, axis=-1, keepdims=True)
    xc = x - mu
    var = jnp.mean(xc * xc, axis=-1, keepdims=True)
    return xc * lax.rsqrt(var + EPS) * w + b


def _bi_shift(x):
    # x: (T, C) -> bidirectional token shift along T.
    Tn, Cn = x.shape
    row = lax.broadcasted_iota(jnp.int32, (Tn, Cn), 0)
    col = lax.broadcasted_iota(jnp.int32, (Tn, Cn), 1)
    fwd = jnp.where(row >= SHIFT_PIXEL, pltpu.roll(x, SHIFT_PIXEL, axis=0), 0.0)
    bwd = jnp.where(row < Tn - SHIFT_PIXEL,
                    pltpu.roll(x, Tn - SHIFT_PIXEL, axis=0), 0.0)
    return jnp.where(col < C_SPLIT, fwd, bwd)


def _dot(a, b):
    return jnp.dot(a, b, preferred_element_type=jnp.float32)


# ------------------------------- the kernel ---------------------------------
# Packed parameter layout (prepared once in block_forward, outside the kernel):
#   vec_ref : (8, C)      rows: ln0_w, ln0_b, ln1_w, ln1_b, ln2_w, ln2_b,
#                               exp(spatial_first/T), <pad>
#   dec_ref : (4, T, C)   alpha, beta, gamma, delta  (WKV decay factorization)
#   wsq_ref : (9, C, C)   wk_a, wk_b, wv_a, wv_b, wr_a, wr_b, wo, wrec_a, wrec_b
#   wkey_ref: (2, C, HID) wkey_a, wkey_b
#   wval_ref: (HID, C)
def block_kernel(x_ref, vec_ref, dec_ref, wsq_ref, wkey_ref, wval_ref, out_ref):
    x = x_ref[0]                                   # (T, C)

    ln0w, ln0b = vec_ref[0:1], vec_ref[1:2]
    ln1w, ln1b = vec_ref[2:3], vec_ref[3:4]
    ln2w, ln2b = vec_ref[4:5], vec_ref[5:6]
    eu = vec_ref[6:7]                              # exp(spatial_first / T)

    # ln0 (layer_id == 0)
    x = _layernorm(x, ln0w, ln0b)

    # ------------------- attention branch: VRWKV_SpatialMix -----------------
    xl = _layernorm(x, ln1w, ln1b)
    xx = _bi_shift(xl)
    # token-mix folded into the weights: k = (xl*mk + xx*(1-mk)) @ Wk etc.
    k = _dot(xl, wsq_ref[0]) + _dot(xx, wsq_ref[1])
    v = _dot(xl, wsq_ref[2]) + _dot(xx, wsq_ref[3])
    r = _dot(xl, wsq_ref[4]) + _dot(xx, wsq_ref[5])
    sr = jax.nn.sigmoid(r)

    # ---- factorized bidirectional WKV ----
    alpha = dec_ref[0]       # exp(-w*(t-1))
    beta = dec_ref[1]        # exp( w*t)
    gamma = dec_ref[2]       # exp( w*(t+1))
    delta = dec_ref[3]       # exp(-w*t)
    m = jnp.max(k, axis=0, keepdims=True)          # per-channel stabiliser
    ek = jnp.exp(k - m)                            # (T, C); cancels in num/den
    ekv = ek * v
    row = lax.broadcasted_iota(jnp.int32, (T, T), 0)
    col = lax.broadcasted_iota(jnp.int32, (T, T), 1)
    lmask = jnp.where(col < row, 1.0, 0.0)         # strictly lower-triangular
    umask = jnp.where(col > row, 1.0, 0.0)         # strictly upper-triangular
    low_v = _dot(lmask, beta * ekv)
    low_1 = _dot(lmask, beta * ek)
    up_v = _dot(umask, delta * ekv)
    up_1 = _dot(umask, delta * ek)
    num = alpha * low_v + gamma * up_v + eu * ekv
    den = alpha * low_1 + gamma * up_1 + eu * ek
    rwkv = num * pl.reciprocal(den, approx=True)

    x = x + _dot(sr * rwkv, wsq_ref[6])

    # --------------------- FFN branch: VRWKV_ChannelMix ---------------------
    xl2 = _layernorm(x, ln2w, ln2b)
    xx2 = _bi_shift(xl2)
    kk = _dot(xl2, wkey_ref[0]) + _dot(xx2, wkey_ref[1])
    kk = jnp.square(jnp.maximum(kk, 0.0))          # relu(k)^2
    kv = _dot(kk, wval_ref[...])
    rr = jax.nn.sigmoid(_dot(xl2, wsq_ref[7]) + _dot(xx2, wsq_ref[8]))
    x = x + rr * kv

    out_ref[0] = x


# ------------------------------- host wrapper --------------------------------
def block_forward(x, params):
    C = N_EMBD

    # pack per-channel vectors into one (8, C) array
    eu = jnp.exp(params['spatial_first'] / float(T))
    vecs = jnp.concatenate([
        params['ln0_w'], params['ln0_b'],
        params['ln1_w'], params['ln1_b'],
        params['ln2_w'], params['ln2_b'],
        eu, jnp.zeros((1, C), jnp.float32)], axis=0)              # (8, C)

    # input-independent WKV decay factors (precomputed; no per-step T*T*C exps)
    w2 = params['spatial_decay'] / float(T)                       # (1, C)
    tcol = jnp.arange(T, dtype=jnp.float32)[:, None]              # (T, 1)
    decay_pack = jnp.stack([
        jnp.exp(-w2 * (tcol - 1.0)),   # alpha
        jnp.exp(w2 * tcol),            # beta
        jnp.exp(w2 * (tcol + 1.0)),    # gamma
        jnp.exp(-w2 * tcol),           # delta
    ], axis=0)                                                    # (4, T, C)

    # fold token-mix coefficients into the projection weights
    def fold(mix, w):
        mc = mix.reshape(-1, 1)
        return mc * w, (1.0 - mc) * w

    wk_a, wk_b = fold(params['att_mix_k'], params['att_wk'])
    wv_a, wv_b = fold(params['att_mix_v'], params['att_wv'])
    wr_a, wr_b = fold(params['att_mix_r'], params['att_wr'])
    wrec_a, wrec_b = fold(params['ffn_mix_r'], params['ffn_wrec'])
    wkey_a, wkey_b = fold(params['ffn_mix_k'], params['ffn_wkey'])

    w_sq = jnp.stack([wk_a, wk_b, wv_a, wv_b, wr_a, wr_b,
                      params['att_wo'], wrec_a, wrec_b], axis=0)  # (9, C, C)
    w_key = jnp.stack([wkey_a, wkey_b], axis=0)                   # (2, C, HID)
    w_val = params['ffn_wval']                                    # (HID, C)

    zeros3 = lambda b: (0, 0, 0)
    in_specs = [
        pl.BlockSpec((1, T, C), lambda b: (b, 0, 0)),
        pl.BlockSpec((8, C), lambda b: (0, 0)),
        pl.BlockSpec((4, T, C), zeros3),
        pl.BlockSpec((9, C, C), zeros3),
        pl.BlockSpec((2, C, HID), zeros3),
        pl.BlockSpec((HID, C), lambda b: (0, 0)),
    ]

    return pl.pallas_call(
        block_kernel,
        out_shape=jax.ShapeDtypeStruct((B, T, C), jnp.float32),
        grid_spec=pltpu.PrefetchScalarGridSpec(
            num_scalar_prefetch=0,
            grid=(B,),
            in_specs=in_specs,
            out_specs=pl.BlockSpec((1, T, C), lambda b: (b, 0, 0)),
        ),
        compiler_params=pltpu.CompilerParams(
            dimension_semantics=("parallel",),
        ),
    )(x, vecs, decay_pack, w_sq, w_key, w_val)


# --------------------------- parameter construction -------------------------
def make_params(key):
    ks = jax.random.split(key, 16)
    ratio_0_to_1 = LAYER_ID / (N_LAYER - 1)
    ratio_1_to_almost0 = 1.0 - LAYER_ID / N_LAYER

    i = jnp.arange(N_EMBD, dtype=jnp.float32)
    ii = jnp.arange(N_EMBD, dtype=jnp.int32)
    xr = i / N_EMBD

    decay_speed = -5.0 + 8.0 * (i / (N_EMBD - 1)) ** (0.7 + 1.3 * ratio_0_to_1)
    zigzag = (jnp.mod(ii + 1, 3) - 1).astype(jnp.float32) * 0.5
    spatial_first = jnp.full((N_EMBD,), math.log(0.3), jnp.float32) + zigzag

    att_mix_k = xr ** ratio_1_to_almost0
    att_mix_v = xr ** ratio_1_to_almost0 + 0.3 * ratio_0_to_1
    att_mix_r = xr ** (0.5 * ratio_1_to_almost0)
    ffn_mix_k = xr ** ratio_1_to_almost0
    ffn_mix_r = xr ** ratio_1_to_almost0

    def lin(k, shape, scale=0.02):
        # stored as (in, out): forward is x @ W
        return scale * jax.random.normal(k, shape, jnp.float32)

    def ln_pair(kw, kb):
        w = 1.0 + 0.1 * jax.random.normal(kw, (N_EMBD,), jnp.float32)
        b = 0.01 * jax.random.normal(kb, (N_EMBD,), jnp.float32)
        return w, b

    ln0_w, ln0_b = ln_pair(ks[0], ks[1])
    ln1_w, ln1_b = ln_pair(ks[2], ks[3])
    ln2_w, ln2_b = ln_pair(ks[4], ks[5])

    params = dict(
        ln0_w=ln0_w, ln0_b=ln0_b, ln1_w=ln1_w, ln1_b=ln1_b,
        ln2_w=ln2_w, ln2_b=ln2_b,
        att_mix_k=att_mix_k, att_mix_v=att_mix_v, att_mix_r=att_mix_r,
        spatial_decay=decay_speed, spatial_first=spatial_first,
        att_wk=lin(ks[6], (N_EMBD, N_EMBD)),
        att_wv=lin(ks[7], (N_EMBD, N_EMBD)),
        att_wr=lin(ks[8], (N_EMBD, N_EMBD)),
        att_wo=lin(ks[9], (N_EMBD, N_EMBD)),
        ffn_mix_k=ffn_mix_k, ffn_mix_r=ffn_mix_r,
        ffn_wkey=lin(ks[10], (N_EMBD, HID)),
        ffn_wval=lin(ks[11], (HID, N_EMBD)),
        ffn_wrec=lin(ks[12], (N_EMBD, N_EMBD)),
    )
    # reshape all per-channel vectors to (1, C) so they live as 2-D lane vectors
    for name, p in params.items():
        if p.ndim == 1:
            params[name] = p.reshape(1, -1)
    return params


# ------------------------------ JAX reference --------------------------------
def block_ref(x, p):
    dot = functools.partial(jnp.dot, precision=lax.Precision.HIGHEST)

    def ln(x, w, b):
        mu = x.mean(-1, keepdims=True)
        xc = x - mu
        var = (xc * xc).mean(-1, keepdims=True)
        return xc / jnp.sqrt(var + EPS) * w + b

    def shift(x):
        fwd = jnp.pad(x[:, :-SHIFT_PIXEL, :C_SPLIT],
                      ((0, 0), (SHIFT_PIXEL, 0), (0, 0)))
        bwd = jnp.pad(x[:, SHIFT_PIXEL:, C_SPLIT:],
                      ((0, 0), (0, SHIFT_PIXEL), (0, 0)))
        return jnp.concatenate([fwd, bwd], axis=-1)

    def wkv(k, v, w, u):
        t = jnp.arange(T)
        dist = (jnp.abs(t[:, None] - t[None, :]) - 1).astype(jnp.float32)
        diag = jnp.eye(T, dtype=bool)
        kj = k[:, None, :, :]
        logits = kj - w[None, None, None, :] * dist[None, :, :, None]
        logits = jnp.where(diag[None, :, :, None],
                           kj + u[None, None, None, :], logits)
        m = logits.max(axis=2, keepdims=True)
        e = jnp.exp(logits - m)
        return (e * v[:, None, :, :]).sum(axis=2) / e.sum(axis=2)

    x = ln(x, p['ln0_w'], p['ln0_b'])
    # attention
    xl = ln(x, p['ln1_w'], p['ln1_b'])
    xx = shift(xl)
    mk, mv, mr = p['att_mix_k'], p['att_mix_v'], p['att_mix_r']
    k = dot(xl * mk + xx * (1 - mk), p['att_wk'])
    v = dot(xl * mv + xx * (1 - mv), p['att_wv'])
    r = dot(xl * mr + xx * (1 - mr), p['att_wr'])
    sr = jax.nn.sigmoid(r)
    rwkv = wkv(k, v, p['spatial_decay'].reshape(-1) / T,
               p['spatial_first'].reshape(-1) / T)
    x = x + dot(sr * rwkv, p['att_wo'])
    # ffn
    xl2 = ln(x, p['ln2_w'], p['ln2_b'])
    xx2 = shift(xl2)
    fk, fr = p['ffn_mix_k'], p['ffn_mix_r']
    kk = dot(xl2 * fk + xx2 * (1 - fk), p['ffn_wkey'])
    kk = jnp.square(jnp.maximum(kk, 0.0))
    kv = dot(kk, p['ffn_wval'])
    rr = jax.nn.sigmoid(dot(xl2 * fr + xx2 * (1 - fr), p['ffn_wrec']))
    return x + rr * kv


# ---------------------------------- main -------------------------------------
if __name__ == "__main__":
    key = jax.random.PRNGKey(0)
    kx, kp = jax.random.split(key)
    x = jax.random.normal(kx, (B, T, N_EMBD), jnp.float32)
    params = make_params(kp)

    out = block_forward(x, params)
    out = jax.block_until_ready(out)

    ref = jax.block_until_ready(block_ref(x, params))
    if not jnp.allclose(out, ref, rtol=2e-3, atol=2e-3):
        max_err = float(jnp.max(jnp.abs(out - ref)))
        raise AssertionError(f"Pallas output mismatch, max abs err = {max_err}")

    print("KERNEL_OK")
</pallas_src>

<mosaic_0001>
module attributes {stable_mosaic.version = 11 : i64} {
  func.func @block_kernel(%arg0: i32, %arg1: memref<1x64x32xf32, #tpu.memory_space<vmem>>, %arg2: memref<8x32xf32, #tpu.memory_space<vmem>>, %arg3: memref<4x64x32xf32, #tpu.memory_space<vmem>>, %arg4: memref<9x32x32xf32, #tpu.memory_space<vmem>>, %arg5: memref<2x32x128xf32, #tpu.memory_space<vmem>>, %arg6: memref<128x32xf32, #tpu.memory_space<vmem>>, %arg7: memref<1x64x32xf32, #tpu.memory_space<vmem>>) attributes {dimension_semantics = [#tpu.dimension_semantics<parallel>], iteration_bounds = array<i64: 2>, scalar_prefetch = 0 : i64, scratch_operands = 0 : i64, tpu.core_type = #tpu.core_type<tc>, window_params = [{transform_indices = @transform_0, window_bounds = array<i64: 1, 64, 32>}, {pipeline_mode = #tpu.pipeline_mode<synchronous>, transform_indices = @transform_1, window_bounds = array<i64: 8, 32>}, {pipeline_mode = #tpu.pipeline_mode<synchronous>, transform_indices = @transform_2, window_bounds = array<i64: 4, 64, 32>}, {pipeline_mode = #tpu.pipeline_mode<synchronous>, transform_indices = @transform_3, window_bounds = array<i64: 9, 32, 32>}, {pipeline_mode = #tpu.pipeline_mode<synchronous>, transform_indices = @transform_4, window_bounds = array<i64: 2, 32, 128>}, {pipeline_mode = #tpu.pipeline_mode<synchronous>, transform_indices = @transform_5, window_bounds = array<i64: 128, 32>}, {transform_indices = @transform_6, window_bounds = array<i64: 1, 64, 32>}]} {
    %c0 = arith.constant 0 : index
    %c0_0 = arith.constant 0 : index
    %c0_1 = arith.constant 0 : index
    %0 = vector.load %arg1[%c0, %c0_0, %c0_1] : memref<1x64x32xf32, #tpu.memory_space<vmem>>, vector<1x64x32xf32>
    %1 = vector.shape_cast %0 : vector<1x64x32xf32> to vector<64x32xf32>
    %c0_2 = arith.constant 0 : index
    %c0_3 = arith.constant 0 : index
    %2 = vector.load %arg2[%c0_2, %c0_3] : memref<8x32xf32, #tpu.memory_space<vmem>>, vector<1x32xf32>
    %c1 = arith.constant 1 : index
    %c0_4 = arith.constant 0 : index
    %3 = vector.load %arg2[%c1, %c0_4] : memref<8x32xf32, #tpu.memory_space<vmem>>, vector<1x32xf32>
    %c2 = arith.constant 2 : index
    %c0_5 = arith.constant 0 : index
    %4 = vector.load %arg2[%c2, %c0_5] : memref<8x32xf32, #tpu.memory_space<vmem>>, vector<1x32xf32>
    %c3 = arith.constant 3 : index
    %c0_6 = arith.constant 0 : index
    %5 = vector.load %arg2[%c3, %c0_6] : memref<8x32xf32, #tpu.memory_space<vmem>>, vector<1x32xf32>
    %c4 = arith.constant 4 : index
    %c0_7 = arith.constant 0 : index
    %6 = vector.load %arg2[%c4, %c0_7] : memref<8x32xf32, #tpu.memory_space<vmem>>, vector<1x32xf32>
    %c5 = arith.constant 5 : index
    %c0_8 = arith.constant 0 : index
    %7 = vector.load %arg2[%c5, %c0_8] : memref<8x32xf32, #tpu.memory_space<vmem>>, vector<1x32xf32>
    %c6 = arith.constant 6 : index
    %c0_9 = arith.constant 0 : index
    %8 = vector.load %arg2[%c6, %c0_9] : memref<8x32xf32, #tpu.memory_space<vmem>>, vector<1x32xf32>
    %cst = arith.constant dense<0.000000e+00> : vector<64xf32>
    %9 = vector.multi_reduction <add>, %1, %cst [1] : vector<64x32xf32> to vector<64xf32>
    %10 = vector.shape_cast %9 : vector<64xf32> to vector<64x1xf32>
    %cst_10 = arith.constant 3.200000e+01 : f32
    %11 = vector.broadcast %cst_10 : f32 to vector<64x1xf32>
    %12 = arith.divf %10, %11 : vector<64x1xf32>
    %13 = vector.broadcast %12 : vector<64x1xf32> to vector<64x32xf32>
    %14 = arith.subf %1, %13 : vector<64x32xf32>
    %15 = arith.mulf %14, %14 : vector<64x32xf32>
    %cst_11 = arith.constant dense<0.000000e+00> : vector<64xf32>
    %16 = vector.multi_reduction <add>, %15, %cst_11 [1] : vector<64x32xf32> to vector<64xf32>
    %17 = vector.shape_cast %16 : vector<64xf32> to vector<64x1xf32>
    %cst_12 = arith.constant 3.200000e+01 : f32
    %18 = vector.broadcast %cst_12 : f32 to vector<64x1xf32>
    %19 = arith.divf %17, %18 : vector<64x1xf32>
    %cst_13 = arith.constant 9.99999974E-6 : f32
    %20 = vector.broadcast %cst_13 : f32 to vector<64x1xf32>
    %21 = arith.addf %19, %20 : vector<64x1xf32>
    %22 = math.rsqrt %21 : vector<64x1xf32>
    %23 = vector.broadcast %22 : vector<64x1xf32> to vector<64x32xf32>
    %24 = arith.mulf %14, %23 : vector<64x32xf32>
    %25 = vector.broadcast %2 : vector<1x32xf32> to vector<64x32xf32>
    %26 = arith.mulf %24, %25 : vector<64x32xf32>
    %27 = vector.broadcast %3 : vector<1x32xf32> to vector<64x32xf32>
    %28 = arith.addf %26, %27 : vector<64x32xf32>
    %cst_14 = arith.constant dense<0.000000e+00> : vector<64xf32>
    %29 = vector.multi_reduction <add>, %28, %cst_14 [1] : vector<64x32xf32> to vector<64xf32>
    %30 = vector.shape_cast %29 : vector<64xf32> to vector<64x1xf32>
    %cst_15 = arith.constant 3.200000e+01 : f32
    %31 = vector.broadcast %cst_15 : f32 to vector<64x1xf32>
    %32 = arith.divf %30, %31 : vector<64x1xf32>
    %33 = vector.broadcast %32 : vector<64x1xf32> to vector<64x32xf32>
    %34 = arith.subf %28, %33 : vector<64x32xf32>
    %35 = arith.mulf %34, %34 : vector<64x32xf32>
    %cst_16 = arith.constant dense<0.000000e+00> : vector<64xf32>
    %36 = vector.multi_reduction <add>, %35, %cst_16 [1] : vector<64x32xf32> to vector<64xf32>
    %37 = vector.shape_cast %36 : vector<64xf32> to vector<64x1xf32>
    %cst_17 = arith.constant 3.200000e+01 : f32
    %38 = vector.broadcast %cst_17 : f32 to vector<64x1xf32>
    %39 = arith.divf %37, %38 : vector<64x1xf32>
    %cst_18 = arith.constant 9.99999974E-6 : f32
    %40 = vector.broadcast %cst_18 : f32 to vector<64x1xf32>
    %41 = arith.addf %39, %40 : vector<64x1xf32>
    %42 = math.rsqrt %41 : vector<64x1xf32>
    %43 = vector.broadcast %42 : vector<64x1xf32> to vector<64x32xf32>
    %44 = arith.mulf %34, %43 : vector<64x32xf32>
    %45 = vector.broadcast %4 : vector<1x32xf32> to vector<64x32xf32>
    %46 = arith.mulf %44, %45 : vector<64x32xf32>
    %47 = vector.broadcast %5 : vector<1x32xf32> to vector<64x32xf32>
    %48 = arith.addf %46, %47 : vector<64x32xf32>
    %49 = tpu.iota {dimensions = array<i32: 0>} : vector<64x32xi32>
    %50 = tpu.iota {dimensions = array<i32: 1>} : vector<64x32xi32>
    %c1_i32 = arith.constant 1 : i32
    %51 = vector.broadcast %c1_i32 : i32 to vector<64x32xi32>
    %52 = arith.cmpi sge, %49, %51 : vector<64x32xi32>
    %c1_i32_19 = arith.constant 1 : i32
    %53 = tpu.dynamic_rotate %48 by %c1_i32_19 dim 0 : vector<64x32xf32>, i32 -> vector<64x32xf32>
    %cst_20 = arith.constant 0.000000e+00 : f32
    %54 = vector.broadcast %cst_20 : f32 to vector<64x32xf32>
    %55 = arith.select %52, %53, %54 : vector<64x32xi1>, vector<64x32xf32>
    %c63_i32 = arith.constant 63 : i32
    %56 = vector.broadcast %c63_i32 : i32 to vector<64x32xi32>
    %57 = arith.cmpi slt, %49, %56 : vector<64x32xi32>
    %c63_i32_21 = arith.constant 63 : i32
    %58 = tpu.dynamic_rotate %48 by %c63_i32_21 dim 0 : vector<64x32xf32>, i32 -> vector<64x32xf32>
    %cst_22 = arith.constant 0.000000e+00 : f32
    %59 = vector.broadcast %cst_22 : f32 to vector<64x32xf32>
    %60 = arith.select %57, %58, %59 : vector<64x32xi1>, vector<64x32xf32>
    %c16_i32 = arith.constant 16 : i32
    %61 = vector.broadcast %c16_i32 : i32 to vector<64x32xi32>
    %62 = arith.cmpi slt, %50, %61 : vector<64x32xi32>
    %63 = arith.select %62, %55, %60 : vector<64x32xi1>, vector<64x32xf32>
    %c0_23 = arith.constant 0 : index
    %c0_24 = arith.constant 0 : index
    %c0_25 = arith.constant 0 : index
    %64 = vector.load %arg4[%c0_23, %c0_24, %c0_25] : memref<9x32x32xf32, #tpu.memory_space<vmem>>, vector<1x32x32xf32>
    %65 = vector.shape_cast %64 : vector<1x32x32xf32> to vector<32x32xf32>
    %cst_26 = arith.constant dense<0.000000e+00> : vector<64x32xf32>
    %66 = tpu.matmul %48, %65, %cst_26 {dimension_numbers = #tpu.dot_dimension_numbers<[1], [0], [0], [1], [0, 0, 1, 1], [], []>} : vector<64x32xf32>, vector<32x32xf32>, vector<64x32xf32> -> vector<64x32xf32>
    %c1_27 = arith.constant 1 : index
    %c0_28 = arith.constant 0 : index
    %c0_29 = arith.constant 0 : index
    %67 = vector.load %arg4[%c1_27, %c0_28, %c0_29] : memref<9x32x32xf32, #tpu.memory_space<vmem>>, vector<1x32x32xf32>
    %68 = vector.shape_cast %67 : vector<1x32x32xf32> to vector<32x32xf32>
    %cst_30 = arith.constant dense<0.000000e+00> : vector<64x32xf32>
    %69 = tpu.matmul %63, %68, %cst_30 {dimension_numbers = #tpu.dot_dimension_numbers<[1], [0], [0], [1], [0, 0, 1, 1], [], []>} : vector<64x32xf32>, vector<32x32xf32>, vector<64x32xf32> -> vector<64x32xf32>
    %70 = arith.addf %66, %69 : vector<64x32xf32>
    %c2_31 = arith.constant 2 : index
    %c0_32 = arith.constant 0 : index
    %c0_33 = arith.constant 0 : index
    %71 = vector.load %arg4[%c2_31, %c0_32, %c0_33] : memref<9x32x32xf32, #tpu.memory_space<vmem>>, vector<1x32x32xf32>
    %72 = vector.shape_cast %71 : vector<1x32x32xf32> to vector<32x32xf32>
    %cst_34 = arith.constant dense<0.000000e+00> : vector<64x32xf32>
    %73 = tpu.matmul %48, %72, %cst_34 {dimension_numbers = #tpu.dot_dimension_numbers<[1], [0], [0], [1], [0, 0, 1, 1], [], []>} : vector<64x32xf32>, vector<32x32xf32>, vector<64x32xf32> -> vector<64x32xf32>
    %c3_35 = arith.constant 3 : index
    %c0_36 = arith.constant 0 : index
    %c0_37 = arith.constant 0 : index
    %74 = vector.load %arg4[%c3_35, %c0_36, %c0_37] : memref<9x32x32xf32, #tpu.memory_space<vmem>>, vector<1x32x32xf32>
    %75 = vector.shape_cast %74 : vector<1x32x32xf32> to vector<32x32xf32>
    %cst_38 = arith.constant dense<0.000000e+00> : vector<64x32xf32>
    %76 = tpu.matmul %63, %75, %cst_38 {dimension_numbers = #tpu.dot_dimension_numbers<[1], [0], [0], [1], [0, 0, 1, 1], [], []>} : vector<64x32xf32>, vector<32x32xf32>, vector<64x32xf32> -> vector<64x32xf32>
    %77 = arith.addf %73, %76 : vector<64x32xf32>
    %c4_39 = arith.constant 4 : index
    %c0_40 = arith.constant 0 : index
    %c0_41 = arith.constant 0 : index
    %78 = vector.load %arg4[%c4_39, %c0_40, %c0_41] : memref<9x32x32xf32, #tpu.memory_space<vmem>>, vector<1x32x32xf32>
    %79 = vector.shape_cast %78 : vector<1x32x32xf32> to vector<32x32xf32>
    %cst_42 = arith.constant dense<0.000000e+00> : vector<64x32xf32>
    %80 = tpu.matmul %48, %79, %cst_42 {dimension_numbers = #tpu.dot_dimension_numbers<[1], [0], [0], [1], [0, 0, 1, 1], [], []>} : vector<64x32xf32>, vector<32x32xf32>, vector<64x32xf32> -> vector<64x32xf32>
    %c5_43 = arith.constant 5 : index
    %c0_44 = arith.constant 0 : index
    %c0_45 = arith.constant 0 : index
    %81 = vector.load %arg4[%c5_43, %c0_44, %c0_45] : memref<9x32x32xf32, #tpu.memory_space<vmem>>, vector<1x32x32xf32>
    %82 = vector.shape_cast %81 : vector<1x32x32xf32> to vector<32x32xf32>
    %cst_46 = arith.constant dense<0.000000e+00> : vector<64x32xf32>
    %83 = tpu.matmul %63, %82, %cst_46 {dimension_numbers = #tpu.dot_dimension_numbers<[1], [0], [0], [1], [0, 0, 1, 1], [], []>} : vector<64x32xf32>, vector<32x32xf32>, vector<64x32xf32> -> vector<64x32xf32>
    %84 = arith.addf %80, %83 : vector<64x32xf32>
    %85 = arith.negf %84 : vector<64x32xf32>
    %86 = math.exp %85 : vector<64x32xf32>
    %cst_47 = arith.constant 1.000000e+00 : f32
    %87 = vector.broadcast %cst_47 : f32 to vector<64x32xf32>
    %88 = arith.addf %87, %86 : vector<64x32xf32>
    %89 = arith.divf %87, %88 : vector<64x32xf32>
    %c0_48 = arith.constant 0 : index
    %c0_49 = arith.constant 0 : index
    %c0_50 = arith.constant 0 : index
    %90 = vector.load %arg3[%c0_48, %c0_49, %c0_50] : memref<4x64x32xf32, #tpu.memory_space<vmem>>, vector<1x64x32xf32>
    %91 = vector.shape_cast %90 : vector<1x64x32xf32> to vector<64x32xf32>
    %c1_51 = arith.constant 1 : index
    %c0_52 = arith.constant 0 : index
    %c0_53 = arith.constant 0 : index
    %92 = vector.load %arg3[%c1_51, %c0_52, %c0_53] : memref<4x64x32xf32, #tpu.memory_space<vmem>>, vector<1x64x32xf32>
    %93 = vector.shape_cast %92 : vector<1x64x32xf32> to vector<64x32xf32>
    %c2_54 = arith.constant 2 : index
    %c0_55 = arith.constant 0 : index
    %c0_56 = arith.constant 0 : index
    %94 = vector.load %arg3[%c2_54, %c0_55, %c0_56] : memref<4x64x32xf32, #tpu.memory_space<vmem>>, vector<1x64x32xf32>
    %95 = vector.shape_cast %94 : vector<1x64x32xf32> to vector<64x32xf32>
    %c3_57 = arith.constant 3 : index
    %c0_58 = arith.constant 0 : index
    %c0_59 = arith.constant 0 : index
    %96 = vector.load %arg3[%c3_57, %c0_58, %c0_59] : memref<4x64x32xf32, #tpu.memory_space<vmem>>, vector<1x64x32xf32>
    %97 = vector.shape_cast %96 : vector<1x64x32xf32> to vector<64x32xf32>
    %cst_60 = arith.constant dense<0xFF800000> : vector<32xf32>
    %98 = vector.multi_reduction <maximumf>, %70, %cst_60 [0] : vector<64x32xf32> to vector<32xf32>
    %99 = vector.shape_cast %98 : vector<32xf32> to vector<1x32xf32>
    %100 = vector.broadcast %99 : vector<1x32xf32> to vector<64x32xf32>
    %101 = arith.subf %70, %100 : vector<64x32xf32>
    %102 = math.exp %101 : vector<64x32xf32>
    %103 = arith.mulf %102, %77 : vector<64x32xf32>
    %104 = tpu.iota {dimensions = array<i32: 0>} : vector<64x64xi32>
    %105 = tpu.iota {dimensions = array<i32: 1>} : vector<64x64xi32>
    %106 = arith.cmpi slt, %105, %104 : vector<64x64xi32>
    %cst_61 = arith.constant 1.000000e+00 : f32
    %cst_62 = arith.constant 0.000000e+00 : f32
    %107 = vector.broadcast %cst_61 : f32 to vector<64x64xf32>
    %108 = vector.broadcast %cst_62 : f32 to vector<64x64xf32>
    %109 = arith.select %106, %107, %108 : vector<64x64xi1>, vector<64x64xf32>
    %110 = arith.cmpi sgt, %105, %104 : vector<64x64xi32>
    %cst_63 = arith.constant 1.000000e+00 : f32
    %cst_64 = arith.constant 0.000000e+00 : f32
    %111 = vector.broadcast %cst_63 : f32 to vector<64x64xf32>
    %112 = vector.broadcast %cst_64 : f32 to vector<64x64xf32>
    %113 = arith.select %110, %111, %112 : vector<64x64xi1>, vector<64x64xf32>
    %114 = arith.mulf %93, %103 : vector<64x32xf32>
    %cst_65 = arith.constant dense<0.000000e+00> : vector<64x32xf32>
    %115 = tpu.matmul %109, %114, %cst_65 {dimension_numbers = #tpu.dot_dimension_numbers<[1], [0], [0], [1], [0, 0, 1, 1], [], []>} : vector<64x64xf32>, vector<64x32xf32>, vector<64x32xf32> -> vector<64x32xf32>
    %116 = arith.mulf %93, %102 : vector<64x32xf32>
    %cst_66 = arith.constant dense<0.000000e+00> : vector<64x32xf32>
    %117 = tpu.matmul %109, %116, %cst_66 {dimension_numbers = #tpu.dot_dimension_numbers<[1], [0], [0], [1], [0, 0, 1, 1], [], []>} : vector<64x64xf32>, vector<64x32xf32>, vector<64x32xf32> -> vector<64x32xf32>
    %118 = arith.mulf %97, %103 : vector<64x32xf32>
    %cst_67 = arith.constant dense<0.000000e+00> : vector<64x32xf32>
    %119 = tpu.matmul %113, %118, %cst_67 {dimension_numbers = #tpu.dot_dimension_numbers<[1], [0], [0], [1], [0, 0, 1, 1], [], []>} : vector<64x64xf32>, vector<64x32xf32>, vector<64x32xf32> -> vector<64x32xf32>
    %120 = arith.mulf %97, %102 : vector<64x32xf32>
    %cst_68 = arith.constant dense<0.000000e+00> : vector<64x32xf32>
    %121 = tpu.matmul %113, %120, %cst_68 {dimension_numbers = #tpu.dot_dimension_numbers<[1], [0], [0], [1], [0, 0, 1, 1], [], []>} : vector<64x64xf32>, vector<64x32xf32>, vector<64x32xf32> -> vector<64x32xf32>
    %122 = arith.mulf %91, %115 : vector<64x32xf32>
    %123 = arith.mulf %95, %119 : vector<64x32xf32>
    %124 = arith.addf %122, %123 : vector<64x32xf32>
    %125 = vector.broadcast %8 : vector<1x32xf32> to vector<64x32xf32>
    %126 = arith.mulf %125, %103 : vector<64x32xf32>
    %127 = arith.addf %124, %126 : vector<64x32xf32>
    %128 = arith.mulf %91, %117 : vector<64x32xf32>
    %129 = arith.mulf %95, %121 : vector<64x32xf32>
    %130 = arith.addf %128, %129 : vector<64x32xf32>
    %131 = vector.broadcast %8 : vector<1x32xf32> to vector<64x32xf32>
    %132 = arith.mulf %131, %102 : vector<64x32xf32>
    %133 = arith.addf %130, %132 : vector<64x32xf32>
    %134 = tpu.reciprocal %133 {approx = true} : vector<64x32xf32> -> vector<64x32xf32>
    %135 = arith.mulf %127, %134 : vector<64x32xf32>
    %136 = arith.mulf %89, %135 : vector<64x32xf32>
    %c6_69 = arith.constant 6 : index
    %c0_70 = arith.constant 0 : index
    %c0_71 = arith.constant 0 : index
    %137 = vector.load %arg4[%c6_69, %c0_70, %c0_71] : memref<9x32x32xf32, #tpu.memory_space<vmem>>, vector<1x32x32xf32>
    %138 = vector.shape_cast %137 : vector<1x32x32xf32> to vector<32x32xf32>
    %cst_72 = arith.constant dense<0.000000e+00> : vector<64x32xf32>
    %139 = tpu.matmul %136, %138, %cst_72 {dimension_numbers = #tpu.dot_dimension_numbers<[1], [0], [0], [1], [0, 0, 1, 1], [], []>} : vector<64x32xf32>, vector<32x32xf32>, vector<64x32xf32> -> vector<64x32xf32>
    %140 = arith.addf %28, %139 : vector<64x32xf32>
    %cst_73 = arith.constant dense<0.000000e+00> : vector<64xf32>
    %141 = vector.multi_reduction <add>, %140, %cst_73 [1] : vector<64x32xf32> to vector<64xf32>
    %142 = vector.shape_cast %141 : vector<64xf32> to vector<64x1xf32>
    %cst_74 = arith.constant 3.200000e+01 : f32
    %143 = vector.broadcast %cst_74 : f32 to vector<64x1xf32>
    %144 = arith.divf %142, %143 : vector<64x1xf32>
    %145 = vector.broadcast %144 : vector<64x1xf32> to vector<64x32xf32>
    %146 = arith.subf %140, %145 : vector<64x32xf32>
    %147 = arith.mulf %146, %146 : vector<64x32xf32>
    %cst_75 = arith.constant dense<0.000000e+00> : vector<64xf32>
    %148 = vector.multi_reduction <add>, %147, %cst_75 [1] : vector<64x32xf32> to vector<64xf32>
    %149 = vector.shape_cast %148 : vector<64xf32> to vector<64x1xf32>
    %cst_76 = arith.constant 3.200000e+01 : f32
    %150 = vector.broadcast %cst_76 : f32 to vector<64x1xf32>
    %151 = arith.divf %149, %150 : vector<64x1xf32>
    %cst_77 = arith.constant 9.99999974E-6 : f32
    %152 = vector.broadcast %cst_77 : f32 to vector<64x1xf32>
    %153 = arith.addf %151, %152 : vector<64x1xf32>
    %154 = math.rsqrt %153 : vector<64x1xf32>
    %155 = vector.broadcast %154 : vector<64x1xf32> to vector<64x32xf32>
    %156 = arith.mulf %146, %155 : vector<64x32xf32>
    %157 = vector.broadcast %6 : vector<1x32xf32> to vector<64x32xf32>
    %158 = arith.mulf %156, %157 : vector<64x32xf32>
    %159 = vector.broadcast %7 : vector<1x32xf32> to vector<64x32xf32>
    %160 = arith.addf %158, %159 : vector<64x32xf32>
    %161 = tpu.iota {dimensions = array<i32: 0>} : vector<64x32xi32>
    %162 = tpu.iota {dimensions = array<i32: 1>} : vector<64x32xi32>
    %c1_i32_78 = arith.constant 1 : i32
    %163 = vector.broadcast %c1_i32_78 : i32 to vector<64x32xi32>
    %164 = arith.cmpi sge, %161, %163 : vector<64x32xi32>
    %c1_i32_79 = arith.constant 1 : i32
    %165 = tpu.dynamic_rotate %160 by %c1_i32_79 dim 0 : vector<64x32xf32>, i32 -> vector<64x32xf32>
    %cst_80 = arith.constant 0.000000e+00 : f32
    %166 = vector.broadcast %cst_80 : f32 to vector<64x32xf32>
    %167 = arith.select %164, %165, %166 : vector<64x32xi1>, vector<64x32xf32>
    %c63_i32_81 = arith.constant 63 : i32
    %168 = vector.broadcast %c63_i32_81 : i32 to vector<64x32xi32>
    %169 = arith.cmpi slt, %161, %168 : vector<64x32xi32>
    %c63_i32_82 = arith.constant 63 : i32
    %170 = tpu.dynamic_rotate %160 by %c63_i32_82 dim 0 : vector<64x32xf32>, i32 -> vector<64x32xf32>
    %cst_83 = arith.constant 0.000000e+00 : f32
    %171 = vector.broadcast %cst_83 : f32 to vector<64x32xf32>
    %172 = arith.select %169, %170, %171 : vector<64x32xi1>, vector<64x32xf32>
    %c16_i32_84 = arith.constant 16 : i32
    %173 = vector.broadcast %c16_i32_84 : i32 to vector<64x32xi32>
    %174 = arith.cmpi slt, %162, %173 : vector<64x32xi32>
    %175 = arith.select %174, %167, %172 : vector<64x32xi1>, vector<64x32xf32>
    %c0_85 = arith.constant 0 : index
    %c0_86 = arith.constant 0 : index
    %c0_87 = arith.constant 0 : index
    %176 = vector.load %arg5[%c0_85, %c0_86, %c0_87] : memref<2x32x128xf32, #tpu.memory_space<vmem>>, vector<1x32x128xf32>
    %177 = vector.shape_cast %176 : vector<1x32x128xf32> to vector<32x128xf32>
    %cst_88 = arith.constant dense<0.000000e+00> : vector<64x128xf32>
    %178 = tpu.matmul %160, %177, %cst_88 {dimension_numbers = #tpu.dot_dimension_numbers<[1], [0], [0], [1], [0, 0, 1, 1], [], []>} : vector<64x32xf32>, vector<32x128xf32>, vector<64x128xf32> -> vector<64x128xf32>
    %c1_89 = arith.constant 1 : index
    %c0_90 = arith.constant 0 : index
    %c0_91 = arith.constant 0 : index
    %179 = vector.load %arg5[%c1_89, %c0_90, %c0_91] : memref<2x32x128xf32, #tpu.memory_space<vmem>>, vector<1x32x128xf32>
    %180 = vector.shape_cast %179 : vector<1x32x128xf32> to vector<32x128xf32>
    %cst_92 = arith.constant dense<0.000000e+00> : vector<64x128xf32>
    %181 = tpu.matmul %175, %180, %cst_92 {dimension_numbers = #tpu.dot_dimension_numbers<[1], [0], [0], [1], [0, 0, 1, 1], [], []>} : vector<64x32xf32>, vector<32x128xf32>, vector<64x128xf32> -> vector<64x128xf32>
    %182 = arith.addf %178, %181 : vector<64x128xf32>
    %cst_93 = arith.constant 0.000000e+00 : f32
    %183 = vector.broadcast %cst_93 : f32 to vector<64x128xf32>
    %184 = arith.maximumf %182, %183 : vector<64x128xf32>
    %185 = arith.mulf %184, %184 : vector<64x128xf32>
    %c0_94 = arith.constant 0 : index
    %c0_95 = arith.constant 0 : index
    %186 = vector.load %arg6[%c0_94, %c0_95] : memref<128x32xf32, #tpu.memory_space<vmem>>, vector<128x32xf32>
    %cst_96 = arith.constant dense<0.000000e+00> : vector<64x32xf32>
    %187 = tpu.matmul %185, %186, %cst_96 {dimension_numbers = #tpu.dot_dimension_numbers<[1], [0], [0], [1], [0, 0, 1, 1], [], []>} : vector<64x128xf32>, vector<128x32xf32>, vector<64x32xf32> -> vector<64x32xf32>
    %c7 = arith.constant 7 : index
    %c0_97 = arith.constant 0 : index
    %c0_98 = arith.constant 0 : index
    %188 = vector.load %arg4[%c7, %c0_97, %c0_98] : memref<9x32x32xf32, #tpu.memory_space<vmem>>, vector<1x32x32xf32>
    %189 = vector.shape_cast %188 : vector<1x32x32xf32> to vector<32x32xf32>
    %cst_99 = arith.constant dense<0.000000e+00> : vector<64x32xf32>
    %190 = tpu.matmul %160, %189, %cst_99 {dimension_numbers = #tpu.dot_dimension_numbers<[1], [0], [0], [1], [0, 0, 1, 1], [], []>} : vector<64x32xf32>, vector<32x32xf32>, vector<64x32xf32> -> vector<64x32xf32>
    %c8 = arith.constant 8 : index
    %c0_100 = arith.constant 0 : index
    %c0_101 = arith.constant 0 : index
    %191 = vector.load %arg4[%c8, %c0_100, %c0_101] : memref<9x32x32xf32, #tpu.memory_space<vmem>>, vector<1x32x32xf32>
    %192 = vector.shape_cast %191 : vector<1x32x32xf32> to vector<32x32xf32>
    %cst_102 = arith.constant dense<0.000000e+00> : vector<64x32xf32>
    %193 = tpu.matmul %175, %192, %cst_102 {dimension_numbers = #tpu.dot_dimension_numbers<[1], [0], [0], [1], [0, 0, 1, 1], [], []>} : vector<64x32xf32>, vector<32x32xf32>, vector<64x32xf32> -> vector<64x32xf32>
    %194 = arith.addf %190, %193 : vector<64x32xf32>
    %195 = arith.negf %194 : vector<64x32xf32>
    %196 = math.exp %195 : vector<64x32xf32>
    %cst_103 = arith.constant 1.000000e+00 : f32
    %197 = vector.broadcast %cst_103 : f32 to vector<64x32xf32>
    %198 = arith.addf %197, %196 : vector<64x32xf32>
    %199 = arith.divf %197, %198 : vector<64x32xf32>
    %200 = arith.mulf %199, %187 : vector<64x32xf32>
    %201 = arith.addf %140, %200 : vector<64x32xf32>
    %c0_104 = arith.constant 0 : index
    %c0_105 = arith.constant 0 : index
    %c0_106 = arith.constant 0 : index
    %202 = vector.load %arg7[%c0_104, %c0_105, %c0_106] : memref<1x64x32xf32, #tpu.memory_space<vmem>>, vector<1x64x32xf32>
    %203 = vector.shape_cast %202 : vector<1x64x32xf32> to vector<64x32xf32>
    %204 = vector.shape_cast %201 : vector<64x32xf32> to vector<1x64x32xf32>
    tpu.vector_store %arg7[%c0_104, %c0_105, %c0_106], %204 {strides = array<i32>} : memref<1x64x32xf32, #tpu.memory_space<vmem>>, vector<1x64x32xf32>,
    return
  }
  func.func @transform_0(%arg0: i32) -> (i32, i32, i32) {
    %c0_i32 = arith.constant 0 : i32
    %c0_i32_0 = arith.constant 0 : i32
    %c0_i32_1 = arith.constant 0 : i32
    return %arg0, %c0_i32, %c0_i32_0 : i32, i32, i32
  }
  func.func @transform_1(%arg0: i32) -> (i32, i32) {
    %c0_i32 = arith.constant 0 : i32
    %c0_i32_0 = arith.constant 0 : i32
    %c0_i32_1 = arith.constant 0 : i32
    return %c0_i32, %c0_i32_0 : i32, i32
  }
  func.func @transform_2(%arg0: i32) -> (i32, i32, i32) {
    %c0_i32 = arith.constant 0 : i32
    %c0_i32_0 = arith.constant 0 : i32
    %c0_i32_1 = arith.constant 0 : i32
    %c0_i32_2 = arith.constant 0 : i32
    return %c0_i32, %c0_i32_0, %c0_i32_1 : i32, i32, i32
  }
  func.func @transform_3(%arg0: i32) -> (i32, i32, i32) {
    %c0_i32 = arith.constant 0 : i32
    %c0_i32_0 = arith.constant 0 : i32
    %c0_i32_1 = arith.constant 0 : i32
    %c0_i32_2 = arith.constant 0 : i32
    return %c0_i32, %c0_i32_0, %c0_i32_1 : i32, i32, i32
  }
  func.func @transform_4(%arg0: i32) -> (i32, i32, i32) {
    %c0_i32 = arith.constant 0 : i32
    %c0_i32_0 = arith.constant 0 : i32
    %c0_i32_1 = arith.constant 0 : i32
    %c0_i32_2 = arith.constant 0 : i32
    return %c0_i32, %c0_i32_0, %c0_i32_1 : i32, i32, i32
  }
  func.func @transform_5(%arg0: i32) -> (i32, i32) {
    %c0_i32 = arith.constant 0 : i32
    %c0_i32_0 = arith.constant 0 : i32
    %c0_i32_1 = arith.constant 0 : i32
    return %c0_i32, %c0_i32_0 : i32, i32
  }
  func.func @transform_6(%arg0: i32) -> (i32, i32, i32) {
    %c0_i32 = arith.constant 0 : i32
    %c0_i32_0 = arith.constant 0 : i32
    %c0_i32_1 = arith.constant 0 : i32
    return %arg0, %c0_i32, %c0_i32_0 : i32, i32, i32
  }
}

</mosaic_0001>

<bundles_post_ra>
// kernel: tpu_custom_call.1
= control target key start
LH: loop header
LB: loop body
LE: loop exit
PB: predicated region body
PF: predicated region fallthrough
CT: control target
= control target key end

     0   :  { %s2974_s21 = smov 0   ;;  %s4611_s0 = inlined_call_operand.vmem [shape: f32[2,64,32], index: 0, kind: input, shape index: {}]   ;;  %s4612_s1 = inlined_call_operand.vmem [shape: f32[8,32], index: 1, kind: input, shape index: {}]   ;;  %s4613_s2 = inlined_call_operand.vmem [shape: f32[4,64,32], index: 2, kind: input, shape index: {}]   ;;  %s4614_s3 = inlined_call_operand.vmem [shape: f32[9,32,32], index: 3, kind: input, shape index: {}]   ;;  %s4615_s4 = inlined_call_operand.vmem [shape: f32[2,32,128], index: 4, kind: input, shape index: {}]   ;;  %s4616_s5 = inlined_call_operand.vmem [shape: f32[128,32], index: 5, kind: input, shape index: {}]   ;;  %s4617_s6 = inlined_call_operand.vmem [shape: f32[2,64,32], index: 6, kind: output, shape index: {}]  }
   0x1 LB: > { %s2557_s22 = sadd.s32 4294967295, %s2935_s21   ;;  %p2561_p0 = scmp.ge.s32.totalorder %s2935_s21, 1  ;;  %s2935_s21 = sphi %s2974_s21, %s16_s21  }
   0x2   : > { %p212_p1 = scmp.lt.s32.totalorder %s2935_s21, 3 }
   0x4   : > { %p213_p2 = pnand %p2561_p0, %p212_p1 }
   0x5   : > { %p242_p3 = scmp.lt.s32.totalorder (!%p213_p2), %s2557_s22, 1 }
   0x6   : > { %216 = sbr.rel (%p213_p2) target bundleno = 1735 (0x6c7), region = 44 }
   0xb   : > { %s4639_s22 = smov (!%p242_p3, %s2557_s22), 1  ;;  %vm267_vm0 = vcmask 261120   ;;  %v2937_v16 = vmov 32.0  }
   0xc   : > { %s2764_s23 = sshll.u32 %s4639_s22, 6  ;;  %2783 = vrcp.f32 %v2937_v16 }
   0xd   : > { %s246_s26 = scalar_lea.vmem %s4611_s0, %s2764_s23  ;;  %s4537_s14 = scalar_lea.vmem %s4617_s6, %s2764_s23 }
   0xe   : > { %v255_v0 = vld [vmem:[%s246_s26 + $0x18] sm:$0xff]  ;;  %v253_v1 = vld [vmem:[%s246_s26 + $0x8] sm:$0xff]  ;;  %v252_v2 = vld [vmem:[%s246_s26] sm:$0xff] }
   0xf   : > { %v277_v3 = vsel %vm267_vm0, %v255_v0, 0.0  ;;  %v271_v4 = vsel %vm267_vm0, %v253_v1, 0.0  ;;  %v268_v5 = vsel %vm267_vm0, %v252_v2, 0.0  ;;  %v256_v6 = vld [vmem:[%s246_s26 + $0x20] sm:$0xff]  ;;  %v254_v7 = vld [vmem:[%s246_s26 + $0x10] sm:$0xff]  ;;  %v259_v8 = vld [vmem:[%s246_s26 + $0x38] sm:$0xff] }
  0x10   : > { %278 = vadd.xlane.f32.xlu2 %v277_v3  ;;  %272 = vadd.xlane.f32.xlu1 %v271_v4  ;;  %v280_v9 = vsel %vm267_vm0, %v256_v6, 0.0  ;;  %v274_v10 = vsel %vm267_vm0, %v254_v7, 0.0  ;;  %v289_v11 = vsel %vm267_vm0, %v259_v8, 0.0  ;;  %v258_v12 = vld [vmem:[%s246_s26 + $0x30] sm:$0xff]  ;;  %v257_v13 = vld [vmem:[%s246_s26 + $0x28] sm:$0xff] }
  0x11   : > { %269 = vadd.xlane.f32.xlu0 %v268_v5  ;;  %v286_v14 = vsel %vm267_vm0, %v258_v12, 0.0  ;;  %v283_v15 = vsel %vm267_vm0, %v257_v13, 0.0 }
  0x12   : > { %v2784_v17 = vpop.eup %2783 }
  0x13   : > { %v293_v18 = vmul.f32 32.0, %v2784_v17  ;;  %vm297_vm1 = vweird.f32 %v2784_v17 }
  0x15   : > { %v294_v19 = vsub.f32 1.0, %v293_v18 }
  0x17   : > { %v295_v20 = vmul.f32 %v2784_v17, %v294_v19 }
  0x18   : > { %281 = vadd.xlane.f32.xlu2 %v280_v9  ;;  %275 = vadd.xlane.f32.xlu1 %v274_v10 }
  0x19   : > { %290 = vadd.xlane.f32.xlu0 %v289_v11  ;;  %v296_v21 = vadd.f32 %v2784_v17, %v295_v20 }
  0x1b   : > { %v2998_v22 = vsel %vm297_vm1, %v2784_v17, %v296_v21 }
  0x20   : > { %287 = vadd.xlane.f32.xlu1 %v286_v14 }
  0x21   : > { %284 = vadd.xlane.f32.xlu0 %v283_v15 }
  0x83   : > { %v279_v23 = vpop.xlane.xlu2 %278  ;;  %v273_v24 = vpop.xlane.xlu1 %272 }
  0x84   : > { %v300_v25 = vmul.f32 %v2998_v22, %v273_v24  ;;  %v270_v26 = vpop.xlane.xlu0 %269  ;;  %v302_v39 = vmul.f32 %v2998_v22, %v279_v23 }
  0x85   : > { %v299_v27 = vmul.f32 %v2998_v22, %v270_v26 }
  0x86   : > { %v3002_v28 = vsub.f32 %v253_v1, %v300_v25  ;;  %v3026_v46 = vsub.f32 %v255_v0, %v302_v39 }
  0x87   : > { %v3004_v29 = vsub.f32 %v252_v2, %v299_v27 }
  0x88   : > { %v316_v30 = vmul.f32 %v3002_v28, %v3002_v28  ;;  %v318_v55 = vmul.f32 %v3026_v46, %v3026_v46 }
  0x89   : > { %v315_v31 = vmul.f32 %v3004_v29, %v3004_v29 }
  0x8a   : > { %v326_v32 = vsel %vm267_vm0, %v316_v30, 0.0  ;;  %v332_v58 = vsel %vm267_vm0, %v318_v55, 0.0 }
  0x8b   : > { %v282_v33 = vpop.xlane.xlu2 %281  ;;  %327 = vadd.xlane.f32.xlu1 %v326_v32  ;;  %v276_v34 = vpop.xlane.xlu1 %275  ;;  %v323_v35 = vsel %vm267_vm0, %v315_v31, 0.0 }
  0x8c   : > { %v303_v36 = vmul.f32 %v2998_v22, %v282_v33  ;;  %v301_v37 = vmul.f32 %v2998_v22, %v276_v34  ;;  %324 = vadd.xlane.f32.xlu2 %v323_v35  ;;  %v291_v38 = vpop.xlane.xlu0 %290 }
  0x8d   : > { %v306_v40 = vmul.f32 %v2998_v22, %v291_v38 }
  0x8e   : > { %v3016_v41 = vsub.f32 %v256_v6, %v303_v36  ;;  %v3018_v42 = vsub.f32 %v254_v7, %v301_v37 }
  0x8f   : > { %v3020_v43 = vsub.f32 %v259_v8, %v306_v40 }
  0x90   : > { %v319_v44 = vmul.f32 %v3016_v41, %v3016_v41  ;;  %v317_v45 = vmul.f32 %v3018_v42, %v3018_v42 }
  0x91   : > { %v322_v47 = vmul.f32 %v3020_v43, %v3020_v43 }
  0x92   : > { %v335_v48 = vsel %vm267_vm0, %v319_v44, 0.0  ;;  %v329_v49 = vsel %vm267_vm0, %v317_v45, 0.0 }
  0x93   : > { %336 = vadd.xlane.f32.xlu1 %v335_v48  ;;  %v344_v50 = vsel %vm267_vm0, %v322_v47, 0.0  ;;  %v288_v51 = vpop.xlane.xlu1 %287 }
  0x94   : > { %330 = vadd.xlane.f32.xlu2 %v329_v49  ;;  %345 = vadd.xlane.f32.xlu0 %v344_v50  ;;  %v285_v52 = vpop.xlane.xlu0 %284  ;;  %v305_v54 = vmul.f32 %v2998_v22, %v288_v51  ;;  %v3085_v50 = vld [vmem:[%s4612_s1] ss:$0 sm:$0xff] }
  0x95   : > { %v304_v53 = vmul.f32 %v2998_v22, %v285_v52 }
  0x96   : > { %v3039_v57 = vsub.f32 %v258_v12, %v305_v54 }
  0x97   : > { %v3037_v56 = vsub.f32 %v257_v13, %v304_v53 }
  0x98   : > { %v321_v61 = vmul.f32 %v3039_v57, %v3039_v57 }
  0x99   : > { %v320_v59 = vmul.f32 %v3037_v56, %v3037_v56 }
  0x9a   : > { %v341_v62 = vsel %vm267_vm0, %v321_v61, 0.0 }
  0x9b   : > { %v338_v60 = vsel %vm267_vm0, %v320_v59, 0.0 }
  0x9c   : > { %333 = vadd.xlane.f32.xlu0 %v332_v58  ;;  %339 = vadd.xlane.f32.xlu2 %v338_v60  ;;  %v3094_v58 = vld [vmem:[%s4612_s1 + $0x1] ss:$0 sm:$0xff] }
  0xa4   : > { %342 = vadd.xlane.f32.xlu0 %v341_v62 }
  0xfe   : > { %v328_v63 = vpop.xlane.xlu1 %327 }
  0xff   : > { %v348_v0 = vmul.f32 %v328_v63, %v2998_v22  ;;  %v325_v1 = vpop.xlane.xlu2 %324 }
 0x100   : > { %v347_v2 = vmul.f32 %v325_v1, %v2998_v22 }
 0x101   : > { %v356_v3 = vadd.f32 1e-05, %v348_v0 }
 0x102   : > { %v355_v4 = vadd.f32 1e-05, %v347_v2 }
 0x103   : > { %2785 = vrsqrt.f32 %v356_v3  ;;  %vm379_vm2 = vweird.f32 %v356_v3 }
 0x104   : > { %2787 = vrsqrt.f32 %v355_v4  ;;  %vm369_vm6 = vweird.f32 %v355_v4 }
 0x106   : > { %v337_v5 = vpop.xlane.xlu1 %336 }
 0x107   : > { %v351_v6 = vmul.f32 %v337_v5, %v2998_v22  ;;  %v331_v7 = vpop.xlane.xlu2 %330  ;;  %v346_v8 = vpop.xlane.xlu0 %345 }
 0x108   : > { %v349_v9 = vmul.f32 %v331_v7, %v2998_v22  ;;  %v354_v10 = vmul.f32 %v346_v8, %v2998_v22 }
 0x109   : > { %v2786_v11 = vpop.eup %2785  ;;  %v359_v12 = vadd.f32 1e-05, %v351_v6 }
 0x10a   : > { %v2788_v13 = vpop.eup %2787  ;;  %v374_v14 = vmul.f32 %v2786_v11, %v356_v3  ;;  %v3053_v15 = vadd.f32 1e-05, %v349_v9  ;;  %v3055_v16 = vadd.f32 1e-05, %v354_v10  ;;  %vm380_vm3 = vweird.f32 %v2786_v11 }
 0x10b   : > { %v364_v17 = vmul.f32 %v2788_v13, %v355_v4  ;;  %2789 = vrsqrt.f32 %v359_v12  ;;  %vm370_vm4 = vweird.f32 %v2788_v13  ;;  %vm3069_vm5 = vmor %vm379_vm2, %vm380_vm3  ;;  %vm409_vm8 = vweird.f32 %v359_v12 }
 0x10c   : > { %v375_v18 = vmul.f32 %v2786_v11, %v374_v14  ;;  %2791 = vrsqrt.f32 %v3053_v15  ;;  %vm371_vm7 = vmor %vm369_vm6, %vm370_vm4  ;;  %vm389_vm10 = vweird.f32 %v3053_v15  ;;  %vm439_vm15 = vweird.f32 %v3055_v16 }
 0x10d   : > { %v365_v19 = vmul.f32 %v2788_v13, %v364_v17  ;;  %2793 = vrsqrt.f32 %v3055_v16 }
 0x10e   : > { %v376_v20 = vmul.f32 0.5, %v375_v18 }
 0x10f   : > { %v366_v21 = vmul.f32 0.5, %v365_v19  ;;  %v340_v23 = vpop.xlane.xlu2 %339  ;;  %v334_v24 = vpop.xlane.xlu0 %333 }
 0x110   : > { %v377_v25 = vsub.f32 1.5, %v376_v20  ;;  %v352_v26 = vmul.f32 %v340_v23, %v2998_v22  ;;  %v350_v27 = vmul.f32 %v334_v24, %v2998_v22 }
 0x111   : > { %v3061_v30 = vpop.eup %2789  ;;  %v367_v31 = vsub.f32 1.5, %v366_v21 }
 0x112   : > { %v2792_v32 = vpop.eup %2791  ;;  %v378_v33 = vmul.f32 %v2786_v11, %v377_v25  ;;  %v404_v34 = vmul.f32 %v3061_v30, %v359_v12  ;;  %v3064_v35 = vadd.f32 1e-05, %v352_v26  ;;  %v3074_v40 = vadd.f32 1e-05, %v350_v27 }
 0x113   : > { %v3066_v36 = vpop.eup %2793  ;;  %v368_v38 = vmul.f32 %v2788_v13, %v367_v31  ;;  %v384_v39 = vmul.f32 %v2792_v32, %v3053_v15  ;;  %vm410_vm9 = vweird.f32 %v3061_v30  ;;  %vm390_vm12 = vweird.f32 %v2792_v32 }
 0x114   : > { %v382_v44 = vsel %vm3069_vm5, %v2786_v11, %v378_v33  ;;  %v405_v45 = vmul.f32 %v3061_v30, %v404_v34  ;;  %v434_v47 = vmul.f32 %v3066_v36, %v3055_v16  ;;  %2795 = vrsqrt.f32 %v3064_v35  ;;  %vm3100_vm11 = vmor %vm409_vm8, %vm410_vm9 }
 0x115   : > { %v372_v48 = vsel %vm371_vm7, %v2788_v13, %v368_v38  ;;  %v385_v49 = vmul.f32 %v2792_v32, %v384_v39  ;;  %2797 = vrsqrt.f32 %v3074_v40  ;;  %v444_v59 = vmul.f32 %v382_v44, %v3002_v28  ;;  %vm391_vm14 = vmor %vm389_vm10, %vm390_vm12 }
 0x116   : > { %v406_v51 = vmul.f32 0.5, %v405_v45  ;;  %v435_v52 = vmul.f32 %v3066_v36, %v434_v47  ;;  %v443_v55 = vmul.f32 %v372_v48, %v3004_v29  ;;  %vm440_vm13 = vweird.f32 %v3066_v36 }
 0x117   : > { %v386_v53 = vmul.f32 0.5, %v385_v49  ;;  %v343_v54 = vpop.xlane.xlu0 %342  ;;  %v453_v1 = vmul.f32 %v3085_v50, %v444_v59  ;;  %vm441_vm1 = vmor %vm439_vm15, %vm440_vm13  ;;  %vm419_vm2 = vweird.f32 %v3064_v35  ;;  %vm399_vm4 = vweird.f32 %v3074_v40 }
 0x118   : > { %v407_v60 = vsub.f32 1.5, %v406_v51  ;;  %v436_v61 = vmul.f32 0.5, %v435_v52  ;;  %v353_v62 = vmul.f32 %v343_v54, %v2998_v22  ;;  %v452_v29 = vmul.f32 %v3085_v50, %v443_v55 }
 0x119   : > { %v387_v0 = vsub.f32 1.5, %v386_v53  ;;  %v3112_v7 = vadd.f32 %v3094_v58, %v453_v1 }
 0x11a   : > { %v408_v2 = vmul.f32 %v3061_v30, %v407_v60  ;;  %v437_v28 = vsub.f32 1.5, %v436_v61  ;;  %v361_v3 = vadd.f32 1e-05, %v353_v62  ;;  %v2796_v4 = vpop.eup %2795  ;;  %v3109_v6 = vadd.f32 %v3094_v58, %v452_v29 }
 0x11b   : > { %v388_v5 = vmul.f32 %v2792_v32, %v387_v0  ;;  %v2798_v8 = vpop.eup %2797  ;;  %v414_v11 = vmul.f32 %v2796_v4, %v3064_v35  ;;  %v472_v15 = vsel %vm267_vm0, %v3112_v7, 0.0  ;;  %vm420_vm3 = vweird.f32 %v2796_v4 }
 0x11c   : > { %v412_v9 = vsel %vm3100_vm11, %v3061_v30, %v408_v2  ;;  %v438_v10 = vmul.f32 %v3066_v36, %v437_v28  ;;  %v394_v13 = vmul.f32 %v2798_v8, %v3074_v40  ;;  %2799 = vrsqrt.f32 %v361_v3  ;;  %473 = vadd.xlane.f32.xlu0 %v472_v15  ;;  %vm3136_vm5 = vmor %vm419_vm2, %vm420_vm3 }
 0x11d   : > { %v392_v12 = vsel %vm391_vm14, %v2792_v32, %v388_v5  ;;  %v415_v17 = vmul.f32 %v2796_v4, %v414_v11  ;;  %v469_v18 = vsel %vm267_vm0, %v3109_v6, 0.0  ;;  %v447_v20 = vmul.f32 %v412_v9, %v3016_v41 }
 0x11e   : > { %v442_v14 = vsel %vm441_vm1, %v3066_v36, %v438_v10  ;;  %v395_v19 = vmul.f32 %v2798_v8, %v394_v13  ;;  %470 = vadd.xlane.f32.xlu1 %v469_v18  ;;  %v445_v16 = vmul.f32 %v392_v12, %v3018_v42  ;;  %vm400_vm6 = vweird.f32 %v2798_v8 }
 0x11f   : > { %v416_v21 = vmul.f32 0.5, %v415_v17  ;;  %v450_v23 = vmul.f32 %v442_v14, %v3020_v43  ;;  %v456_v26 = vmul.f32 %v3085_v50, %v447_v20  ;;  %vm401_vm7 = vmor %vm399_vm4, %vm400_vm6  ;;  %vm429_vm8 = vweird.f32 %v361_v3 }
 0x120   : > { %v396_v24 = vmul.f32 0.5, %v395_v19  ;;  %v454_v25 = vmul.f32 %v3085_v50, %v445_v16 }
 0x121   : > { %v417_v27 = vsub.f32 1.5, %v416_v21  ;;  %v459_v30 = vmul.f32 %v3085_v50, %v450_v23  ;;  %v3144_v43 = vadd.f32 %v3094_v58, %v456_v26 }
 0x122   : > { %v2800_v42 = vpop.eup %2799  ;;  %v397_v31 = vsub.f32 1.5, %v396_v24  ;;  %v3141_v32 = vadd.f32 %v3094_v58, %v454_v25 }
 0x123   : > { %v418_v33 = vmul.f32 %v2796_v4, %v417_v27  ;;  %v424_v34 = vmul.f32 %v2800_v42, %v361_v3  ;;  %v3147_v35 = vadd.f32 %v3094_v58, %v459_v30  ;;  %v481_v38 = vsel %vm267_vm0, %v3144_v43, 0.0 }
 0x124   : > { %v398_v36 = vmul.f32 %v2798_v8, %v397_v31  ;;  %v475_v37 = vsel %vm267_vm0, %v3141_v32, 0.0  ;;  %vm430_vm9 = vweird.f32 %v2800_v42  ;;  %482 = vadd.xlane.f32.xlu0 %v481_v38 }
 0x125   : > { %v422_v39 = vsel %vm3136_vm5, %v2796_v4, %v418_v33  ;;  %v425_v44 = vmul.f32 %v2800_v42, %v424_v34  ;;  %v490_v45 = vsel %vm267_vm0, %v3147_v35, 0.0  ;;  %vm431_vm10 = vmor %vm429_vm8, %vm430_vm9 }
 0x126   : > { %v402_v47 = vsel %vm401_vm7, %v2798_v8, %v398_v36  ;;  %476 = vadd.xlane.f32.xlu1 %v475_v37  ;;  %491 = vadd.xlane.f32.xlu2 %v490_v45  ;;  %v448_v48 = vmul.f32 %v422_v39, %v3037_v56  ;;  %v752_v45 = vld [vmem:[%s4614_s3 + $0x18] sm:$0xff] }
 0x127   : > { %v426_v49 = vmul.f32 0.5, %v425_v44  ;;  %v446_v51 = vmul.f32 %v402_v47, %v3026_v46  ;;  %v2589_v47 = vld [vmem:[%s4614_s3 + $0x58] sm:$0xff]  ;;  %859 = vmatpush.msra.mxu1 %v752_v45 }
 0x128   : > { %v457_v52 = vmul.f32 %v3085_v50, %v448_v48  ;;  %951 = vmatpush.msra.mxu3 %v2589_v47  ;;  %v751_v48 = vld [vmem:[%s4614_s3 + $0x10] sm:$0xff] }
 0x129   : > { %v427_v53 = vsub.f32 1.5, %v426_v49  ;;  %v455_v40 = vmul.f32 %v3085_v50, %v446_v51  ;;  %v2588_v49 = vld [vmem:[%s4614_s3 + $0x50] sm:$0xff]  ;;  %860 = vmatpush.msra.mxu1 %v751_v48  ;;  %v750_v51 = vld [vmem:[%s4614_s3 + $0x8] sm:$0xff] }
 0x12a   : > { %v3164_v54 = vadd.f32 %v3094_v58, %v457_v52  ;;  %952 = vmatpush.msra.mxu3 %v2588_v49  ;;  %v2587_v52 = vld [vmem:[%s4614_s3 + $0x48] sm:$0xff] }
 0x12b   : > { %v428_v55 = vmul.f32 %v2800_v42, %v427_v53  ;;  %v3167_v59 = vadd.f32 %v3094_v58, %v455_v40  ;;  %861 = vmatpush.msra.mxu1 %v750_v51  ;;  %v749_v53 = vld [vmem:[%s4614_s3] sm:$0xff] }
 0x12c   : > { %v484_v56 = vsel %vm267_vm0, %v3164_v54, 0.0  ;;  %953 = vmatpush.msra.mxu3 %v2587_v52  ;;  %v2586_v40 = vld [vmem:[%s4614_s3 + $0x40] sm:$0xff] }
 0x12d   : > { %v432_v60 = vsel %vm431_vm10, %v2800_v42, %v428_v55  ;;  %v478_v46 = vsel %vm267_vm0, %v3167_v59, 0.0  ;;  %862 = vmatpush.msra.mxu1 %v749_v53  ;;  %v3308_v51 = vld [vmem:[%s4612_s1 + $0x2] ss:$0 sm:$0xff] }
 0x12e   : > { %485 = vadd.xlane.f32.xlu1 %v484_v56  ;;  %479 = vadd.xlane.f32.xlu2 %v478_v46  ;;  %v449_v61 = vmul.f32 %v432_v60, %v3039_v57 }
 0x12f   : > { %954 = vmatpush.msra.mxu3 %v2586_v40 }
 0x130   : > { %v458_v62 = vmul.f32 %v3085_v50, %v449_v61 }
 0x132   : > { %v3176_v63 = vadd.f32 %v3094_v58, %v458_v62 }
 0x134   : > { %v487_v0 = vsel %vm267_vm0, %v3176_v63, 0.0 }
 0x136   : > { %488 = vadd.xlane.f32.xlu2 %v487_v0  ;;  %v2569_v0 = vld [vmem:[%s4614_s3 + $0x38] sm:$0xff] }
 0x137   : > { %794 = vmatpush.msra.mxu0 %v2569_v0 }
 0x18f   : > { %v474_v2 = vpop.xlane.xlu0 %473 }
 0x190   : > { %v494_v28 = vmul.f32 %v474_v2, %v2998_v22 }
 0x191   : > { %v471_v29 = vpop.xlane.xlu1 %470 }
 0x192   : > { %v493_v1 = vmul.f32 %v471_v29, %v2998_v22  ;;  %v3186_v57 = vsub.f32 %v3112_v7, %v494_v28  ;;  %v2593_v29 = vld [vmem:[%s4614_s3 + $0x78] sm:$0xff]  ;;  %v2568_v28 = vld [vmem:[%s4614_s3 + $0x30] sm:$0xff] }
 0x193   : > { %910 = vmatpush.msra.mxu2 %v2593_v29  ;;  %795 = vmatpush.msra.mxu0 %v2568_v28 }
 0x194   : > { %v3183_v3 = vsub.f32 %v3109_v6, %v493_v1  ;;  %v510_v58 = vmul.f32 %v3186_v57, %v3186_v57 }
 0x196   : > { %v509_v50 = vmul.f32 %v3183_v3, %v3183_v3  ;;  %v520_v9 = vsel %vm267_vm0, %v510_v58, 0.0 }
 0x197   : > { %521 = vadd.xlane.f32.xlu2 %v520_v9  ;;  %v483_v12 = vpop.xlane.xlu0 %482  ;;  %v2567_v9 = vld [vmem:[%s4614_s3 + $0x28] sm:$0xff] }
 0x198   : > { %v517_v4 = vsel %vm267_vm0, %v509_v50, 0.0  ;;  %v497_v13 = vmul.f32 %v483_v12, %v2998_v22  ;;  %v2592_v50 = vld [vmem:[%s4614_s3 + $0x70] sm:$0xff]  ;;  %796 = vmatpush.msra.mxu0 %v2567_v9 }
 0x199   : > { %v477_v5 = vpop.xlane.xlu1 %476  ;;  %518 = vadd.xlane.f32.xlu0 %v517_v4  ;;  %v492_v8 = vpop.xlane.xlu2 %491  ;;  %911 = vmatpush.msra.mxu2 %v2592_v50 }
 0x19a   : > { %v495_v10 = vmul.f32 %v477_v5, %v2998_v22  ;;  %v500_v11 = vmul.f32 %v492_v8, %v2998_v22  ;;  %v3204_v18 = vsub.f32 %v3144_v43, %v497_v13 }
 0x19c   : > { %v3198_v14 = vsub.f32 %v3141_v32, %v495_v10  ;;  %v3201_v17 = vsub.f32 %v3147_v35, %v500_v11  ;;  %v513_v16 = vmul.f32 %v3204_v18, %v3204_v18  ;;  %v2591_v10 = vld [vmem:[%s4614_s3 + $0x68] sm:$0xff] }
 0x19d   : > { %912 = vmatpush.msra.mxu2 %v2591_v10 }
 0x19e   : > { %v511_v19 = vmul.f32 %v3198_v14, %v3198_v14  ;;  %v516_v15 = vmul.f32 %v3201_v17, %v3201_v17  ;;  %v529_v25 = vsel %vm267_vm0, %v513_v16, 0.0 }
 0x19f   : > { %530 = vadd.xlane.f32.xlu2 %v529_v25 }
 0x1a0   : > { %v523_v20 = vsel %vm267_vm0, %v511_v19, 0.0  ;;  %v538_v21 = vsel %vm267_vm0, %v516_v15, 0.0 }
 0x1a1   : > { %524 = vadd.xlane.f32.xlu0 %v523_v20  ;;  %v486_v23 = vpop.xlane.xlu1 %485  ;;  %539 = vadd.xlane.f32.xlu1 %v538_v21  ;;  %v480_v24 = vpop.xlane.xlu2 %479  ;;  %v2566_v20 = vld [vmem:[%s4614_s3 + $0x20] sm:$0xff] }
 0x1a2   : > { %v498_v26 = vmul.f32 %v486_v23, %v2998_v22  ;;  %v496_v27 = vmul.f32 %v480_v24, %v2998_v22  ;;  %v2590_v21 = vld [vmem:[%s4614_s3 + $0x60] sm:$0xff]  ;;  %797 = vmatpush.msra.mxu0 %v2566_v20 }
 0x1a3   : > { %913 = vmatpush.msra.mxu2 %v2590_v21 }
 0x1a4   : > { %v3218_v30 = vsub.f32 %v3164_v54, %v498_v26  ;;  %v3221_v42 = vsub.f32 %v3167_v59, %v496_v27 }
 0x1a6   : > { %v514_v41 = vmul.f32 %v3218_v30, %v3218_v30  ;;  %v512_v31 = vmul.f32 %v3221_v42, %v3221_v42 }
 0x1a8   : > { %v532_v33 = vsel %vm267_vm0, %v514_v41, 0.0  ;;  %v526_v34 = vsel %vm267_vm0, %v512_v31, 0.0 }
 0x1a9   : > { %533 = vadd.xlane.f32.xlu0 %v532_v33  ;;  %527 = vadd.xlane.f32.xlu1 %v526_v34  ;;  %v489_v36 = vpop.xlane.xlu2 %488 }
 0x1aa   : > { %v499_v37 = vmul.f32 %v489_v36, %v2998_v22 }
 0x1ac   : > { %v3231_v38 = vsub.f32 %v3176_v63, %v499_v37 }
 0x1ae   : > { %v515_v39 = vmul.f32 %v3231_v38, %v3231_v38 }
 0x1b0   : > { %v535_v44 = vsel %vm267_vm0, %v515_v39, 0.0 }
 0x1b1   : > { %536 = vadd.xlane.f32.xlu1 %v535_v44 }
 0x20a   : > { %v522_v56 = vpop.xlane.xlu2 %521 }
 0x20b   : > { %v542_v46 = vmul.f32 %v522_v56, %v2998_v22 }
 0x20c   : > { %v519_v55 = vpop.xlane.xlu0 %518 }
 0x20d   : > { %v541_v60 = vmul.f32 %v519_v55, %v2998_v22  ;;  %v550_v62 = vadd.f32 1e-05, %v542_v46 }
 0x20f   : > { %v549_v61 = vadd.f32 1e-05, %v541_v60  ;;  %vm573_vm14 = vweird.f32 %v550_v62 }
 0x211   : > { %2801 = vrsqrt.f32 %v549_v61  ;;  %vm563_vm13 = vweird.f32 %v549_v61 }
 0x212   : > { %2803 = vrsqrt.f32 %v550_v62  ;;  %v531_v4 = vpop.xlane.xlu2 %530 }
 0x213   : > { %v545_v8 = vmul.f32 %v531_v4, %v2998_v22  ;;  %v663_v4 = vlaneseq }
 0x214   : > { %v540_v1 = vpop.xlane.xlu1 %539  ;;  %v525_v2 = vpop.xlane.xlu0 %524 }
 0x215   : > { %v548_v58 = vmul.f32 %v540_v1, %v2998_v22  ;;  %v543_v5 = vmul.f32 %v525_v2, %v2998_v22  ;;  %v3287_v16 = vadd.f32 1e-05, %v545_v8 }
 0x217   : > { %v2802_v11 = vpop.eup %2801  ;;  %v3283_v12 = vadd.f32 1e-05, %v548_v58  ;;  %v3285_v13 = vadd.f32 1e-05, %v543_v5 }
 0x218   : > { %v2804_v19 = vpop.eup %2803  ;;  %v558_v15 = vmul.f32 %v2802_v11, %v549_v61  ;;  %vm564_vm11 = vweird.f32 %v2802_v11  ;;  %v3318_v61 = vld [vmem:[%s4612_s1 + $0x3] ss:$0 sm:$0xff] }
 0x219   : > { %v568_v23 = vmul.f32 %v2804_v19, %v550_v62  ;;  %2805 = vrsqrt.f32 %v3283_v12  ;;  %vm574_vm12 = vweird.f32 %v2804_v19  ;;  %vm565_vm15 = vmor %vm563_vm13, %vm564_vm11  ;;  %vm633_vm3 = vweird.f32 %v3283_v12 }
 0x21a   : > { %v559_v24 = vmul.f32 %v2802_v11, %v558_v15  ;;  %2807 = vrsqrt.f32 %v3285_v13  ;;  %vm575_vm1 = vmor %vm573_vm14, %vm574_vm12  ;;  %vm583_vm6 = vweird.f32 %v3285_v13 }
 0x21b   : > { %v569_v25 = vmul.f32 %v2804_v19, %v568_v23  ;;  %2809 = vrsqrt.f32 %v3287_v16 }
 0x21c   : > { %v560_v26 = vmul.f32 0.5, %v559_v24  ;;  %v528_v27 = vpop.xlane.xlu1 %527  ;;  %v534_v41 = vpop.xlane.xlu0 %533 }
 0x21d   : > { %v570_v31 = vmul.f32 0.5, %v569_v25  ;;  %v544_v33 = vmul.f32 %v528_v27, %v2998_v22  ;;  %v546_v34 = vmul.f32 %v534_v41, %v2998_v22  ;;  %v3347_v25 = vshrl.u32 %v663_v4, 7 }
 0x21e   : > { %v561_v36 = vsub.f32 1.5, %v560_v26 }
 0x21f   : > { %v2806_v37 = vpop.eup %2805  ;;  %v571_v39 = vsub.f32 1.5, %v570_v31  ;;  %v3300_v44 = vadd.f32 1e-05, %v544_v33  ;;  %v3303_v48 = vadd.f32 1e-05, %v546_v34  ;;  %vm723_vm9 = vcmp.lt.s32.totalorder %v3347_v25, 7 }
 0x220   : > { %v562_v45 = vmul.f32 %v2802_v11, %v561_v36  ;;  %v628_v47 = vmul.f32 %v2806_v37, %v3283_v12  ;;  %v2808_v49 = vpop.eup %2807  ;;  %vm634_vm2 = vweird.f32 %v2806_v37  ;;  %vm674_vm12 = vcmp.ge.s32.totalorder %v3347_v25, 1 }
 0x221   : > { %v572_v52 = vmul.f32 %v2804_v19, %v571_v39  ;;  %2811 = vrsqrt.f32 %v3300_v44  ;;  %v3311_v53 = vpop.eup %2809  ;;  %v578_v56 = vmul.f32 %v2808_v49, %v3285_v13  ;;  %vm584_vm4 = vweird.f32 %v2808_v49  ;;  %vm635_vm5 = vmor %vm633_vm3, %vm634_vm2 }
 0x222   : > { %v566_v40 = vsel %vm565_vm15, %v2802_v11, %v562_v45  ;;  %v629_v55 = vmul.f32 %v2806_v37, %v628_v47  ;;  %2813 = vrsqrt.f32 %v3303_v48  ;;  %v598_v28 = vmul.f32 %v3311_v53, %v3287_v16  ;;  %vm585_vm7 = vmor %vm583_vm6, %vm584_vm4 }
 0x223   : > { %v576_v60 = vsel %vm575_vm1, %v2804_v19, %v572_v52  ;;  %v637_v46 = vmul.f32 %v566_v40, %v3183_v3  ;;  %v579_v29 = vmul.f32 %v2808_v49, %v578_v56  ;;  %vm593_vm10 = vweird.f32 %v3300_v44 }
 0x224   : > { %v638_v62 = vmul.f32 %v576_v60, %v3186_v57  ;;  %v630_v0 = vmul.f32 0.5, %v629_v55  ;;  %v537_v1 = vpop.xlane.xlu1 %536  ;;  %v599_v15 = vmul.f32 %v3311_v53, %v598_v28  ;;  %vm690_vm13 = vcmp.lt.s32.totalorder %v3347_v25, 1 }
 0x225   : > { %v646_v2 = vmul.f32 %v3308_v51, %v637_v46  ;;  %v547_v50 = vmul.f32 %v537_v1, %v2998_v22  ;;  %v580_v58 = vmul.f32 0.5, %v579_v29  ;;  %vm604_vm15 = vweird.f32 %v3311_v53 }
 0x226   : > { %v631_v3 = vsub.f32 1.5, %v630_v0  ;;  %v647_v9 = vmul.f32 %v3308_v51, %v638_v62  ;;  %v600_v33 = vmul.f32 0.5, %v599_v15  ;;  %vm603_vm1 = vweird.f32 %v3287_v16 }
 0x227   : > { %v2812_v5 = vpop.eup %2811  ;;  %v3327_v57 = vadd.f32 1e-05, %v547_v50  ;;  %v3330_v8 = vadd.f32 %v3318_v61, %v646_v2  ;;  %v581_v11 = vsub.f32 1.5, %v580_v58  ;;  %vm605_vm2 = vmor %vm603_vm1, %vm604_vm15  ;;  %vm613_vm4 = vweird.f32 %v3303_v48 }
 0x228   : > { %v632_v10 = vmul.f32 %v2806_v37, %v631_v3  ;;  %v588_v19 = vmul.f32 %v2812_v5, %v3300_v44  ;;  %v3340_v12 = vpop.eup %2813  ;;  %v3350_v41 = vadd.f32 %v3318_v61, %v647_v9  ;;  %vm594_vm8 = vweird.f32 %v2812_v5 }
 0x229   : > { %2578 = vmatmul.msk.f32.vlgmr.msra.gmra.mxu1 %vm267_vm0, %v3330_v8  ;;  %2602 = vmatmul.msk.f32.vlgmr.msra.gmra.mxu3 %vm267_vm0, %v3330_v8  ;;  %v582_v21 = vmul.f32 %v2808_v49, %v581_v11  ;;  %2815 = vrsqrt.f32 %v3327_v57  ;;  %v608_v13 = vmul.f32 %v3340_v12, %v3303_v48  ;;  %v601_v40 = vsub.f32 1.5, %v600_v33  ;;  %vm595_vm11 = vmor %vm593_vm10, %vm594_vm8 }
 0x22a   : > { %v636_v20 = vsel %vm635_vm5, %v2806_v37, %v632_v10  ;;  %v589_v23 = vmul.f32 %v2812_v5, %v588_v19  ;;  %v716_v52 = vrot.slane %v3350_v41, 1  ;;  %v682_v55 = vrot.slane %v3330_v8, 7 }
 0x22b   : > { %v644_v24 = vmul.f32 %v636_v20, %v3201_v17  ;;  %v586_v26 = vsel %vm585_vm7, %v2808_v49, %v582_v21  ;;  %v3354_v17 = vand.u32 127, %v663_v4  ;;  %v609_v45 = vmul.f32 %v3340_v12, %v608_v13  ;;  %v2613_v13 = vld [vmem:[%s4614_s3 + $0x98] sm:$0xff] }
 0x22c   : > { %v590_v27 = vmul.f32 0.5, %v589_v23  ;;  %v639_v34 = vmul.f32 %v586_v26, %v3198_v14  ;;  %v715_v14 = vrot.slane %v3330_v8, 1  ;;  %v602_v28 = vmul.f32 %v3311_v53, %v601_v40  ;;  %v2612_v26 = vld [vmem:[%s4614_s3 + $0x90] sm:$0xff]  ;;  %1043 = vmatpush.msrb.mxu1 %v2613_v13 }
 0x22d   : > { %v653_v31 = vmul.f32 %v3308_v51, %v644_v24  ;;  %vm740_vm14 = vcmp.lt.s32.totalorder %v3354_v17, 16  ;;  %v610_v62 = vmul.f32 0.5, %v609_v45  ;;  %vm614_vm3 = vweird.f32 %v3340_v12  ;;  %v2611_v45 = vld [vmem:[%s4614_s3 + $0x88] sm:$0xff] }
 0x22e   : > { %v591_v36 = vsub.f32 1.5, %v590_v27  ;;  %v648_v39 = vmul.f32 %v3308_v51, %v639_v34  ;;  %v730_v2 = vsel %vm723_vm9, %v715_v14, %v716_v52  ;;  %v606_v9 = vsel %vm605_vm2, %v3311_v53, %v602_v28  ;;  %vm615_vm5 = vmor %vm613_vm4, %vm614_vm3  ;;  %1044 = vmatpush.msrb.mxu1 %v2612_v26 }
 0x22f   : > { %v3357_v37 = vadd.f32 %v3318_v61, %v653_v31  ;;  %v3362_v47 = vpop.eup %2815  ;;  %v611_v58 = vsub.f32 1.5, %v610_v62  ;;  %v641_v15 = vmul.f32 %v606_v9, %v3204_v18  ;;  %vm623_vm7 = vweird.f32 %v3327_v57 }
 0x230   : > { %v592_v49 = vmul.f32 %v2812_v5, %v591_v36  ;;  %v3377_v44 = vadd.f32 %v3318_v61, %v648_v39  ;;  %v618_v0 = vmul.f32 %v3362_v47, %v3327_v57  ;;  %vm624_vm6 = vweird.f32 %v3362_v47  ;;  %1045 = vmatpush.msrb.mxu1 %v2611_v45 }
 0x231   : > { %2579 = vmatmul.msk.f32.gmra.mxu1 %vm267_vm0, %v3350_v41  ;;  %2603 = vmatmul.msk.f32.gmra.mxu3 %vm267_vm0, %v3350_v41  ;;  %v689_v56 = vrot.slane %v3357_v37, 7  ;;  %v612_v16 = vmul.f32 %v3340_v12, %v611_v58  ;;  %v650_v24 = vmul.f32 %v3308_v51, %v641_v15  ;;  %vm625_vm8 = vmor %vm623_vm7, %vm624_vm6  ;;  %vm1328_vm15 = vcmp.gt.s32.totalorder %v3354_v17, %v3347_v25 }
 0x232   : > { %v596_v60 = vsel %vm595_vm11, %v2812_v5, %v592_v49  ;;  %v717_v3 = vrot.slane %v3377_v44, 1  ;;  %v619_v4 = vmul.f32 %v3362_v47, %v618_v0  ;;  %v683_v5 = vrot.slane %v3350_v41, 7  ;;  %v2610_v49 = vld [vmem:[%s4614_s3 + $0x80] sm:$0xff] }
 0x233   : > { %v640_v46 = vmul.f32 %v596_v60, %v3221_v42  ;;  %v698_v29 = vsel %vm690_vm13, %v689_v56, %v682_v55  ;;  %v616_v18 = vsel %vm615_vm5, %v3340_v12, %v612_v16  ;;  %v684_v48 = vrot.slane %v3377_v44, 7  ;;  %1046 = vmatpush.msrb.mxu1 %v2610_v49 }
 0x234   : > { %v699_v1 = vsel %vm674_vm12, %v698_v29, 0.0  ;;  %v729_v10 = vsel %vm723_vm9, %v716_v52, %v717_v3  ;;  %v620_v19 = vmul.f32 0.5, %v619_v4  ;;  %v697_v53 = vsel %vm690_vm13, %v682_v55, %v683_v5  ;;  %v2616_v29 = vld [vmem:[%s4614_s3 + $0xb0] sm:$0xff] }
 0x235   : > { %v3396_v42 = vsel %vm740_vm14, %v699_v1, %v730_v2  ;;  %v649_v50 = vmul.f32 %v3308_v51, %v640_v46  ;;  %v3425_v20 = vsel %vm740_vm14, %v697_v53, %v729_v10  ;;  %v642_v12 = vmul.f32 %v616_v18, %v3218_v30 }
 0x236   : > { %2570 = vmatmul.msk.f32.vlgmr.msra.gmra.mxu0 %vm267_vm0, %v3396_v42  ;;  %2594 = vmatmul.msk.f32.vlgmr.msra.gmra.mxu2 %vm267_vm0, %v3396_v42  ;;  %v621_v23 = vsub.f32 1.5, %v620_v19  ;;  %v696_v33 = vsel %vm690_vm13, %v683_v5, %v684_v48  ;;  %v3453_v34 = vadd.f32 %v3318_v61, %v650_v24  ;;  %v722_v19 = vrot.slane %v3357_v37, 1 }
 0x237   : > { %v3415_v11 = vadd.f32 %v3318_v61, %v649_v50  ;;  %v651_v36 = vmul.f32 %v3308_v51, %v642_v12  ;;  %v3535_v18 = vadd.s32 56, %v3347_v25  ;;  %vm1312_vm11 = vcmp.lt.s32.totalorder %v3354_v17, %v3347_v25 }
 0x238   : > { %v622_v31 = vmul.f32 %v3362_v47, %v621_v23  ;;  %v719_v52 = vrot.slane %v3453_v34, 1  ;;  %v686_v1 = vrot.slane %v3453_v34, 7  ;;  %v731_v23 = vsel %vm723_vm9, %v722_v19, %v715_v14 }
 0x239   : > { %2580 = vmatmul.msk.f32.gmra.mxu1 %vm267_vm0, %v3377_v44  ;;  %2604 = vmatmul.msk.f32.gmra.mxu3 %vm267_vm0, %v3377_v44  ;;  %v718_v21 = vrot.slane %v3415_v11, 1  ;;  %v685_v39 = vrot.slane %v3415_v11, 7  ;;  %v660_v60 = vadd.f32 %v3318_v61, %v651_v36  ;;  %vm714_vm10 = vcmp.lt.s32.totalorder %v3535_v18, 63 }
 0x23a   : > { %v626_v57 = vsel %vm625_vm8, %v3362_v47, %v622_v31  ;;  %vm1352_vm1 = vcmask 523264  }
 0x23b   : > { %v728_v27 = vsel %vm723_vm9, %v717_v3, %v718_v21  ;;  %v643_v40 = vmul.f32 %v626_v57, %v3231_v38  ;;  %v695_v55 = vsel %vm690_vm13, %v684_v48, %v685_v39  ;;  %v727_v47 = vsel %vm723_vm9, %v718_v21, %v719_v52  ;;  %v2617_v38 = vld [vmem:[%s4614_s3 + $0xb8] sm:$0xff]  ;;  %v2614_v3 = vld [vmem:[%s4614_s3 + $0xa0] sm:$0xff] }
 0x23c   : > { %v3458_v30 = vsel %vm740_vm14, %v696_v33, %v728_v27  ;;  %v744_v46 = vsel %vm740_vm14, %v695_v55, %v727_v47  ;;  %v720_v0 = vrot.slane %v660_v60, 1  ;;  %1002 = vmatpush.msrb.mxu0 %v2617_v38  ;;  %v694_v2 = vsel %vm690_vm13, %v685_v39, %v686_v1 }
 0x23d   : > { %v652_v62 = vmul.f32 %v3308_v51, %v643_v40  ;;  %v2615_v51 = vld [vmem:[%s4614_s3 + $0xa8] sm:$0xff]  ;;  %v687_v5 = vrot.slane %v660_v60, 7  ;;  %v739_v48 = vsel %vm714_vm10, %v731_v23, 0.0 }
 0x23e   : > { %2571 = vmatmul.msk.f32.gmra.mxu0 %vm267_vm0, %v3425_v20  ;;  %2595 = vmatmul.msk.f32.gmra.mxu2 %vm267_vm0, %v3425_v20  ;;  %v726_v28 = vsel %vm723_vm9, %v719_v52, %v720_v0 }
 0x23f   : > { %v661_v50 = vadd.f32 %v3318_v61, %v652_v62  ;;  %1003 = vmatpush.msrb.mxu0 %v2616_v29  ;;  %v745_v58 = vsel %vm740_vm14, %v694_v2, %v726_v28  ;;  %v693_v9 = vsel %vm690_vm13, %v686_v1, %v687_v5 }
 0x241   : > { %2581 = vmatmul.msk.f32.gmra.mxu1 %vm267_vm0, %v3415_v11  ;;  %2605 = vmatmul.msk.f32.gmra.mxu3 %vm267_vm0, %v3415_v11  ;;  %v721_v4 = vrot.slane %v661_v50, 1  ;;  %v688_v16 = vrot.slane %v661_v50, 7 }
 0x242   : > { %1004 = vmatpush.msrb.mxu0 %v2615_v51 }
 0x243   : > { %v725_v61 = vsel %vm723_vm9, %v720_v0, %v721_v4  ;;  %v692_v15 = vsel %vm690_vm13, %v687_v5, %v688_v16  ;;  %v724_v53 = vsel %vm723_vm9, %v721_v4, %v722_v19  ;;  %v691_v24 = vsel %vm690_vm13, %v688_v16, %v689_v56 }
 0x244   : > { %1005 = vmatpush.msrb.mxu0 %v2614_v3  ;;  %v746_v10 = vsel %vm740_vm14, %v693_v9, %v725_v61  ;;  %v747_v21 = vsel %vm740_vm14, %v692_v15, %v724_v53  ;;  %v748_v13 = vsel %vm740_vm14, %v691_v24, %v739_v48 }
 0x246   : > { %2572 = vmatmul.msk.f32.gmra.mxu0 %vm267_vm0, %v3458_v30  ;;  %2596 = vmatmul.msk.f32.gmra.mxu2 %vm267_vm0, %v3458_v30 }
 0x249   : > { %2582 = vmatmul.msk.f32.gmra.mxu1 %vm267_vm0, %v3453_v34  ;;  %2606 = vmatmul.msk.f32.gmra.mxu3 %vm267_vm0, %v3453_v34 }
 0x24e   : > { %2573 = vmatmul.msk.f32.gmra.mxu0 %vm267_vm0, %v744_v46  ;;  %2597 = vmatmul.msk.f32.gmra.mxu2 %vm267_vm0, %v744_v46 }
 0x251   : > { %2583 = vmatmul.msk.f32.gmra.mxu1 %vm267_vm0, %v660_v60  ;;  %2607 = vmatmul.msk.f32.gmra.mxu3 %vm267_vm0, %v660_v60 }
 0x256   : > { %2574 = vmatmul.msk.f32.gmra.mxu0 %vm267_vm0, %v745_v58  ;;  %2598 = vmatmul.msk.f32.gmra.mxu2 %vm267_vm0, %v745_v58 }
 0x259   : > { %2584 = vmatmul.msk.f32.gmra.mxu1 %vm267_vm0, %v661_v50  ;;  %2608 = vmatmul.msk.f32.gmra.mxu3 %vm267_vm0, %v661_v50 }
 0x25e   : > { %2575 = vmatmul.msk.f32.gmra.mxu0 %vm267_vm0, %v746_v10  ;;  %2599 = vmatmul.msk.f32.gmra.mxu2 %vm267_vm0, %v746_v10 }
 0x261   : > { %2585 = vmatmul.msk.f32.gmra.mxu1 %vm267_vm0, %v3357_v37  ;;  %2609 = vmatmul.msk.f32.gmra.mxu3 %vm267_vm0, %v3357_v37 }
 0x266   : > { %2576 = vmatmul.msk.f32.gmra.mxu0 %vm267_vm0, %v747_v21  ;;  %2600 = vmatmul.msk.f32.gmra.mxu2 %vm267_vm0, %v747_v21 }
 0x269   : > { %2626 = vmatmul.msk.f32.vlgmr.msrb.gmra.mxu1 %vm267_vm0, %v3330_v8 }
 0x26e   : > { %2577 = vmatmul.msk.f32.gmra.mxu0 %vm267_vm0, %v748_v13  ;;  %2601 = vmatmul.msk.f32.gmra.mxu2 %vm267_vm0, %v748_v13 }
 0x271   : > { %2627 = vmatmul.msk.f32.gmra.mxu1 %vm267_vm0, %v3350_v41 }
 0x276   : > { %2618 = vmatmul.msk.f32.vlgmr.msrb.gmra.mxu0 %vm267_vm0, %v3396_v42 }
 0x279   : > { %2628 = vmatmul.msk.f32.gmra.mxu1 %vm267_vm0, %v3377_v44 }
 0x27e   : > { %2619 = vmatmul.msk.f32.gmra.mxu0 %vm267_vm0, %v3425_v20 }
 0x281   : > { %2629 = vmatmul.msk.f32.gmra.mxu1 %vm267_vm0, %v3415_v11 }
 0x286   : > { %2620 = vmatmul.msk.f32.gmra.mxu0 %vm267_vm0, %v3458_v30 }
 0x289   : > { %2630 = vmatmul.msk.f32.gmra.mxu1 %vm267_vm0, %v3453_v34 }
 0x28e   : > { %2621 = vmatmul.msk.f32.gmra.mxu0 %vm267_vm0, %v744_v46 }
 0x291   : > { %2631 = vmatmul.msk.f32.gmra.mxu1 %vm267_vm0, %v660_v60 }
 0x296   : > { %2622 = vmatmul.msk.f32.gmra.mxu0 %vm267_vm0, %v745_v58 }
 0x299   : > { %2632 = vmatmul.msk.f32.gmra.mxu1 %vm267_vm0, %v661_v50 }
 0x29e   : > { %2623 = vmatmul.msk.f32.gmra.mxu0 %vm267_vm0, %v746_v10 }
 0x2a1   : > { %2633 = vmatmul.msk.f32.gmra.mxu1 %vm267_vm0, %v3357_v37 }
 0x2a6   : > { %v864_v8 = vpop.f32.mrf.mxu1  ;;  %2624 = vmatmul.msk.f32.gmra.mxu0 %vm267_vm0, %v747_v21 }
 0x2ac   : > { %v3581_v11 = vpop.f32.mrf.mxu3 }
 0x2ae   : > { %2625 = vmatmul.msk.f32.gmra.mxu0 %vm267_vm0, %v748_v13  ;;  %v867_v41 = vpop.f32.mrf.mxu1 }
 0x2b3   : > { %v799_v14 = vpop.f32.mrf.mxu0 }
 0x2b4   : > { %v3585_v31 = vpop.f32.mrf.mxu3  ;;  %v3599_v62 = vadd.f32 %v864_v8, %v799_v14 }
 0x2b6   : > { %v870_v56 = vpop.f32.mrf.mxu1  ;;  %v1259_v5 = vsel %vm267_vm0, %v3599_v62, -inf }
 0x2b9   : > { %v3579_v42 = vpop.f32.mrf.mxu2 }
 0x2bb   : > { %v802_v44 = vpop.f32.mrf.mxu0 }
 0x2bc   : > { %v3589_v30 = vpop.f32.mrf.mxu3  ;;  %v3595_v55 = vadd.f32 %v867_v41, %v802_v44 }
 0x2be   : > { %v873_v20 = vpop.f32.mrf.mxu1  ;;  %v1260_v28 = vsel %vm267_vm0, %v3595_v55, -inf }
 0x2c1   : > { %v3583_v12 = vpop.f32.mrf.mxu2 }
 0x2c3   : > { %v805_v26 = vpop.f32.mrf.mxu0 }
 0x2c4   : > { %v3593_v57 = vpop.f32.mrf.mxu3  ;;  %v871_v0 = vadd.f32 %v870_v56, %v805_v26 }
 0x2c6   : > { %v876_v37 = vpop.f32.mrf.mxu1  ;;  %v1261_v61 = vsel %vm267_vm0, %v871_v0, -inf }
 0x2c9   : > { %v3587_v34 = vpop.f32.mrf.mxu2 }
 0x2cb   : > { %v808_v27 = vpop.f32.mrf.mxu0 }
 0x2cc   : > { %v874_v38 = vadd.f32 %v873_v20, %v808_v27  ;;  %v3601_v29 = vpop.f32.mrf.mxu3 }
 0x2ce   : > { %v879_v36 = vpop.f32.mrf.mxu1  ;;  %v1262_v9 = vsel %vm267_vm0, %v874_v38, -inf }
 0x2d1   : > { %v3591_v45 = vpop.f32.mrf.mxu2 }
 0x2d3   : > { %v811_v33 = vpop.f32.mrf.mxu0 }
 0x2d4   : > { %v877_v47 = vadd.f32 %v876_v37, %v811_v33  ;;  %v971_v48 = vpop.f32.mrf.mxu3 }
 0x2d6   : > { %v882_v49 = vpop.f32.mrf.mxu1  ;;  %v1263_v50 = vsel %vm267_vm0, %v877_v47, -inf }
 0x2d7   : > { %v1264_v16 = vmax.f32 %v1259_v5, %v1263_v50  ;;  %v2648_v5 = vld [vmem:[%s4613_s2 + $0x70] sm:$0xff] }
 0x2d9   : > { %v3597_v46 = vpop.f32.mrf.mxu2 }
 0x2db   : > { %v814_v39 = vpop.f32.mrf.mxu0 }
 0x2dc   : > { %v880_v40 = vadd.f32 %v879_v36, %v814_v39  ;;  %v974_v20 = vpop.f32.mrf.mxu3 }
 0x2de   : > { %v1265_v1 = vsel %vm267_vm0, %v880_v40, -inf  ;;  %v885_v51 = vpop.f32.mrf.mxu1 }
 0x2df   : > { %v1266_v4 = vmax.f32 %v1260_v28, %v1265_v1 }
 0x2e1   : > { %v1271_v53 = vmax.f32 %v1264_v16, %v1266_v4  ;;  %v930_v23 = vpop.f32.mrf.mxu2  ;;  %v2649_v4 = vld [vmem:[%s4613_s2 + $0x78] sm:$0xff] }
 0x2e3   : > { %v817_v52 = vpop.f32.mrf.mxu0 }
 0x2e4   : > { %v883_v60 = vadd.f32 %v882_v49, %v817_v52 }
 0x2e6   : > { %v1267_v3 = vsel %vm267_vm0, %v883_v60, -inf }
 0x2e7   : > { %v1268_v19 = vmax.f32 %v1261_v61, %v1267_v3  ;;  %v977_v3 = vpop.f32.mrf.mxu3 }
 0x2e9   : > { %v933_v56 = vpop.f32.mrf.mxu2 }
 0x2eb   : > { %v820_v2 = vpop.f32.mrf.mxu0 }
 0x2ec   : > { %v886_v58 = vadd.f32 %v885_v51, %v820_v2 }
 0x2ee   : > { %v1269_v10 = vsel %vm267_vm0, %v886_v58, -inf }
 0x2ef   : > { %v1270_v15 = vmax.f32 %v1262_v9, %v1269_v10 }
 0x2f1   : > { %v1272_v21 = vmax.f32 %v1268_v19, %v1270_v15  ;;  %v936_v28 = vpop.f32.mrf.mxu2 }
 0x2f3   : > { %v1273_v24 = vmax.f32 %v1271_v53, %v1272_v21  ;;  %v972_v53 = vadd.f32 %v971_v48, %v930_v23  ;;  %v2663_v23 = vld [vmem:[%s4613_s2 + $0xe8] sm:$0xff] }
 0x2f5   : > { %v1274_v13 = vrot.slane %v1273_v24, 4 }
 0x2f7   : > { %v1275_v8 = vmax.f32 %v1273_v24, %v1274_v13 }
 0x2f9   : > { %v1276_v41 = vrot.slane %v1275_v8, 2 }
 0x2fb   : > { %v1277_v14 = vmax.f32 %v1275_v8, %v1276_v41  ;;  %v969_v41 = vadd.f32 %v3601_v29, %v3597_v46  ;;  %v2662_v46 = vld [vmem:[%s4613_s2 + $0xe0] sm:$0xff] }
 0x2fd   : > { %v1278_v44 = vrot.slane %v1277_v14, 1 }
 0x2ff   : > { %v1279_v26 = vmax.f32 %v1277_v14, %v1278_v44 }
 0x301   : > { %v1287_v27 = vsub.f32 %v886_v58, %v1279_v26  ;;  %v1286_v37 = vsub.f32 %v883_v60, %v1279_v26  ;;  %v1285_v33 = vsub.f32 %v880_v40, %v1279_v26  ;;  %v1284_v36 = vsub.f32 %v877_v47, %v1279_v26  ;;  %v2665_v40 = vld [vmem:[%s4613_s2 + $0xf8] sm:$0xff] }
 0x302   : > { %v1283_v1 = vsub.f32 %v874_v38, %v1279_v26  ;;  %v1282_v51 = vsub.f32 %v871_v0, %v1279_v26  ;;  %v978_v60 = vadd.f32 %v977_v3, %v936_v28  ;;  %v1281_v38 = vsub.f32 %v3595_v55, %v1279_v26  ;;  %v2664_v55 = vld [vmem:[%s4613_s2 + $0xf0] sm:$0xff] }
 0x303   : > { %v1302_v39 = vmul.f32 1.442695, %v1287_v27  ;;  %v1300_v49 = vmul.f32 1.442695, %v1286_v37  ;;  %v1298_v52 = vmul.f32 1.442695, %v1285_v33  ;;  %v975_v58 = vadd.f32 %v974_v20, %v933_v56 }
 0x304   : > { %v1296_v2 = vmul.f32 1.442695, %v1284_v36  ;;  %v1294_v50 = vmul.f32 1.442695, %v1283_v1  ;;  %v1292_v47 = vmul.f32 1.442695, %v1282_v51  ;;  %v1280_v61 = vsub.f32 %v3599_v62, %v1279_v26 }
 0x305   : > { %2817 = vpow2.f32 %v1302_v39  ;;  %v2647_v62 = vld [vmem:[%s4613_s2 + $0x68] sm:$0xff]  ;;  %v1290_v48 = vmul.f32 1.442695, %v1281_v38  ;;  %v2646_v56 = vld [vmem:[%s4613_s2 + $0x60] sm:$0xff]  ;;  %v2644_v3 = vld [vmem:[%s4613_s2 + $0x50] sm:$0xff] }
 0x306   : > { %2819 = vpow2.f32 %v1300_v49  ;;  %v1288_v44 = vmul.f32 1.442695, %v1280_v61  ;;  %v2645_v49 = vld [vmem:[%s4613_s2 + $0x58] sm:$0xff]  ;;  %v2643_v61 = vld [vmem:[%s4613_s2 + $0x48] sm:$0xff] }
 0x307   : > { %2821 = vpow2.f32 %v1298_v52  ;;  %v966_v52 = vadd.f32 %v3593_v57, %v3591_v45 }
 0x308   : > { %2823 = vpow2.f32 %v1296_v2  ;;  %v2661_v2 = vld [vmem:[%s4613_s2 + $0xd8] sm:$0xff] }
 0x309   : > { %2825 = vpow2.f32 %v1294_v50  ;;  %v963_v50 = vadd.f32 %v3589_v30, %v3587_v34  ;;  %v2660_v34 = vld [vmem:[%s4613_s2 + $0xd0] sm:$0xff] }
 0x30a   : > { %2827 = vpow2.f32 %v1292_v47 }
 0x30b   : > { %v3620_v0 = vpop.eup %2817  ;;  %2829 = vpow2.f32 %v1290_v48 }
 0x30c   : > { %v3626_v9 = vpop.eup %2819  ;;  %v3629_v10 = vmul.f32 %v3620_v0, %v978_v60  ;;  %v1425_v16 = vmul.f32 %v3620_v0, %v2649_v4  ;;  %v1547_v19 = vmul.f32 %v3620_v0, %v2665_v40  ;;  %2831 = vpow2.f32 %v1288_v44 }
 0x30d   : > { %v3636_v15 = vpop.eup %2821  ;;  %v3639_v21 = vmul.f32 %v3626_v9, %v975_v58  ;;  %v1424_v13 = vmul.f32 %v3626_v9, %v2648_v5  ;;  %v1546_v14 = vmul.f32 %v3626_v9, %v2664_v55 }
 0x30e   : > { %1434 = vmatpush.msrb.mxu3 %v1425_v16  ;;  %1556 = vmatpush.msra.mxu1 %v1547_v19  ;;  %v1351_v24 = vmul.f32 %v2649_v4, %v3629_v10  ;;  %v1474_v8 = vmul.f32 %v2665_v40, %v3629_v10  ;;  %v3656_v20 = vpop.eup %2823  ;;  %v1423_v27 = vmul.f32 %v3636_v15, %v2647_v62 }
 0x30f   : > { %v1350_v26 = vmul.f32 %v2648_v5, %v3639_v21  ;;  %v3661_v37 = vmul.f32 %v3636_v15, %v972_v53  ;;  %v3666_v29 = vpop.eup %2825  ;;  %v1473_v33 = vmul.f32 %v2664_v55, %v3639_v21  ;;  %v1545_v36 = vmul.f32 %v3636_v15, %v2663_v23  ;;  %v2659_v53 = vld [vmem:[%s4613_s2 + $0xc8] sm:$0xff] }
 0x310   : > { %1385 = vmatpush.msrb.mxu2 %v1351_v24  ;;  %1435 = vmatpush.msrb.mxu3 %v1424_v13  ;;  %v3671_v39 = vmul.f32 %v3656_v20, %v969_v41  ;;  %v1422_v51 = vmul.f32 %v3656_v20, %v2646_v56  ;;  %v3683_v28 = vpop.eup %2827  ;;  %v1544_v57 = vmul.f32 %v3656_v20, %v2662_v46 }
 0x311   : > { %1507 = vmatpush.msra.mxu0 %v1474_v8  ;;  %1557 = vmatpush.msra.mxu1 %v1546_v14  ;;  %v1349_v1 = vmul.f32 %v2647_v62, %v3661_v37  ;;  %v1472_v45 = vmul.f32 %v2663_v23, %v3661_v37  ;;  %v1421_v40 = vmul.f32 %v3666_v29, %v2645_v49  ;;  %v3717_v62 = vpop.eup %2829 }
 0x312   : > { %1386 = vmatpush.msrb.mxu2 %v1350_v26  ;;  %1436 = vmatpush.msrb.mxu3 %v1423_v27  ;;  %v1348_v4 = vmul.f32 %v2646_v56, %v3671_v39  ;;  %v3695_v47 = vmul.f32 %v3666_v29, %v966_v52  ;;  %v1471_v30 = vmul.f32 %v2662_v46, %v3671_v39  ;;  %v2938_v27 = vmov 0.0  }
 0x313   : > { %1508 = vmatpush.msra.mxu0 %v1473_v33  ;;  %1558 = vmatpush.msra.mxu1 %v1545_v36  ;;  %v1543_v60 = vmul.f32 %v3666_v29, %v2661_v2  ;;  %v3703_v38 = vmul.f32 %v3683_v28, %v963_v50  ;;  %v1420_v5 = vmul.f32 %v3683_v28, %v2644_v3  ;;  %v1320_v46 = vsel %vm1312_vm11, 1.0, %v2938_v27 }
 0x314   : > { %1387 = vmatpush.msrb.mxu2 %v1349_v1  ;;  %1437 = vmatpush.msrb.mxu3 %v1422_v51  ;;  %v1347_v58 = vmul.f32 %v2645_v49, %v3695_v47  ;;  %v960_v16 = vadd.f32 %v3585_v31, %v3583_v12  ;;  %v1470_v19 = vmul.f32 %v2661_v2, %v3695_v47  ;;  %v2642_v12 = vld [vmem:[%s4613_s2 + $0x40] sm:$0xff]  ;;  %v3727_v31 = vpop.eup %2831  ;;  %v665_v36 = vadd.s32 8, %v3347_v25 }
 0x315   : > { %1509 = vmatpush.msra.mxu0 %v1472_v45  ;;  %1559 = vmatpush.msra.mxu1 %v1544_v57  ;;  %v1542_v55 = vmul.f32 %v3683_v28, %v2660_v34  ;;  %v957_v24 = vadd.f32 %v3581_v11, %v3579_v42  ;;  %v1346_v13 = vmul.f32 %v2644_v3, %v3703_v38  ;;  %v2658_v11 = vld [vmem:[%s4613_s2 + $0xc0] sm:$0xff]  ;;  %v1336_v52 = vsel %vm1328_vm15, 1.0, %v2938_v27 }
 0x316   : > { %1388 = vmatpush.msrb.mxu2 %v1348_v4  ;;  %1438 = vmatpush.msrb.mxu3 %v1421_v40  ;;  %v1419_v8 = vmul.f32 %v3717_v62, %v2643_v61  ;;  %v1469_v23 = vmul.f32 %v2660_v34, %v3703_v38  ;;  %v3732_v42 = vmul.f32 %v3717_v62, %v960_v16  ;;  %v666_v51 = vadd.s32 16, %v3347_v25  ;;  %v3781_v3 = vld [vmem:[%s4612_s1 + $0x6] ss:$0 sm:$0xff] }
 0x317   : > { %1510 = vmatpush.msra.mxu0 %v1471_v30  ;;  %1560 = vmatpush.msra.mxu1 %v1543_v60  ;;  %v1541_v48 = vmul.f32 %v3717_v62, %v2659_v53  ;;  %v3739_v41 = vmul.f32 %v3727_v31, %v957_v24  ;;  %v1418_v56 = vmul.f32 %v3727_v31, %v2642_v12  ;;  %v667_v45 = vadd.s32 24, %v3347_v25  ;;  %v1007_v24 = vpop.f32.mrf.mxu0 }
 0x318   : > { %1389 = vmatpush.msrb.mxu2 %v1347_v58  ;;  %1439 = vmatpush.msrb.mxu3 %v1420_v5  ;;  %v1345_v14 = vmul.f32 %v2643_v61, %v3732_v42  ;;  %v1468_v44 = vmul.f32 %v2659_v53, %v3732_v42  ;;  %v1540_v26 = vmul.f32 %v3727_v31, %v2658_v11  ;;  %v668_v34 = vadd.s32 32, %v3347_v25  ;;  %v1048_v53 = vpop.f32.mrf.mxu1 }
 0x319   : > { %1511 = vmatpush.msra.mxu0 %v1470_v19  ;;  %1561 = vmatpush.msra.mxu1 %v1542_v55  ;;  %v1344_v33 = vmul.f32 %v2642_v12, %v3739_v41  ;;  %v1467_v49 = vmul.f32 %v2658_v11, %v3739_v41  ;;  %vm1313_vm2 = vcmp.lt.s32.totalorder %v3354_v17, %v665_v36  ;;  %v670_v61 = vadd.s32 48, %v3347_v25 }
 0x31a   : > { %1390 = vmatpush.msrb.mxu2 %v1346_v13  ;;  %1440 = vmatpush.msrb.mxu3 %v1419_v8  ;;  %vm1329_vm3 = vcmp.gt.s32.totalorder %v3354_v17, %v665_v36  ;;  %v1321_v1 = vsel %vm1313_vm2, 1.0, %v2938_v27  ;;  %vm1314_vm4 = vcmp.lt.s32.totalorder %v3354_v17, %v666_v51  ;;  %vm1330_vm5 = vcmp.gt.s32.totalorder %v3354_v17, %v666_v51 }
 0x31b   : > { %1512 = vmatpush.msra.mxu0 %v1469_v23  ;;  %1562 = vmatpush.msra.mxu1 %v1541_v48  ;;  %v1337_v2 = vsel %vm1329_vm3, 1.0, %v2938_v27  ;;  %v1322_v50 = vsel %vm1314_vm4, 1.0, %v2938_v27  ;;  %v1338_v57 = vsel %vm1330_vm5, 1.0, %v2938_v27  ;;  %vm1315_vm6 = vcmp.lt.s32.totalorder %v3354_v17, %v667_v45 }
 0x31c   : > { %1391 = vmatpush.msrb.mxu2 %v1345_v14  ;;  %1441 = vmatpush.msrb.mxu3 %v1418_v56  ;;  %vm1331_vm7 = vcmp.gt.s32.totalorder %v3354_v17, %v667_v45  ;;  %v1323_v4 = vsel %vm1315_vm6, 1.0, %v2938_v27  ;;  %v3787_v40 = vmul.f32 %v3781_v3, %v3629_v10  ;;  %vm1316_vm8 = vcmp.lt.s32.totalorder %v3354_v17, %v668_v34 }
 0x31d   : > { %1513 = vmatpush.msra.mxu0 %v1468_v44  ;;  %1563 = vmatpush.msra.mxu1 %v1540_v26  ;;  %v1339_v30 = vsel %vm1331_vm7, 1.0, %v2938_v27  ;;  %vm1332_vm11 = vcmp.gt.s32.totalorder %v3354_v17, %v668_v34  ;;  %v1324_v60 = vsel %vm1316_vm8, 1.0, %v2938_v27  ;;  %v669_v10 = vadd.s32 40, %v3347_v25  ;;  %v2700_v34 = vld [vmem:[%s4614_s3 + $0xd0] sm:$0xff]  ;;  %v2192_v25 = vld [vmem:[%s4616_s5 + $0x78] sm:$0xff] }
 0x31e   : > { %2674 = vmatmul.msk.f32.vlgmr.msrb.gmra.mxu3 %vm1352_vm1, %v1320_v46  ;;  %1392 = vmatpush.msrb.mxu2 %v1344_v33  ;;  %v1340_v58 = vsel %vm1332_vm11, 1.0, %v2938_v27  ;;  %vm1318_vm3 = vcmp.lt.s32.totalorder %v3354_v17, %v670_v61  ;;  %vm1334_vm4 = vcmp.gt.s32.totalorder %v3354_v17, %v670_v61  ;;  %vm1319_vm5 = vcmp.lt.s32.totalorder %v3354_v17, %v3535_v18 }
 0x31f   : > { %1514 = vmatpush.msra.mxu0 %v1467_v49  ;;  %2666 = vmatmul.msk.f32.vlgmr.msrb.gmra.mxu2 %vm1352_vm1, %v1320_v46  ;;  %vm1317_vm15 = vcmp.lt.s32.totalorder %v3354_v17, %v669_v10  ;;  %vm1333_vm2 = vcmp.gt.s32.totalorder %v3354_v17, %v669_v10  ;;  %v1326_v19 = vsel %vm1318_vm3, 1.0, %v2938_v27  ;;  %v1342_v55 = vsel %vm1334_vm4, 1.0, %v2938_v27  ;;  %v1010_v23 = vpop.f32.mrf.mxu0 }
 0x320   : > { %2690 = vmatmul.msk.f32.vlgmr.msra.gmra.mxu1 %vm1352_vm1, %v1336_v52  ;;  %2682 = vmatmul.msk.f32.vlgmr.msra.gmra.mxu0 %vm1352_vm1, %v1336_v52  ;;  %v1325_v5 = vsel %vm1317_vm15, 1.0, %v2938_v27  ;;  %v1341_v16 = vsel %vm1333_vm2, 1.0, %v2938_v27  ;;  %vm1335_vm6 = vcmp.gt.s32.totalorder %v3354_v17, %v3535_v18  ;;  %v1327_v13 = vsel %vm1319_vm5, 1.0, %v2938_v27  ;;  %v1051_v8 = vpop.f32.mrf.mxu1  ;;  %v2191_v18 = vld [vmem:[%s4616_s5 + $0x70] sm:$0xff]  ;;  %v2190_v17 = vld [vmem:[%s4616_s5 + $0x68] sm:$0xff] }
 0x321   : > { %v1343_v12 = vsel %vm1335_vm6, 1.0, %v2938_v27  ;;  %v1049_v46 = vadd.f32 %v1048_v53, %v1007_v24  ;;  %v1052_v49 = vadd.f32 %v1051_v8, %v1010_v23  ;;  %2193 = vmatpush.msrb.mxu1 %v2192_v25 }
 0x323   : > { %v2634_v27 = vmul.f32 -1.442695, %v1049_v46  ;;  %v2635_v52 = vmul.f32 -1.442695, %v1052_v49  ;;  %2194 = vmatpush.msrb.mxu1 %v2191_v18 }
 0x325   : > { %2833 = vpow2.f32 %v2634_v27  ;;  %2195 = vmatpush.msrb.mxu1 %v2190_v17 }
 0x326   : > { %2675 = vmatmul.msk.f32.gmra.mxu3 %vm1352_vm1, %v1321_v1  ;;  %2835 = vpow2.f32 %v2635_v52 }
 0x327   : > { %2667 = vmatmul.msk.f32.gmra.mxu2 %vm1352_vm1, %v1321_v1  ;;  %v1013_v48 = vpop.f32.mrf.mxu0 }
 0x328   : > { %2691 = vmatmul.msk.f32.gmra.mxu1 %vm1352_vm1, %v1337_v2  ;;  %2683 = vmatmul.msk.f32.gmra.mxu0 %vm1352_vm1, %v1337_v2  ;;  %v1054_v11 = vpop.f32.mrf.mxu1 }
 0x32b   : > { %v2834_v2 = vpop.eup %2833 }
 0x32c   : > { %v3835_v45 = vadd.f32 1.0, %v2834_v2 }
 0x32e   : > { %2676 = vmatmul.msk.f32.gmra.mxu3 %vm1352_vm1, %v1322_v50  ;;  %2837 = vrcp.f32 %v3835_v45  ;;  %vm1109_vm7 = vweird.f32 %v3835_v45 }
 0x32f   : > { %2668 = vmatmul.msk.f32.gmra.mxu2 %vm1352_vm1, %v1322_v50  ;;  %v1016_v56 = vpop.f32.mrf.mxu0  ;;  %v1055_v50 = vadd.f32 %v1054_v11, %v1013_v48  ;;  %v1224_v48 = vld [vmem:[%s4613_s2] sm:$0xff] }
 0x330   : > { %2692 = vmatmul.msk.f32.gmra.mxu1 %vm1352_vm1, %v1338_v57  ;;  %2684 = vmatmul.msk.f32.gmra.mxu0 %vm1352_vm1, %v1338_v57  ;;  %v1057_v14 = vpop.f32.mrf.mxu1 }
 0x331   : > { %v2636_v57 = vmul.f32 -1.442695, %v1055_v50  ;;  %v1654_v50 = vmul.f32 %v3727_v31, %v3781_v3  ;;  %v1115_v31 = vand.u32 2147483648, %v3835_v45 }
 0x333   : > { %2839 = vpow2.f32 %v2636_v57 }
 0x336   : > { %2677 = vmatmul.msk.f32.gmra.mxu3 %vm1352_vm1, %v1323_v4 }
 0x337   : > { %2669 = vmatmul.msk.f32.gmra.mxu2 %vm1352_vm1, %v1323_v4  ;;  %v1019_v26 = vpop.f32.mrf.mxu0  ;;  %v2701_v4 = vld [vmem:[%s4614_s3 + $0xd8] sm:$0xff] }
 0x338   : > { %2693 = vmatmul.msk.f32.gmra.mxu1 %vm1352_vm1, %v1339_v30  ;;  %2685 = vmatmul.msk.f32.gmra.mxu0 %vm1352_vm1, %v1339_v30  ;;  %v1060_v44 = vpop.f32.mrf.mxu1  ;;  %v2699_v30 = vld [vmem:[%s4614_s3 + $0xc8] sm:$0xff] }
 0x339   : > { %1735 = vmatpush.msra.mxu2 %v2701_v4 }
 0x33b   : > { %1736 = vmatpush.msra.mxu2 %v2700_v34 }
 0x33d   : > { %1737 = vmatpush.msra.mxu2 %v2699_v30 }
 0x33e   : > { %2678 = vmatmul.msk.f32.gmra.mxu3 %vm1352_vm1, %v1324_v60 }
 0x33f   : > { %2670 = vmatmul.msk.f32.gmra.mxu2 %vm1352_vm1, %v1324_v60  ;;  %v1022_v36 = vpop.f32.mrf.mxu0  ;;  %v2836_v60 = vpop.eup %2835 }
 0x340   : > { %2694 = vmatmul.msk.f32.gmra.mxu1 %vm1352_vm1, %v1340_v58  ;;  %2686 = vmatmul.msk.f32.gmra.mxu0 %vm1352_vm1, %v1340_v58  ;;  %v1063_v33 = vpop.f32.mrf.mxu1  ;;  %v3851_v61 = vadd.f32 1.0, %v2836_v60  ;;  %v2651_v60 = vld [vmem:[%s4613_s2 + $0x88] sm:$0xff] }
 0x342   : > { %2841 = vrcp.f32 %v3851_v61  ;;  %vm1124_vm2 = vweird.f32 %v3851_v61 }
 0x346   : > { %2679 = vmatmul.msk.f32.gmra.mxu3 %vm1352_vm1, %v1325_v5 }
 0x347   : > { %2671 = vmatmul.msk.f32.gmra.mxu2 %vm1352_vm1, %v1325_v5  ;;  %v3833_v51 = vpop.f32.mrf.mxu0  ;;  %v1058_v5 = vadd.f32 %v1057_v14, %v1016_v56 }
 0x348   : > { %2695 = vmatmul.msk.f32.gmra.mxu1 %vm1352_vm1, %v1341_v16  ;;  %2687 = vmatmul.msk.f32.gmra.mxu0 %vm1352_vm1, %v1341_v16  ;;  %v3831_v1 = vpop.f32.mrf.mxu1  ;;  %v2698_v16 = vld [vmem:[%s4614_s3 + $0xc0] sm:$0xff] }
 0x349   : > { %1738 = vmatpush.msra.mxu2 %v2698_v16 }
 0x34e   : > { %2680 = vmatmul.msk.f32.gmra.mxu3 %vm1352_vm1, %v1326_v19 }
 0x34f   : > { %2672 = vmatmul.msk.f32.gmra.mxu2 %vm1352_vm1, %v1326_v19  ;;  %v3849_v58 = vpop.f32.mrf.mxu0  ;;  %v3856_v19 = vpop.eup %2837 }
 0x350   : > { %2696 = vmatmul.msk.f32.gmra.mxu1 %vm1352_vm1, %v1342_v55  ;;  %2688 = vmatmul.msk.f32.gmra.mxu0 %vm1352_vm1, %v1342_v55  ;;  %v3847_v10 = vpop.f32.mrf.mxu1  ;;  %v2637_v55 = vmul.f32 -1.442695, %v1058_v5  ;;  %v2840_v53 = vpop.eup %2839  ;;  %v1105_v24 = vmul.f32 %v3856_v19, %v3835_v45 }
 0x351   : > { %v3864_v11 = vadd.f32 1.0, %v2840_v53  ;;  %v3869_v49 = vpop.eup %2841 }
 0x352   : > { %2843 = vpow2.f32 %v2637_v55  ;;  %v1106_v14 = vsub.f32 1.0, %v1105_v24  ;;  %v1120_v4 = vmul.f32 %v3869_v49, %v3851_v61  ;;  %v1064_v55 = vadd.f32 %v1063_v33, %v1022_v36 }
 0x353   : > { %2845 = vrcp.f32 %v3864_v11  ;;  %vm1125_vm15 = vweird.f32 %v3869_v49  ;;  %vm1139_vm6 = vweird.f32 %v3864_v11 }
 0x354   : > { %v1107_v57 = vmul.f32 %v3856_v19, %v1106_v14  ;;  %v1121_v33 = vsub.f32 1.0, %v1120_v4  ;;  %v2639_v36 = vmul.f32 -1.442695, %v1064_v55  ;;  %vm3932_vm3 = vmor %vm1124_vm2, %vm1125_vm15 }
 0x356   : > { %2681 = vmatmul.msk.f32.gmra.mxu3 %vm1352_vm1, %v1327_v13 }
 0x357   : > { %2673 = vmatmul.msk.f32.gmra.mxu2 %vm1352_vm1, %v1327_v13  ;;  %v1061_v13 = vadd.f32 %v1060_v44, %v1019_v26 }
 0x358   : > { %2697 = vmatmul.msk.f32.gmra.mxu1 %vm1352_vm1, %v1343_v12  ;;  %2689 = vmatmul.msk.f32.gmra.mxu0 %vm1352_vm1, %v1343_v12  ;;  %v2650_v12 = vld [vmem:[%s4613_s2 + $0x80] sm:$0xff]  ;;  %v2844_v52 = vpop.eup %2843  ;;  %vm1110_vm1 = vweird.f32 %v3856_v19 }
 0x359   : > { %v2638_v46 = vmul.f32 -1.442695, %v1061_v13  ;;  %v3880_v24 = vadd.f32 1.0, %v2844_v52  ;;  %v1225_v13 = vld [vmem:[%s4613_s2 + $0x8] sm:$0xff]  ;;  %vm3895_vm8 = vmor %vm1109_vm7, %vm1110_vm1  ;;  %v1130_v52 = vand.u32 2147483648, %v3851_v61 }
 0x35b   : > { %2847 = vpow2.f32 %v2638_v46 }
 0x39d   : > { %v1565_v8 = vpop.f32.mrf.mxu1  ;;  %v1516_v23 = vpop.f32.mrf.mxu0 }
 0x39e   : > { %v1638_v56 = vmul.f32 %v2650_v12, %v1565_v8  ;;  %v1597_v30 = vmul.f32 %v2650_v12, %v1516_v23  ;;  %v3886_v8 = vpop.eup %2845  ;;  %v1108_v12 = vadd.f32 %v3856_v19, %v1107_v57  ;;  %v1067_v57 = vadd.f32 %v3831_v1, %v3833_v51 }
 0x39f   : > { %vm1140_vm5 = vweird.f32 %v3886_v8 }
 0x3a0   : > { %vm3965_vm1 = vmor %vm1139_vm6, %vm1140_vm5 }
 0x3a1   : > { %v1443_v27 = vpop.f32.mrf.mxu3 }
 0x3a2   : > { %v1630_v44 = vmul.f32 %v1443_v27, %v1224_v48  ;;  %v1394_v26 = vpop.f32.mrf.mxu2 }
 0x3a3   : > { %v1589_v34 = vmul.f32 %v1394_v26, %v1224_v48  ;;  %v1135_v26 = vmul.f32 %v3886_v8, %v3864_v11 }
 0x3a4   : > { %v1646_v2 = vadd.f32 %v1638_v56, %v1630_v44  ;;  %v1113_v56 = vand.u32 2147483647, %v3835_v45  ;;  %v2848_v44 = vpop.eup %2847  ;;  %v1112_v45 = vsel %vm3895_vm8, %v3856_v19, %v1108_v12 }
 0x3a5   : > { %v1568_v5 = vpop.f32.mrf.mxu1  ;;  %v1519_v16 = vpop.f32.mrf.mxu0  ;;  %v1605_v48 = vadd.f32 %v1597_v30, %v1589_v34  ;;  %v1655_v34 = vmul.f32 %v3717_v62, %v3781_v3  ;;  %v3912_v51 = vadd.f32 1.0, %v2848_v44  ;;  %v1226_v62 = vld [vmem:[%s4613_s2 + $0x10] sm:$0xff] }
 0x3a6   : > { %v1662_v53 = vadd.f32 %v1654_v50, %v1646_v2  ;;  %v1639_v23 = vmul.f32 %v2651_v60, %v1568_v5  ;;  %v1116_v2 = vor.u32 1.1754944e-38, %v1115_v31  ;;  %v1614_v50 = vmul.f32 %v3781_v3, %v3739_v41 }
 0x3a7   : > { %v1598_v55 = vmul.f32 %v2651_v60, %v1519_v16  ;;  %vm1114_vm11 = vcmp.eq.f32.partialorder %v1113_v56, 8.507059e+37  ;;  %v2640_v60 = vmul.f32 -1.442695, %v1067_v57 }
 0x3a8   : > { %2849 = vrcp.f32 %v1662_v53  ;;  %v1622_v30 = vadd.f32 %v1614_v50, %v1605_v48  ;;  %v2652_v53 = vld [vmem:[%s4613_s2 + $0x90] sm:$0xff]  ;;  %v1117_v12 = vsel %vm1114_vm11, %v1116_v2, %v1112_v45  ;;  %v1615_v2 = vmul.f32 %v3781_v3, %v3732_v42 }
 0x3a9   : > { %v1446_v14 = vpop.f32.mrf.mxu3  ;;  %2851 = vrcp.f32 %v3880_v24  ;;  %v1128_v50 = vand.u32 2147483647, %v3851_v61  ;;  %vm1154_vm11 = vweird.f32 %v3880_v24 }
 0x3aa   : > { %v1631_v46 = vmul.f32 %v1446_v14, %v1225_v13  ;;  %v1397_v27 = vpop.f32.mrf.mxu2  ;;  %v1122_v14 = vmul.f32 %v3869_v49, %v1121_v33  ;;  %2853 = vpow2.f32 %v2639_v36 }
 0x3ab   : > { %v1590_v5 = vmul.f32 %v1397_v27, %v1225_v13  ;;  %v1136_v13 = vsub.f32 1.0, %v1135_v26  ;;  %v1656_v26 = vmul.f32 %v3683_v28, %v3781_v3  ;;  %vm1129_vm4 = vcmp.eq.f32.partialorder %v1128_v50, 8.507059e+37 }
 0x3ac   : > { %v1647_v4 = vadd.f32 %v1639_v23, %v1631_v46  ;;  %v1123_v44 = vadd.f32 %v3869_v49, %v1122_v14 }
 0x3ad   : > { %v1571_v31 = vpop.f32.mrf.mxu1  ;;  %v1522_v41 = vpop.f32.mrf.mxu0  ;;  %v1606_v33 = vadd.f32 %v1598_v55, %v1590_v5  ;;  %v1137_v42 = vmul.f32 %v3886_v8, %v1136_v13  ;;  %v2653_v55 = vld [vmem:[%s4613_s2 + $0x98] sm:$0xff] }
 0x3ae   : > { %v2850_v1 = vpop.eup %2849  ;;  %v1663_v19 = vadd.f32 %v1655_v34, %v1647_v4  ;;  %v1640_v16 = vmul.f32 %v2652_v53, %v1571_v31  ;;  %v1599_v5 = vmul.f32 %v2652_v53, %v1522_v41  ;;  %v1127_v14 = vsel %vm3932_vm3, %v3869_v49, %v1123_v44  ;;  %v1227_v53 = vld [vmem:[%s4613_s2 + $0x18] sm:$0xff] }
 0x3af   : > { %v1678_v23 = vmul.f32 %v2850_v1, %v1622_v30  ;;  %v3917_v48 = vpop.eup %2851  ;;  %v1623_v30 = vadd.f32 %v1615_v2, %v1606_v33  ;;  %v1138_v44 = vadd.f32 %v3886_v8, %v1137_v42  ;;  %v1145_v2 = vand.u32 2147483648, %v3864_v11 }
 0x3b0   : > { %2855 = vrcp.f32 %v1663_v19  ;;  %v2854_v57 = vpop.eup %2853  ;;  %v1150_v45 = vmul.f32 %v3917_v48, %v3880_v24  ;;  %vm1155_vm8 = vweird.f32 %v3917_v48 }
 0x3b1   : > { %v1686_v46 = vmul.f32 %v1678_v23, %v1117_v12  ;;  %v1449_v27 = vpop.f32.mrf.mxu3  ;;  %2857 = vrcp.f32 %v3912_v51  ;;  %v1131_v12 = vor.u32 1.1754944e-38, %v1130_v52  ;;  %v3943_v23 = vadd.f32 1.0, %v2854_v57  ;;  %vm3994_vm15 = vmor %vm1154_vm11, %vm1155_vm8 }
 0x3b2   : > { %v1632_v36 = vmul.f32 %v1449_v27, %v1226_v62  ;;  %v1400_v56 = vpop.f32.mrf.mxu2  ;;  %2859 = vpow2.f32 %v2640_v60  ;;  %v1070_v60 = vadd.f32 %v3847_v10, %v3849_v58  ;;  %v1151_v49 = vsub.f32 1.0, %v1150_v45 }
 0x3b3   : > { %2702 = vmatmul.msk.f32.vlgmr.msra.gmra.mxu2 %vm267_vm0, %v1686_v46  ;;  %v1591_v28 = vmul.f32 %v1400_v56, %v1226_v62  ;;  %v1132_v13 = vsel %vm1129_vm4, %v1131_v12, %v1127_v14  ;;  %v1616_v58 = vmul.f32 %v3781_v3, %v3703_v38  ;;  %v1143_v52 = vand.u32 2147483647, %v3864_v11 }
 0x3b4   : > { %v1648_v4 = vadd.f32 %v1640_v16, %v1632_v36  ;;  %v2641_v50 = vmul.f32 -1.442695, %v1070_v60  ;;  %v1657_v38 = vmul.f32 %v3666_v29, %v3781_v3  ;;  %v1142_v11 = vsel %vm3965_vm1, %v3886_v8, %v1138_v44 }
 0x3b5   : > { %v1574_v61 = vpop.f32.mrf.mxu1  ;;  %v1525_v31 = vpop.f32.mrf.mxu0  ;;  %v1607_v46 = vadd.f32 %v1599_v5, %v1591_v28  ;;  %v2654_v28 = vld [vmem:[%s4613_s2 + $0xa0] sm:$0xff]  ;;  %vm1144_vm7 = vcmp.eq.f32.partialorder %v1143_v52, 8.507059e+37  ;;  %v1158_v44 = vand.u32 2147483647, %v3880_v24  ;;  %vm1169_vm4 = vweird.f32 %v3912_v51 }
 0x3b6   : > { %v2856_v1 = vpop.eup %2855  ;;  %v1664_v19 = vadd.f32 %v1656_v26, %v1648_v4  ;;  %v1641_v16 = vmul.f32 %v2653_v55, %v1574_v61  ;;  %v1152_v4 = vmul.f32 %v3917_v48, %v1151_v49 }
 0x3b7   : > { %v1679_v41 = vmul.f32 %v2856_v1, %v1623_v30  ;;  %v3950_v62 = vpop.eup %2857  ;;  %v1624_v34 = vadd.f32 %v1616_v58, %v1607_v46  ;;  %v1600_v30 = vmul.f32 %v2653_v55, %v1525_v31  ;;  %v1228_v55 = vld [vmem:[%s4613_s2 + $0x20] sm:$0xff]  ;;  %v1160_v46 = vand.u32 2147483648, %v3880_v24 }
 0x3b8   : > { %2861 = vrcp.f32 %v1664_v19  ;;  %v2860_v10 = vpop.eup %2859  ;;  %v1165_v26 = vmul.f32 %v3950_v62, %v3912_v51  ;;  %v1146_v19 = vor.u32 1.1754944e-38, %v1145_v2  ;;  %v1153_v8 = vadd.f32 %v3917_v48, %v1152_v4 }
 0x3b9   : > { %v1452_v33 = vpop.f32.mrf.mxu3  ;;  %v1687_v27 = vmul.f32 %v1679_v41, %v1132_v13  ;;  %2863 = vrcp.f32 %v3943_v23  ;;  %v3976_v14 = vadd.f32 1.0, %v2860_v10  ;;  %v1617_v10 = vmul.f32 %v3781_v3, %v3695_v47 }
 0x3ba   : > { %v1633_v36 = vmul.f32 %v1452_v33, %v1227_v53  ;;  %v1403_v56 = vpop.f32.mrf.mxu2  ;;  %2865 = vpow2.f32 %v2641_v50  ;;  %v1166_v12 = vsub.f32 1.0, %v1165_v26  ;;  %v1658_v24 = vmul.f32 %v3656_v20, %v3781_v3  ;;  %v1229_v20 = vld [vmem:[%s4613_s2 + $0x28] sm:$0xff] }
 0x3bb   : > { %2703 = vmatmul.msk.f32.gmra.mxu2 %vm267_vm0, %v1687_v27  ;;  %v1592_v42 = vmul.f32 %v1403_v56, %v1227_v53  ;;  %v1147_v53 = vsel %vm1144_vm7, %v1146_v19, %v1142_v11  ;;  %v1157_v47 = vsel %vm3994_vm15, %v3917_v48, %v1153_v8  ;;  %v1161_v4 = vor.u32 1.1754944e-38, %v1160_v46 }
 0x3bc   : > { %v1649_v57 = vadd.f32 %v1641_v16, %v1633_v36  ;;  %v1167_v36 = vmul.f32 %v3950_v62, %v1166_v12  ;;  %vm1159_vm2 = vcmp.eq.f32.partialorder %v1158_v44, 8.507059e+37  ;;  %vm1170_vm3 = vweird.f32 %v3950_v62 }
 0x3bd   : > { %v1577_v5 = vpop.f32.mrf.mxu1  ;;  %v1528_v61 = vpop.f32.mrf.mxu0  ;;  %v1608_v16 = vadd.f32 %v1600_v30, %v1592_v42  ;;  %v1175_v12 = vand.u32 2147483648, %v3912_v51  ;;  %v1173_v8 = vand.u32 2147483647, %v3912_v51  ;;  %vm4030_vm5 = vmor %vm1169_vm4, %vm1170_vm3  ;;  %vm1184_vm7 = vweird.f32 %v3943_v23 }
 0x3be   : > { %v2862_v29 = vpop.eup %2861  ;;  %v1665_v1 = vadd.f32 %v1657_v38, %v1649_v57  ;;  %v1642_v60 = vmul.f32 %v2654_v28, %v1577_v5  ;;  %v1601_v57 = vmul.f32 %v2654_v28, %v1528_v61  ;;  %v2655_v38 = vld [vmem:[%s4613_s2 + $0xa8] sm:$0xff]  ;;  %v1162_v5 = vsel %vm1159_vm2, %v1161_v4, %v1157_v47 }
 0x3bf   : > { %v1680_v31 = vmul.f32 %v2862_v29, %v1624_v34  ;;  %v3983_v41 = vpop.eup %2863  ;;  %v1625_v26 = vadd.f32 %v1617_v10, %v1608_v16  ;;  %v1168_v11 = vadd.f32 %v3950_v62, %v1167_v36  ;;  %v2656_v10 = vld [vmem:[%s4613_s2 + $0xb0] sm:$0xff]  ;;  %v1176_v36 = vor.u32 1.1754944e-38, %v1175_v12 }
 0x3c0   : > { %2867 = vrcp.f32 %v1665_v1  ;;  %v1180_v56 = vmul.f32 %v3983_v41, %v3943_v23  ;;  %v2866_v2 = vpop.eup %2865  ;;  %vm1174_vm6 = vcmp.eq.f32.partialorder %v1173_v8, 8.507059e+37  ;;  %vm1185_vm1 = vweird.f32 %v3983_v41 }
 0x3c1   : > { %v1455_v13 = vpop.f32.mrf.mxu3  ;;  %v1688_v49 = vmul.f32 %v1680_v31, %v1147_v53  ;;  %2869 = vrcp.f32 %v3976_v14  ;;  %v4016_v61 = vadd.f32 1.0, %v2866_v2  ;;  %vm4056_vm8 = vmor %vm1184_vm7, %vm1185_vm1  ;;  %vm1199_vm2 = vweird.f32 %v3976_v14 }
 0x3c2   : > { %v1634_v33 = vmul.f32 %v1455_v13, %v1228_v55  ;;  %v1406_v27 = vpop.f32.mrf.mxu2  ;;  %v1181_v1 = vsub.f32 1.0, %v1180_v56  ;;  %v1618_v13 = vmul.f32 %v3781_v3, %v3671_v39 }
 0x3c3   : > { %2704 = vmatmul.msk.f32.gmra.mxu2 %vm267_vm0, %v1688_v49  ;;  %v1593_v50 = vmul.f32 %v1406_v27, %v1228_v55  ;;  %v1659_v49 = vmul.f32 %v3636_v15, %v3781_v3 }
 0x3c4   : > { %v1650_v52 = vadd.f32 %v1642_v60, %v1634_v33  ;;  %v1172_v33 = vsel %vm4030_vm5, %v3950_v62, %v1168_v11  ;;  %v1182_v39 = vmul.f32 %v3983_v41, %v1181_v1  ;;  %v1188_v11 = vand.u32 2147483647, %v3943_v23 }
 0x3c5   : > { %v1580_v45 = vpop.f32.mrf.mxu1  ;;  %v1531_v30 = vpop.f32.mrf.mxu0  ;;  %v1609_v19 = vadd.f32 %v1601_v57, %v1593_v50  ;;  %v1177_v47 = vsel %vm1174_vm6, %v1176_v36, %v1172_v33  ;;  %v1660_v1 = vmul.f32 %v3626_v9, %v3781_v3  ;;  %v1205_v36 = vand.u32 2147483648, %v3976_v14 }
 0x3c6   : > { %v2868_v34 = vpop.eup %2867  ;;  %v1666_v42 = vadd.f32 %v1658_v24, %v1650_v52  ;;  %v1643_v29 = vmul.f32 %v2655_v38, %v1580_v45  ;;  %v1602_v15 = vmul.f32 %v2655_v38, %v1531_v30  ;;  %v1230_v24 = vld [vmem:[%s4613_s2 + $0x30] sm:$0xff]  ;;  %v1183_v50 = vadd.f32 %v3983_v41, %v1182_v39 }
 0x3c7   : > { %v1681_v48 = vmul.f32 %v2868_v34, %v1625_v26  ;;  %v4014_v28 = vpop.eup %2869  ;;  %v1626_v27 = vadd.f32 %v1618_v13, %v1609_v19  ;;  %vm1189_vm11 = vcmp.eq.f32.partialorder %v1188_v11, 8.507059e+37  ;;  %vm1214_vm6 = vweird.f32 %v4016_v61 }
 0x3c8   : > { %2871 = vrcp.f32 %v1666_v42  ;;  %v1195_v16 = vmul.f32 %v4014_v28, %v3976_v14  ;;  %v1187_v19 = vsel %vm4056_vm8, %v3983_v41, %v1183_v50  ;;  %v1231_v41 = vld [vmem:[%s4613_s2 + $0x38] sm:$0xff]  ;;  %vm1200_vm15 = vweird.f32 %v4014_v28 }
 0x3c9   : > { %v1458_v55 = vpop.f32.mrf.mxu3  ;;  %v1689_v31 = vmul.f32 %v1681_v48, %v1162_v5  ;;  %2873 = vrcp.f32 %v4016_v61  ;;  %v1619_v5 = vmul.f32 %v3781_v3, %v3661_v37  ;;  %vm4084_vm3 = vmor %vm1199_vm2, %vm1200_vm15 }
 0x3ca   : > { %v1635_v60 = vmul.f32 %v1458_v55, %v1229_v20  ;;  %v1409_v53 = vpop.f32.mrf.mxu2  ;;  %v1196_v57 = vsub.f32 1.0, %v1195_v16 }
 0x3cb   : > { %2705 = vmatmul.msk.f32.gmra.mxu2 %vm267_vm0, %v1689_v31  ;;  %v1594_v44 = vmul.f32 %v1409_v53, %v1229_v20  ;;  %v1190_v20 = vand.u32 2147483648, %v3943_v23  ;;  %v2657_v23 = vld [vmem:[%s4613_s2 + $0xb8] sm:$0xff] }
 0x3cc   : > { %v1651_v51 = vadd.f32 %v1643_v29, %v1635_v60  ;;  %v1197_v37 = vmul.f32 %v4014_v28, %v1196_v57 }
 0x3cd   : > { %v1583_v58 = vpop.f32.mrf.mxu1  ;;  %v1534_v26 = vpop.f32.mrf.mxu0  ;;  %v1610_v38 = vadd.f32 %v1602_v15, %v1594_v44  ;;  %v1191_v9 = vor.u32 1.1754944e-38, %v1190_v20 }
 0x3ce   : > { %v2872_v56 = vpop.eup %2871  ;;  %v1667_v52 = vadd.f32 %v1659_v49, %v1651_v51  ;;  %v1644_v2 = vmul.f32 %v2656_v10, %v1583_v58  ;;  %v1603_v60 = vmul.f32 %v2656_v10, %v1534_v26  ;;  %v1198_v51 = vadd.f32 %v4014_v28, %v1197_v37 }
 0x3cf   : > { %v1682_v62 = vmul.f32 %v2872_v56, %v1626_v27  ;;  %v4047_v34 = vpop.eup %2873  ;;  %v1627_v31 = vadd.f32 %v1619_v5, %v1610_v38  ;;  %v1192_v46 = vsel %vm1189_vm11, %v1191_v9, %v1187_v19  ;;  %v1620_v56 = vmul.f32 %v3781_v3, %v3639_v21 }
 0x3d0   : > { %2875 = vrcp.f32 %v1667_v52  ;;  %v1210_v55 = vmul.f32 %v4047_v34, %v4016_v61  ;;  %vm1215_vm5 = vweird.f32 %v4047_v34 }
 0x3d1   : > { %v1461_v45 = vpop.f32.mrf.mxu3  ;;  %v1690_v4 = vmul.f32 %v1682_v62, %v1177_v47  ;;  %v1661_v62 = vmul.f32 %v3620_v0, %v3781_v3  ;;  %v1220_v3 = vand.u32 2147483648, %v4016_v61  ;;  %vm1216_vm1 = vmor %vm1214_vm6, %vm1215_vm5 }
 0x3d2   : > { %v1636_v42 = vmul.f32 %v1461_v45, %v1230_v24  ;;  %v1412_v30 = vpop.f32.mrf.mxu2  ;;  %v1211_v44 = vsub.f32 1.0, %v1210_v55 }
 0x3d3   : > { %2706 = vmatmul.msk.f32.gmra.mxu2 %vm267_vm0, %v1690_v4  ;;  %v1595_v12 = vmul.f32 %v1412_v30, %v1230_v24  ;;  %v1203_v24 = vand.u32 2147483647, %v3976_v14  ;;  %v1206_v4 = vor.u32 1.1754944e-38, %v1205_v36 }
 0x3d4   : > { %v1652_v29 = vadd.f32 %v1644_v2, %v1636_v42  ;;  %v1202_v2 = vsel %vm4084_vm3, %v4014_v28, %v1198_v51  ;;  %v1212_v57 = vmul.f32 %v4047_v34, %v1211_v44  ;;  %v1218_v28 = vand.u32 2147483647, %v4016_v61 }
 0x3d5   : > { %v1586_v53 = vpop.f32.mrf.mxu1  ;;  %v1611_v33 = vadd.f32 %v1603_v60, %v1595_v12  ;;  %v1537_v58 = vpop.f32.mrf.mxu0  ;;  %vm1204_vm4 = vcmp.eq.f32.partialorder %v1203_v24, 8.507059e+37 }
 0x3d6   : > { %v2876_v8 = vpop.eup %2875  ;;  %v1668_v16 = vadd.f32 %v1660_v1, %v1652_v29  ;;  %v1645_v49 = vmul.f32 %v2657_v23, %v1586_v53  ;;  %v1604_v50 = vmul.f32 %v2657_v23, %v1537_v58  ;;  %v1207_v14 = vsel %vm1204_vm4, %v1206_v4, %v1202_v2 }
 0x3d7   : > { %v1683_v13 = vmul.f32 %v2876_v8, %v1627_v31  ;;  %v1628_v26 = vadd.f32 %v1620_v56, %v1611_v33  ;;  %v1213_v0 = vadd.f32 %v4047_v34, %v1212_v57  ;;  %v1221_v29 = vor.u32 1.1754944e-38, %v1220_v3 }
 0x3d8   : > { %2877 = vrcp.f32 %v1668_v16  ;;  %vm1219_vm7 = vcmp.eq.f32.partialorder %v1218_v28, 8.507059e+37 }
 0x3d9   : > { %v1464_v39 = vpop.f32.mrf.mxu3  ;;  %v1691_v27 = vmul.f32 %v1683_v13, %v1192_v46  ;;  %v1217_v48 = vsel %vm1216_vm1, %v4047_v34, %v1213_v0 }
 0x3da   : > { %v1637_v15 = vmul.f32 %v1464_v39, %v1231_v41  ;;  %v1415_v10 = vpop.f32.mrf.mxu2  ;;  %v1222_v19 = vsel %vm1219_vm7, %v1221_v29, %v1217_v48 }
 0x3db   : > { %2707 = vmatmul.msk.f32.gmra.mxu2 %vm267_vm0, %v1691_v27  ;;  %v1596_v21 = vmul.f32 %v1415_v10, %v1231_v41 }
 0x3dc   : > { %v1653_v47 = vadd.f32 %v1645_v49, %v1637_v15 }
 0x3dd   : > { %v1612_v30 = vadd.f32 %v1604_v50, %v1596_v21 }
 0x3de   : > { %v2878_v38 = vpop.eup %2877  ;;  %v1669_v45 = vadd.f32 %v1661_v62, %v1653_v47 }
 0x3df   : > { %v1684_v42 = vmul.f32 %v2878_v38, %v1628_v26  ;;  %v1629_v5 = vadd.f32 %v3787_v40, %v1612_v30 }
 0x3e0   : > { %2879 = vrcp.f32 %v1669_v45 }
 0x3e1   : > { %v1692_v20 = vmul.f32 %v1684_v42, %v1207_v14 }
 0x3e3   : > { %2708 = vmatmul.msk.f32.gmra.mxu2 %vm267_vm0, %v1692_v20 }
 0x3e6   : > { %v2880_v11 = vpop.eup %2879 }
 0x3e7   : > { %v1685_v1 = vmul.f32 %v2880_v11, %v1629_v5 }
 0x3e9   : > { %v1693_v37 = vmul.f32 %v1685_v1, %v1222_v19 }
 0x3eb   : > { %2709 = vmatmul.msk.f32.gmra.mxu2 %vm267_vm0, %v1693_v37 }
 0x436   : > { %v1740_v55 = vpop.f32.mrf.mxu2 }
 0x437   : > { %v4105_v31 = vadd.f32 %v1740_v55, %v3109_v6 }
 0x439   : > { %v1772_v61 = vsel %vm267_vm0, %v4105_v31, 0.0 }
 0x43a   : > { %1773 = vadd.xlane.f32.xlu2 %v1772_v61 }
 0x43e   : > { %v1743_v12 = vpop.f32.mrf.mxu2 }
 0x43f   : > { %v4110_v40 = vadd.f32 %v1743_v12, %v3112_v7 }
 0x441   : > { %v1775_v34 = vsel %vm267_vm0, %v4110_v40, 0.0 }
 0x442   : > { %1776 = vadd.xlane.f32.xlu1 %v1775_v34 }
 0x446   : > { %v1746_v60 = vpop.f32.mrf.mxu2 }
 0x447   : > { %v4115_v23 = vadd.f32 %v1746_v60, %v3141_v32 }
 0x449   : > { %v1778_v6 = vsel %vm267_vm0, %v4115_v23, 0.0 }
 0x44a   : > { %1779 = vadd.xlane.f32.xlu2 %v1778_v6 }
 0x44e   : > { %v1749_v53 = vpop.f32.mrf.mxu2 }
 0x44f   : > { %v4135_v51 = vadd.f32 %v1749_v53, %v3167_v59 }
 0x456   : > { %v1752_v8 = vpop.f32.mrf.mxu2 }
 0x457   : > { %v4120_v16 = vadd.f32 %v1752_v8, %v3144_v43  ;;  %v2025_v8 = vld [vmem:[%s4615_s4 + $0x18] sm:$0xff] }
 0x458   : > { %2132 = vmatpush.msrb.mxu0 %v2025_v8 }
 0x459   : > { %v1784_v7 = vsel %vm267_vm0, %v4120_v16, 0.0 }
 0x45a   : > { %1785 = vadd.xlane.f32.xlu1 %v1784_v7  ;;  %v2024_v7 = vld [vmem:[%s4615_s4 + $0x10] sm:$0xff] }
 0x45b   : > { %2133 = vmatpush.msrb.mxu0 %v2024_v7 }
 0x45e   : > { %v1755_v9 = vpop.f32.mrf.mxu2 }
 0x45f   : > { %v4125_v41 = vadd.f32 %v1755_v9, %v3164_v54  ;;  %v1781_v54 = vsel %vm267_vm0, %v4135_v51, 0.0 }
 0x461   : > { %v1787_v32 = vsel %vm267_vm0, %v4125_v41, 0.0 }
 0x462   : > { %1788 = vadd.xlane.f32.xlu2 %v1787_v32 }
 0x466   : > { %v1758_v13 = vpop.f32.mrf.mxu2 }
 0x467   : > { %v4140_v33 = vadd.f32 %v1758_v13, %v3176_v63  ;;  %v2023_v13 = vld [vmem:[%s4615_s4 + $0x8] sm:$0xff] }
 0x468   : > { %2134 = vmatpush.msrb.mxu0 %v2023_v13  ;;  %v2713_v13 = vld [vmem:[%s4615_s4 + $0x38] sm:$0xff] }
 0x469   : > { %v1790_v39 = vsel %vm267_vm0, %v4140_v33, 0.0  ;;  %2067 = vmatpush.msra.mxu3 %v2713_v13 }
 0x46e   : > { %v1761_v49 = vpop.f32.mrf.mxu2 }
 0x46f   : > { %v4130_v46 = vadd.f32 %v1761_v49, %v3147_v35 }
 0x471   : > { %v1793_v43 = vsel %vm267_vm0, %v4130_v46, 0.0 }
 0x472   : > { %1794 = vadd.xlane.f32.xlu0 %v1793_v43 }
 0x47a   : > { %1782 = vadd.xlane.f32.xlu0 %v1781_v54  ;;  %v2022_v54 = vld [vmem:[%s4615_s4] sm:$0xff] }
 0x47b   : > { %2135 = vmatpush.msrb.mxu0 %v2022_v54 }
 0x482   : > { %1791 = vadd.xlane.f32.xlu0 %v1790_v39 }
 0x4ad   : > { %v1774_v35 = vpop.xlane.xlu2 %1773 }
 0x4ae   : > { %v1796_v27 = vmul.f32 %v1774_v35, %v2998_v22 }
 0x4b0   : > { %v4146_v44 = vsub.f32 %v4105_v31, %v1796_v27 }
 0x4b2   : > { %v1812_v59 = vmul.f32 %v4146_v44, %v4146_v44 }
 0x4b4   : > { %v1820_v15 = vsel %vm267_vm0, %v1812_v59, 0.0 }
 0x4b5   : > { %v1777_v10 = vpop.xlane.xlu1 %1776  ;;  %1821 = vadd.xlane.f32.xlu1 %v1820_v15 }
 0x4b6   : > { %v1797_v63 = vmul.f32 %v1777_v10, %v2998_v22 }
 0x4b8   : > { %v4153_v58 = vsub.f32 %v4110_v40, %v1797_v63 }
 0x4ba   : > { %v1813_v36 = vmul.f32 %v4153_v58, %v4153_v58 }
 0x4bc   : > { %v1823_v56 = vsel %vm267_vm0, %v1813_v36, 0.0 }
 0x4bd   : > { %v1780_v52 = vpop.xlane.xlu2 %1779  ;;  %1824 = vadd.xlane.f32.xlu0 %v1823_v56 }
 0x4be   : > { %v1798_v24 = vmul.f32 %v1780_v52, %v2998_v22 }
 0x4c0   : > { %v4160_v47 = vsub.f32 %v4115_v23, %v1798_v24  ;;  %v4218_v24 = vld [vmem:[%s4612_s1 + $0x4] ss:$0 sm:$0xff] }
 0x4c2   : > { %v1814_v62 = vmul.f32 %v4160_v47, %v4160_v47 }
 0x4c4   : > { %v1826_v2 = vsel %vm267_vm0, %v1814_v62, 0.0 }
 0x4c5   : > { %1827 = vadd.xlane.f32.xlu1 %v1826_v2 }
 0x4cd   : > { %v1786_v26 = vpop.xlane.xlu1 %1785 }
 0x4ce   : > { %v1800_v21 = vmul.f32 %v1786_v26, %v2998_v22  ;;  %v4223_v26 = vld [vmem:[%s4612_s1 + $0x5] ss:$0 sm:$0xff] }
 0x4d0   : > { %v4167_v50 = vsub.f32 %v4120_v16, %v1800_v21 }
 0x4d2   : > { %v1816_v57 = vmul.f32 %v4167_v50, %v4167_v50 }
 0x4d4   : > { %v1832_v38 = vsel %vm267_vm0, %v1816_v57, 0.0 }
 0x4d5   : > { %v1789_v45 = vpop.xlane.xlu2 %1788  ;;  %1833 = vadd.xlane.f32.xlu0 %v1832_v38 }
 0x4d6   : > { %v1801_v4 = vmul.f32 %v1789_v45, %v2998_v22 }
 0x4d8   : > { %v4174_v42 = vsub.f32 %v4125_v41, %v1801_v4 }
 0x4da   : > { %v1817_v14 = vmul.f32 %v4174_v42, %v4174_v42 }
 0x4dc   : > { %v1835_v30 = vsel %vm267_vm0, %v1817_v14, 0.0 }
 0x4dd   : > { %1836 = vadd.xlane.f32.xlu1 %v1835_v30 }
 0x4e5   : > { %v1795_v20 = vpop.xlane.xlu0 %1794 }
 0x4e6   : > { %v1803_v0 = vmul.f32 %v1795_v20, %v2998_v22 }
 0x4e8   : > { %v4181_v3 = vsub.f32 %v4130_v46, %v1803_v0 }
 0x4ea   : > { %v1819_v28 = vmul.f32 %v4181_v3, %v4181_v3 }
 0x4ec   : > { %v1841_v5 = vsel %vm267_vm0, %v1819_v28, 0.0 }
 0x4ed   : > { %1842 = vadd.xlane.f32.xlu2 %v1841_v5  ;;  %v1783_v48 = vpop.xlane.xlu0 %1782 }
 0x4ee   : > { %v1799_v11 = vmul.f32 %v1783_v48, %v2998_v22 }
 0x4f0   : > { %v4188_v29 = vsub.f32 %v4135_v51, %v1799_v11 }
 0x4f2   : > { %v1815_v1 = vmul.f32 %v4188_v29, %v4188_v29 }
 0x4f4   : > { %v1829_v19 = vsel %vm267_vm0, %v1815_v1, 0.0 }
 0x4f5   : > { %1830 = vadd.xlane.f32.xlu2 %v1829_v19  ;;  %v1792_v37 = vpop.xlane.xlu0 %1791 }
 0x4f6   : > { %v1802_v55 = vmul.f32 %v1792_v37, %v2998_v22 }
 0x4f8   : > { %v4195_v61 = vsub.f32 %v4140_v33, %v1802_v55 }
 0x4fa   : > { %v1818_v12 = vmul.f32 %v4195_v61, %v4195_v61 }
 0x4fc   : > { %v1838_v34 = vsel %vm267_vm0, %v1818_v12, 0.0 }
 0x4fd   : > { %1839 = vadd.xlane.f32.xlu2 %v1838_v34 }
 0x528   : > { %v1822_v60 = vpop.xlane.xlu1 %1821 }
 0x529   : > { %v1844_v6 = vmul.f32 %v1822_v60, %v2998_v22 }
 0x52b   : > { %v1852_v53 = vadd.f32 1e-05, %v1844_v6 }
 0x52d   : > { %2881 = vrsqrt.f32 %v1852_v53  ;;  %vm1866_vm11 = vweird.f32 %v1852_v53 }
 0x530   : > { %v1825_v9 = vpop.xlane.xlu0 %1824 }
 0x531   : > { %v1845_v32 = vmul.f32 %v1825_v9, %v2998_v22 }
 0x533   : > { %v2882_v49 = vpop.eup %2881  ;;  %v1853_v43 = vadd.f32 1e-05, %v1845_v32 }
 0x534   : > { %v1861_v39 = vmul.f32 %v2882_v49, %v1852_v53  ;;  %vm1867_vm8 = vweird.f32 %v2882_v49 }
 0x535   : > { %2883 = vrsqrt.f32 %v1853_v43  ;;  %vm1868_vm15 = vmor %vm1866_vm11, %vm1867_vm8  ;;  %vm1876_vm3 = vweird.f32 %v1853_v43 }
 0x536   : > { %v1862_v35 = vmul.f32 %v2882_v49, %v1861_v39 }
 0x538   : > { %v1863_v27 = vmul.f32 0.5, %v1862_v35  ;;  %v1828_v59 = vpop.xlane.xlu1 %1827  ;;  %v2736_v35 = vld [vmem:[%s4614_s3 + $0x110] sm:$0xff] }
 0x539   : > { %v1846_v15 = vmul.f32 %v1828_v59, %v2998_v22  ;;  %v2711_v59 = vld [vmem:[%s4615_s4 + $0x28] sm:$0xff] }
 0x53a   : > { %v1864_v10 = vsub.f32 1.5, %v1863_v27 }
 0x53b   : > { %v2884_v63 = vpop.eup %2883  ;;  %v1854_v36 = vadd.f32 1e-05, %v1846_v15  ;;  %v2735_v15 = vld [vmem:[%s4614_s3 + $0x108] sm:$0xff] }
 0x53c   : > { %v1865_v56 = vmul.f32 %v2882_v49, %v1864_v10  ;;  %v1871_v52 = vmul.f32 %v2884_v63, %v1853_v43  ;;  %vm1877_vm2 = vweird.f32 %v2884_v63  ;;  %v2712_v43 = vld [vmem:[%s4615_s4 + $0x30] sm:$0xff] }
 0x53d   : > { %2885 = vrsqrt.f32 %v1854_v36  ;;  %vm1878_vm4 = vmor %vm1876_vm3, %vm1877_vm2  ;;  %vm1886_vm6 = vweird.f32 %v1854_v36  ;;  %2068 = vmatpush.msra.mxu3 %v2712_v43 }
 0x53e   : > { %v1869_v62 = vsel %vm1868_vm15, %v2882_v49, %v1865_v56  ;;  %v1872_v2 = vmul.f32 %v2884_v63, %v1871_v52  ;;  %v2737_v49 = vld [vmem:[%s4614_s3 + $0x118] sm:$0xff]  ;;  %v2710_v56 = vld [vmem:[%s4615_s4 + $0x20] sm:$0xff] }
 0x53f   : > { %v1940_v21 = vmul.f32 %v1869_v62, %v4146_v44  ;;  %2256 = vmatpush.msrb.mxu2 %v2737_v49  ;;  %v2734_v52 = vld [vmem:[%s4614_s3 + $0x100] sm:$0xff]  ;;  %2069 = vmatpush.msra.mxu3 %v2711_v59 }
 0x540   : > { %v1873_v57 = vmul.f32 0.5, %v1872_v2 }
 0x541   : > { %v1949_v38 = vmul.f32 %v4218_v24, %v1940_v21  ;;  %2257 = vmatpush.msrb.mxu2 %v2736_v35  ;;  %2070 = vmatpush.msra.mxu3 %v2710_v56 }
 0x542   : > { %v1874_v45 = vsub.f32 1.5, %v1873_v57 }
 0x543   : > { %v2886_v4 = vpop.eup %2885  ;;  %v4228_v14 = vadd.f32 %v4223_v26, %v1949_v38  ;;  %2258 = vmatpush.msrb.mxu2 %v2735_v15 }
 0x544   : > { %v1875_v30 = vmul.f32 %v2884_v63, %v1874_v45  ;;  %v1881_v20 = vmul.f32 %v2886_v4, %v1854_v36  ;;  %vm1887_vm5 = vweird.f32 %v2886_v4 }
 0x545   : > { %2722 = vmatmul.msk.f32.vlgmr.msrb.gmra.mxu0 %vm267_vm0, %v4228_v14  ;;  %vm1888_vm1 = vmor %vm1886_vm6, %vm1887_vm5  ;;  %2259 = vmatpush.msrb.mxu2 %v2734_v52  ;;  %v1966_v49 = vrot.slane %v4228_v14, 7 }
 0x546   : > { %v1879_v0 = vsel %vm1878_vm4, %v2884_v63, %v1875_v30  ;;  %v1882_v28 = vmul.f32 %v2886_v4, %v1881_v20 }
 0x547   : > { %v1941_v44 = vmul.f32 %v1879_v0, %v4153_v58 }
 0x548   : > { %v1883_v5 = vmul.f32 0.5, %v1882_v28  ;;  %v1834_v34 = vpop.xlane.xlu0 %1833 }
 0x549   : > { %v1950_v48 = vmul.f32 %v4218_v24, %v1941_v44  ;;  %v1848_v60 = vmul.f32 %v1834_v34, %v2998_v22 }
 0x54a   : > { %v1884_v11 = vsub.f32 1.5, %v1883_v5 }
 0x54b   : > { %v4235_v1 = vadd.f32 %v4223_v26, %v1950_v48  ;;  %v4247_v6 = vadd.f32 1e-05, %v1848_v60 }
 0x54c   : > { %v1885_v19 = vmul.f32 %v2886_v4, %v1884_v11 }
 0x54d   : > { %2723 = vmatmul.msk.f32.gmra.mxu0 %vm267_vm0, %v4235_v1  ;;  %2887 = vrsqrt.f32 %v4247_v6  ;;  %vm1906_vm5 = vweird.f32 %v4247_v6 }
 0x54e   : > { %v1889_v37 = vsel %vm1888_vm1, %v2886_v4, %v1885_v19 }
 0x54f   : > { %v1942_v55 = vmul.f32 %v1889_v37, %v4160_v47 }
 0x550   : > { %v1837_v53 = vpop.xlane.xlu1 %1836 }
 0x551   : > { %v1951_v12 = vmul.f32 %v4218_v24, %v1942_v55  ;;  %v1849_v47 = vmul.f32 %v1837_v53, %v2998_v22 }
 0x553   : > { %v4242_v58 = vadd.f32 %v4223_v26, %v1951_v12  ;;  %v4252_v32 = vadd.f32 1e-05, %v1849_v47  ;;  %v4263_v54 = vpop.eup %2887  ;;  %v1991_v47 = vrot.slane %v4235_v1, 1 }
 0x554   : > { %v1901_v63 = vmul.f32 %v4263_v54, %v4247_v6  ;;  %vm1907_vm2 = vweird.f32 %v4263_v54 }
 0x555   : > { %2724 = vmatmul.msk.f32.gmra.mxu0 %vm267_vm0, %v4242_v58  ;;  %vm1908_vm6 = vmor %vm1906_vm5, %vm1907_vm2  ;;  %v1992_v52 = vrot.slane %v4242_v58, 1  ;;  %vm1916_vm1 = vweird.f32 %v4252_v32 }
 0x556   : > { %v1902_v21 = vmul.f32 %v4263_v54, %v1901_v63 }
 0x558   : > { %v1903_v0 = vmul.f32 0.5, %v1902_v21 }
 0x55a   : > { %v1904_v37 = vsub.f32 1.5, %v1903_v0 }
 0x560   : > { %v1843_v8 = vpop.xlane.xlu2 %1842 }
 0x561   : > { %v1851_v7 = vmul.f32 %v1843_v8, %v2998_v22  ;;  %v1905_v8 = vmul.f32 %v4263_v54, %v1904_v37 }
 0x563   : > { %v1859_v9 = vadd.f32 1e-05, %v1851_v7 }
 0x565   : > { %2889 = vrsqrt.f32 %v1859_v9  ;;  %vm1936_vm8 = vweird.f32 %v1859_v9 }
 0x566   : > { %2891 = vrsqrt.f32 %v4252_v32 }
 0x568   : > { %v1831_v39 = vpop.xlane.xlu2 %1830 }
 0x569   : > { %v1847_v27 = vmul.f32 %v1831_v39, %v2998_v22  ;;  %v1990_v39 = vrot.slane %v4228_v14, 1 }
 0x56b   : > { %v2890_v10 = vpop.eup %2889  ;;  %v1855_v36 = vadd.f32 1e-05, %v1847_v27  ;;  %v2004_v15 = vsel %vm723_vm9, %v1990_v39, %v1991_v47 }
 0x56c   : > { %v1931_v62 = vmul.f32 %v2890_v10, %v1859_v9  ;;  %v4285_v45 = vpop.eup %2891  ;;  %vm1937_vm7 = vweird.f32 %v2890_v10 }
 0x56d   : > { %2893 = vrsqrt.f32 %v1855_v36  ;;  %v1911_v44 = vmul.f32 %v4285_v45, %v4252_v32  ;;  %vm1938_vm11 = vmor %vm1936_vm8, %vm1937_vm7  ;;  %vm1896_vm3 = vweird.f32 %v1855_v36 }
 0x56e   : > { %v1932_v2 = vmul.f32 %v2890_v10, %v1931_v62 }
 0x56f   : > { %v1912_v55 = vmul.f32 %v4285_v45, %v1911_v44 }
 0x570   : > { %v1933_v57 = vmul.f32 0.5, %v1932_v2  ;;  %v1840_v38 = vpop.xlane.xlu2 %1839 }
 0x571   : > { %v1850_v4 = vmul.f32 %v1840_v38, %v2998_v22  ;;  %v1913_v9 = vmul.f32 0.5, %v1912_v55  ;;  %v2003_v38 = vsel %vm723_vm9, %v1991_v47, %v1992_v52 }
 0x572   : > { %v1934_v30 = vsub.f32 1.5, %v1933_v57  ;;  %v1967_v57 = vrot.slane %v4235_v1, 7 }
 0x573   : > { %v2894_v20 = vpop.eup %2893  ;;  %v4288_v28 = vadd.f32 1e-05, %v1850_v4  ;;  %v1914_v63 = vsub.f32 1.5, %v1913_v9  ;;  %v2732_v9 = vld [vmem:[%s4614_s3 + $0xf0] sm:$0xff] }
 0x574   : > { %v1935_v5 = vmul.f32 %v2890_v10, %v1934_v30  ;;  %v1891_v48 = vmul.f32 %v2894_v20, %v1855_v36  ;;  %vm1897_vm15 = vweird.f32 %v2894_v20 }
 0x575   : > { %2895 = vrsqrt.f32 %v4288_v28  ;;  %vm1898_vm4 = vmor %vm1896_vm3, %vm1897_vm15  ;;  %v1915_v2 = vmul.f32 %v4285_v45, %v1914_v63 }
 0x576   : > { %v1939_v11 = vsel %vm1938_vm11, %v2890_v10, %v1935_v5  ;;  %v1892_v19 = vmul.f32 %v2894_v20, %v1891_v48  ;;  %v1909_v10 = vsel %vm1908_vm6, %v4263_v54, %v1905_v8  ;;  %v1968_v48 = vrot.slane %v4242_v58, 7 }
 0x577   : > { %v1947_v22 = vmul.f32 %v1939_v11, %v4181_v3  ;;  %v1944_v62 = vmul.f32 %v1909_v10, %v4167_v50  ;;  %vm1926_vm11 = vweird.f32 %v4288_v28 }
 0x578   : > { %v1893_v12 = vmul.f32 0.5, %v1892_v19  ;;  %v1979_v37 = vsel %vm690_vm13, %v1967_v57, %v1968_v48 }
 0x579   : > { %v1956_v34 = vmul.f32 %v4218_v24, %v1947_v22  ;;  %v1953_v50 = vmul.f32 %v4218_v24, %v1944_v62 }
 0x57a   : > { %v1894_v60 = vsub.f32 1.5, %v1893_v12 }
 0x57b   : > { %v4296_v53 = vpop.eup %2895  ;;  %v4301_v7 = vadd.f32 %v4223_v26, %v1956_v34  ;;  %v4352_v5 = vadd.f32 %v4223_v26, %v1953_v50 }
 0x57c   : > { %v1895_v3 = vmul.f32 %v2894_v20, %v1894_v60  ;;  %v1921_v13 = vmul.f32 %v4296_v53, %v4288_v28  ;;  %vm1927_vm8 = vweird.f32 %v4296_v53 }
 0x57d   : > { %v1973_v43 = vrot.slane %v4301_v7, 7  ;;  %vm1928_vm15 = vmor %vm1926_vm11, %vm1927_vm8  ;;  %v1994_v34 = vrot.slane %v4352_v5, 1 }
 0x57e   : > { %v1899_v35 = vsel %vm1898_vm4, %v2894_v20, %v1895_v3  ;;  %v1922_v36 = vmul.f32 %v4296_v53, %v1921_v13  ;;  %v1980_v20 = vsel %vm690_vm13, %v1966_v49, %v1967_v57 }
 0x57f   : > { %v1943_v27 = vmul.f32 %v1899_v35, %v4188_v29  ;;  %v1981_v59 = vsel %vm690_vm13, %v1973_v43, %v1966_v49  ;;  %v2015_v0 = vsel %vm740_vm14, %v1980_v20, %v2003_v38  ;;  %v2731_v49 = vld [vmem:[%s4614_s3 + $0xe8] sm:$0xff] }
 0x580   : > { %v1982_v6 = vsel %vm674_vm12, %v1981_v59, 0.0  ;;  %vm1917_vm12 = vweird.f32 %v4285_v45  ;;  %v1923_v21 = vmul.f32 0.5, %v1922_v36  ;;  %v2182_v20 = vld [vmem:[%s4616_s5 + $0x28] sm:$0xff] }
 0x581   : > { %v2014_v29 = vsel %vm740_vm14, %v1982_v6, %v2004_v15  ;;  %v1952_v56 = vmul.f32 %v4218_v24, %v1943_v27  ;;  %vm1918_vm7 = vmor %vm1916_vm1, %vm1917_vm12 }
 0x582   : > { %2714 = vmatmul.msk.f32.vlgmr.msra.gmra.mxu3 %vm267_vm0, %v2014_v29  ;;  %2738 = vmatmul.msk.f32.vlgmr.msrb.gmra.mxu2 %vm267_vm0, %v2014_v29  ;;  %v1919_v4 = vsel %vm1918_vm7, %v4285_v45, %v1915_v2  ;;  %v1924_v30 = vsub.f32 1.5, %v1923_v21 }
 0x583   : > { %v4331_v54 = vadd.f32 %v4223_v26, %v1952_v56  ;;  %v1945_v44 = vmul.f32 %v1919_v4, %v4174_v42  ;;  %v1997_v56 = vrot.slane %v4301_v7, 1  ;;  %v2184_v4 = vld [vmem:[%s4616_s5 + $0x38] sm:$0xff] }
 0x584   : > { %v1925_v45 = vmul.f32 %v4296_v53, %v1924_v30  ;;  %v2183_v30 = vld [vmem:[%s4616_s5 + $0x30] sm:$0xff] }
 0x585   : > { %2725 = vmatmul.msk.f32.gmra.mxu0 %vm267_vm0, %v4331_v54  ;;  %v1993_v32 = vrot.slane %v4331_v54, 1  ;;  %v1954_v42 = vmul.f32 %v4218_v24, %v1945_v44  ;;  %v1969_v28 = vrot.slane %v4331_v54, 7  ;;  %v2005_v21 = vsel %vm723_vm9, %v1997_v56, %v1990_v39  ;;  %v2186_v39 = vld [vmem:[%s4616_s5 + $0x48] sm:$0xff] }
 0x586   : > { %v1929_v19 = vsel %vm1928_vm15, %v4296_v53, %v1925_v45  ;;  %v2013_v38 = vsel %vm714_vm10, %v2005_v21, 0.0  ;;  %v2178_v44 = vld [vmem:[%s4616_s5 + $0x8] sm:$0xff] }
 0x587   : > { %v2002_v11 = vsel %vm723_vm9, %v1992_v52, %v1993_v32  ;;  %v1946_v55 = vmul.f32 %v1929_v19, %v4195_v61  ;;  %v4373_v12 = vadd.f32 %v4223_v26, %v1954_v42  ;;  %v1978_v60 = vsel %vm690_vm13, %v1968_v48, %v1969_v28  ;;  %v2733_v61 = vld [vmem:[%s4614_s3 + $0xf8] sm:$0xff] }
 0x588   : > { %v2016_v22 = vsel %vm740_vm14, %v1979_v37, %v2002_v11  ;;  %v2001_v53 = vsel %vm723_vm9, %v1993_v32, %v1994_v34  ;;  %2297 = vmatpush.msrb.mxu3 %v2733_v61  ;;  %v2179_v32 = vld [vmem:[%s4616_s5 + $0x10] sm:$0xff] }
 0x589   : > { %v1955_v8 = vmul.f32 %v4218_v24, %v1946_v55  ;;  %v2017_v47 = vsel %vm740_vm14, %v1978_v60, %v2001_v53  ;;  %v1970_v24 = vrot.slane %v4352_v5, 7  ;;  %v1995_v13 = vrot.slane %v4373_v12, 1 }
 0x58a   : > { %2715 = vmatmul.msk.f32.gmra.mxu3 %vm267_vm0, %v2015_v0  ;;  %2739 = vmatmul.msk.f32.gmra.mxu2 %vm267_vm0, %v2015_v0  ;;  %v1971_v10 = vrot.slane %v4373_v12, 7  ;;  %v2180_v0 = vld [vmem:[%s4616_s5 + $0x18] sm:$0xff] }
 0x58b   : > { %v4394_v3 = vadd.f32 %v4223_v26, %v1955_v8  ;;  %2298 = vmatpush.msrb.mxu3 %v2732_v9  ;;  %v1977_v35 = vsel %vm690_vm13, %v1969_v28, %v1970_v24  ;;  %v2730_v26 = vld [vmem:[%s4614_s3 + $0xe0] sm:$0xff]  ;;  %v2000_v27 = vsel %vm723_vm9, %v1994_v34, %v1995_v13 }
 0x58c   : > { %v2018_v59 = vsel %vm740_vm14, %v1977_v35, %v2000_v27  ;;  %v1976_v36 = vsel %vm690_vm13, %v1970_v24, %v1971_v10 }
 0x58d   : > { %2726 = vmatmul.msk.f32.gmra.mxu0 %vm267_vm0, %v4352_v5  ;;  %2299 = vmatpush.msrb.mxu3 %v2731_v49  ;;  %v1996_v15 = vrot.slane %v4394_v3, 1  ;;  %v1972_v29 = vrot.slane %v4394_v3, 7 }
 0x58f   : > { %2300 = vmatpush.msrb.mxu3 %v2730_v26  ;;  %v1999_v63 = vsel %vm723_vm9, %v1995_v13, %v1996_v15  ;;  %v1975_v52 = vsel %vm690_vm13, %v1971_v10, %v1972_v29  ;;  %v1998_v62 = vsel %vm723_vm9, %v1996_v15, %v1997_v56  ;;  %v1974_v57 = vsel %vm690_vm13, %v1972_v29, %v1973_v43  ;;  %v2187_v43 = vld [vmem:[%s4616_s5 + $0x50] sm:$0xff] }
 0x590   : > { %v2019_v6 = vsel %vm740_vm14, %v1976_v36, %v1999_v63  ;;  %v2020_v2 = vsel %vm740_vm14, %v1975_v52, %v1998_v62  ;;  %v2021_v50 = vsel %vm740_vm14, %v1974_v57, %v2013_v38 }
 0x592   : > { %2716 = vmatmul.msk.f32.gmra.mxu3 %vm267_vm0, %v2016_v22  ;;  %2740 = vmatmul.msk.f32.gmra.mxu2 %vm267_vm0, %v2016_v22 }
 0x595   : > { %2727 = vmatmul.msk.f32.gmra.mxu0 %vm267_vm0, %v4373_v12 }
 0x59a   : > { %2717 = vmatmul.msk.f32.gmra.mxu3 %vm267_vm0, %v2017_v47  ;;  %2741 = vmatmul.msk.f32.gmra.mxu2 %vm267_vm0, %v2017_v47 }
 0x59d   : > { %2728 = vmatmul.msk.f32.gmra.mxu0 %vm267_vm0, %v4394_v3 }
 0x5a2   : > { %2718 = vmatmul.msk.f32.gmra.mxu3 %vm267_vm0, %v2018_v59  ;;  %2742 = vmatmul.msk.f32.gmra.mxu2 %vm267_vm0, %v2018_v59 }
 0x5a5   : > { %2729 = vmatmul.msk.f32.gmra.mxu0 %vm267_vm0, %v4301_v7 }
 0x5aa   : > { %2719 = vmatmul.msk.f32.gmra.mxu3 %vm267_vm0, %v2019_v6  ;;  %2743 = vmatmul.msk.f32.gmra.mxu2 %vm267_vm0, %v2019_v6 }
 0x5b2   : > { %2720 = vmatmul.msk.f32.gmra.mxu3 %vm267_vm0, %v2020_v2  ;;  %2744 = vmatmul.msk.f32.gmra.mxu2 %vm267_vm0, %v2020_v2 }
 0x5ba   : > { %2721 = vmatmul.msk.f32.gmra.mxu3 %vm267_vm0, %v2021_v50  ;;  %2745 = vmatmul.msk.f32.gmra.mxu2 %vm267_vm0, %v2021_v50 }
 0x5c2   : > { %2746 = vmatmul.msk.f32.vlgmr.msrb.gmra.mxu3 %vm267_vm0, %v4228_v14  ;;  %v2189_v14 = vld [vmem:[%s4616_s5 + $0x60] sm:$0xff]  ;;  %v2137_v45 = vpop.f32.mrf.mxu0 }
 0x5c3   : > { %2196 = vmatpush.msrb.mxu1 %v2189_v14 }
 0x5ca   : > { %2747 = vmatmul.msk.f32.gmra.mxu3 %vm267_vm0, %v4235_v1  ;;  %v2188_v1 = vld [vmem:[%s4616_s5 + $0x58] sm:$0xff]  ;;  %v2140_v48 = vpop.f32.mrf.mxu0 }
 0x5cb   : > { %2197 = vmatpush.msrb.mxu1 %v2188_v1 }
 0x5cd   : > { %2198 = vmatpush.msrb.mxu1 %v2187_v43 }
 0x5cf   : > { %2199 = vmatpush.msrb.mxu1 %v2186_v39 }
 0x5d2   : > { %2748 = vmatmul.msk.f32.gmra.mxu3 %vm267_vm0, %v4242_v58  ;;  %v2185_v58 = vld [vmem:[%s4616_s5 + $0x40] sm:$0xff]  ;;  %v2143_v22 = vpop.f32.mrf.mxu0 }
 0x5d3   : > { %2200 = vmatpush.msrb.mxu1 %v2185_v58 }
 0x5d5   : > { %2201 = vmatpush.msrb.mxu1 %v2184_v4 }
 0x5d7   : > { %2202 = vmatpush.msrb.mxu1 %v2183_v30 }
 0x5d9   : > { %2203 = vmatpush.msrb.mxu1 %v2182_v20 }
 0x5da   : > { %2749 = vmatmul.msk.f32.gmra.mxu3 %vm267_vm0, %v4331_v54  ;;  %v2181_v54 = vld [vmem:[%s4616_s5 + $0x20] sm:$0xff] }
 0x5db   : > { %2204 = vmatpush.msrb.mxu1 %v2181_v54 }
 0x5dd   : > { %2205 = vmatpush.msrb.mxu1 %v2180_v0 }
 0x5df   : > { %2206 = vmatpush.msrb.mxu1 %v2179_v32 }
 0x5e1   : > { %2207 = vmatpush.msrb.mxu1 %v2178_v44 }
 0x5e2   : > { %2750 = vmatmul.msk.f32.gmra.mxu3 %vm267_vm0, %v4352_v5  ;;  %v2177_v5 = vld [vmem:[%s4616_s5] sm:$0xff] }
 0x5e3   : > { %2208 = vmatpush.msrb.mxu1 %v2177_v5 }
 0x5ea   : > { %2751 = vmatmul.msk.f32.gmra.mxu3 %vm267_vm0, %v4373_v12 }
 0x5f2   : > { %2752 = vmatmul.msk.f32.gmra.mxu3 %vm267_vm0, %v4394_v3 }
 0x5fa   : > { %2753 = vmatmul.msk.f32.gmra.mxu3 %vm267_vm0, %v4301_v7 }
 0x602   : > { %v2146_v60 = vpop.f32.mrf.mxu0 }
 0x605   : > { %v2072_v11 = vpop.f32.mrf.mxu3  ;;  %v2261_v18 = vpop.f32.mrf.mxu2 }
 0x606   : > { %v2138_v42 = vadd.f32 %v2137_v45, %v2072_v11 }
 0x608   : > { %v2161_v19 = vmax.f32 %v2138_v42, 0.0 }
 0x60a   : > { %v2169_v37 = vmul.f32 %v2161_v19, %v2161_v19  ;;  %v2149_v3 = vpop.f32.mrf.mxu0 }
 0x60c   : > { %2209 = vmatmul.f32.vlgmr.msrb.gmra.mxu1 %v2169_v37 }
 0x60d   : > { %v2075_v28 = vpop.f32.mrf.mxu3  ;;  %v2264_v14 = vpop.f32.mrf.mxu2 }
 0x60e   : > { %v2141_v55 = vadd.f32 %v2140_v48, %v2075_v28 }
 0x610   : > { %v2162_v12 = vmax.f32 %v2141_v55, 0.0 }
 0x612   : > { %v2170_v34 = vmul.f32 %v2162_v12, %v2162_v12  ;;  %v2152_v27 = vpop.f32.mrf.mxu0 }
 0x614   : > { %2212 = vmatmul.f32.gmra.mxu1 %v2170_v34 }
 0x615   : > { %v2078_v53 = vpop.f32.mrf.mxu3  ;;  %v2267_v58 = vpop.f32.mrf.mxu2 }
 0x616   : > { %v2144_v8 = vadd.f32 %v2143_v22, %v2078_v53 }
 0x618   : > { %v2163_v47 = vmax.f32 %v2144_v8, 0.0 }
 0x61a   : > { %v2171_v61 = vmul.f32 %v2163_v47, %v2163_v47  ;;  %v2155_v6 = vpop.f32.mrf.mxu0 }
 0x61c   : > { %2215 = vmatmul.f32.gmra.mxu1 %v2171_v61 }
 0x61d   : > { %v2081_v9 = vpop.f32.mrf.mxu3  ;;  %v2270_v0 = vpop.f32.mrf.mxu2 }
 0x61e   : > { %v2147_v7 = vadd.f32 %v2146_v60, %v2081_v9 }
 0x620   : > { %v2164_v24 = vmax.f32 %v2147_v7, 0.0 }
 0x622   : > { %v2172_v13 = vmul.f32 %v2164_v24, %v2164_v24  ;;  %v2158_v2 = vpop.f32.mrf.mxu0 }
 0x624   : > { %2218 = vmatmul.f32.gmra.mxu1 %v2172_v13 }
 0x625   : > { %v2084_v49 = vpop.f32.mrf.mxu3  ;;  %v2273_v42 = vpop.f32.mrf.mxu2 }
 0x626   : > { %v2150_v35 = vadd.f32 %v2149_v3, %v2084_v49 }
 0x628   : > { %v2165_v26 = vmax.f32 %v2150_v35, 0.0 }
 0x62a   : > { %v2173_v59 = vmul.f32 %v2165_v26, %v2165_v26 }
 0x62c   : > { %2221 = vmatmul.f32.gmra.mxu1 %v2173_v59 }
 0x62d   : > { %v2087_v15 = vpop.f32.mrf.mxu3  ;;  %v2276_v47 = vpop.f32.mrf.mxu2 }
 0x62e   : > { %v2153_v10 = vadd.f32 %v2152_v27, %v2087_v15 }
 0x630   : > { %v2166_v63 = vmax.f32 %v2153_v10, 0.0 }
 0x632   : > { %v2174_v36 = vmul.f32 %v2166_v63, %v2166_v63 }
 0x634   : > { %2224 = vmatmul.f32.gmra.mxu1 %v2174_v36 }
 0x635   : > { %v2090_v29 = vpop.f32.mrf.mxu3  ;;  %v2279_v63 = vpop.f32.mrf.mxu2 }
 0x636   : > { %v2156_v56 = vadd.f32 %v2155_v6, %v2090_v29 }
 0x638   : > { %v2167_v52 = vmax.f32 %v2156_v56, 0.0 }
 0x63a   : > { %v2175_v62 = vmul.f32 %v2167_v52, %v2167_v52 }
 0x63c   : > { %2227 = vmatmul.f32.gmra.mxu1 %v2175_v62 }
 0x63d   : > { %v2093_v21 = vpop.f32.mrf.mxu3 }
 0x63e   : > { %v2159_v57 = vadd.f32 %v2158_v2, %v2093_v21 }
 0x640   : > { %v2168_v38 = vmax.f32 %v2159_v57, 0.0 }
 0x642   : > { %v2176_v50 = vmul.f32 %v2168_v38, %v2168_v38 }
 0x644   : > { %2230 = vmatmul.f32.gmra.mxu1 %v2176_v50 }
 0x645   : > { %v2302_v25 = vpop.f32.mrf.mxu3 }
 0x646   : > { %v2303_v1 = vadd.f32 %v2302_v25, %v2261_v18 }
 0x648   : > { %v2754_v39 = vmul.f32 -1.442695, %v2303_v1 }
 0x64a   : > { %2897 = vpow2.f32 %v2754_v39 }
 0x64d   : > { %v2305_v17 = vpop.f32.mrf.mxu3 }
 0x64e   : > { %v2306_v4 = vadd.f32 %v2305_v17, %v2264_v14 }
 0x650   : > { %v2755_v30 = vmul.f32 -1.442695, %v2306_v4  ;;  %v2898_v54 = vpop.eup %2897 }
 0x651   : > { %v2350_v44 = vadd.f32 1.0, %v2898_v54  ;;  %v2282_v54 = vpop.f32.mrf.mxu2 }
 0x652   : > { %2899 = vpow2.f32 %v2755_v30 }
 0x653   : > { %2901 = vrcp.f32 %v2350_v44  ;;  %v2369_v59 = vand.u32 2147483648, %v2350_v44  ;;  %vm2363_vm13 = vweird.f32 %v2350_v44  ;;  %v2367_v10 = vand.u32 2147483647, %v2350_v44 }
 0x655   : > { %v2308_v43 = vpop.f32.mrf.mxu3  ;;  %v2370_v52 = vor.u32 1.1754944e-38, %v2369_v59  ;;  %vm2368_vm10 = vcmp.eq.f32.partialorder %v2367_v10, 8.507059e+37 }
 0x656   : > { %v2309_v32 = vadd.f32 %v2308_v43, %v2267_v58 }
 0x658   : > { %v2756_v5 = vmul.f32 -1.442695, %v2309_v32  ;;  %v2900_v45 = vpop.eup %2899 }
 0x659   : > { %v4514_v19 = vadd.f32 1.0, %v2900_v45  ;;  %v2902_v37 = vpop.eup %2901 }
 0x65a   : > { %2903 = vpow2.f32 %v2756_v5  ;;  %v2359_v55 = vmul.f32 %v2902_v37, %v2350_v44  ;;  %vm2364_vm9 = vweird.f32 %v2902_v37 }
 0x65b   : > { %2905 = vrcp.f32 %v4514_v19  ;;  %vm2365_vm14 = vmor %vm2363_vm13, %vm2364_vm9  ;;  %v2384_v17 = vand.u32 2147483648, %v4514_v19  ;;  %vm2378_vm3 = vweird.f32 %v4514_v19  ;;  %v2382_v43 = vand.u32 2147483647, %v4514_v19 }
 0x65c   : > { %v2360_v53 = vsub.f32 1.0, %v2359_v55 }
 0x65d   : > { %v2311_v20 = vpop.f32.mrf.mxu3  ;;  %vm2383_vm5 = vcmp.eq.f32.partialorder %v2382_v43, 8.507059e+37 }
 0x65e   : > { %v2312_v11 = vadd.f32 %v2311_v20, %v2270_v0  ;;  %v2361_v7 = vmul.f32 %v2902_v37, %v2360_v53  ;;  %v2385_v0 = vor.u32 1.1754944e-38, %v2384_v17 }
 0x660   : > { %v2757_v22 = vmul.f32 -1.442695, %v2312_v11  ;;  %v2904_v28 = vpop.eup %2903  ;;  %v2362_v49 = vadd.f32 %v2902_v37, %v2361_v7 }
 0x661   : > { %v4517_v34 = vadd.f32 1.0, %v2904_v28  ;;  %v2906_v8 = vpop.eup %2905 }
 0x662   : > { %2907 = vpow2.f32 %v2757_v22  ;;  %v2374_v3 = vmul.f32 %v2906_v8, %v4514_v19  ;;  %v2366_v6 = vsel %vm2365_vm14, %v2902_v37, %v2362_v49  ;;  %vm2379_vm2 = vweird.f32 %v2906_v8 }
 0x663   : > { %2909 = vrcp.f32 %v4517_v34  ;;  %v2371_v57 = vsel %vm2368_vm10, %v2370_v52, %v2366_v6  ;;  %vm2380_vm4 = vmor %vm2378_vm3, %vm2379_vm2  ;;  %v2399_v19 = vand.u32 2147483648, %v4517_v34  ;;  %vm2393_vm12 = vweird.f32 %v4517_v34 }
 0x664   : > { %v2375_v35 = vsub.f32 1.0, %v2374_v3  ;;  %v2397_v28 = vand.u32 2147483647, %v4517_v34 }
 0x665   : > { %v2314_v48 = vpop.f32.mrf.mxu3 }
 0x666   : > { %v2315_v12 = vadd.f32 %v2314_v48, %v2273_v42  ;;  %v2376_v29 = vmul.f32 %v2906_v8, %v2375_v35  ;;  %vm2398_vm7 = vcmp.eq.f32.partialorder %v2397_v28, 8.507059e+37 }
 0x668   : > { %v2758_v61 = vmul.f32 -1.442695, %v2315_v12  ;;  %v2908_v9 = vpop.eup %2907  ;;  %v2377_v50 = vadd.f32 %v2906_v8, %v2376_v29 }
 0x669   : > { %v4521_v13 = vadd.f32 1.0, %v2908_v9  ;;  %v4523_v26 = vpop.eup %2909 }
 0x66a   : > { %2911 = vpow2.f32 %v2758_v61  ;;  %v2389_v56 = vmul.f32 %v4523_v26, %v4517_v34  ;;  %v2381_v4 = vsel %vm2380_vm4, %v2906_v8, %v2377_v50  ;;  %vm2394_vm6 = vweird.f32 %v4523_v26 }
 0x66b   : > { %2913 = vrcp.f32 %v4521_v13  ;;  %v2386_v5 = vsel %vm2383_vm5, %v2385_v0, %v2381_v4  ;;  %vm2395_vm1 = vmor %vm2393_vm12, %vm2394_vm6  ;;  %v2400_v8 = vor.u32 1.1754944e-38, %v2399_v19  ;;  %vm2408_vm11 = vweird.f32 %v4521_v13 }
 0x66c   : > { %v2390_v25 = vsub.f32 1.0, %v2389_v56  ;;  %v2412_v35 = vand.u32 2147483647, %v4521_v13 }
 0x66d   : > { %v2317_v60 = vpop.f32.mrf.mxu3 }
 0x66e   : > { %v2318_v24 = vadd.f32 %v2317_v60, %v2276_v47  ;;  %v2391_v30 = vmul.f32 %v4523_v26, %v2390_v25  ;;  %vm2413_vm9 = vcmp.eq.f32.partialorder %v2412_v35, 8.507059e+37 }
 0x670   : > { %v2759_v15 = vmul.f32 -1.442695, %v2318_v24  ;;  %v2912_v36 = vpop.eup %2911  ;;  %v2392_v48 = vadd.f32 %v4523_v26, %v2391_v30  ;;  %v2414_v24 = vand.u32 2147483648, %v4521_v13 }
 0x671   : > { %v4528_v2 = vadd.f32 1.0, %v2912_v36  ;;  %v4530_v18 = vpop.eup %2913 }
 0x672   : > { %2915 = vpow2.f32 %v2759_v15  ;;  %v2404_v20 = vmul.f32 %v4530_v18, %v4521_v13  ;;  %v2396_v12 = vsel %vm2395_vm1, %v4523_v26, %v2392_v48  ;;  %vm2409_vm8 = vweird.f32 %v4530_v18 }
 0x673   : > { %2917 = vrcp.f32 %v4528_v2  ;;  %v2401_v34 = vsel %vm2398_vm7, %v2400_v8, %v2396_v12  ;;  %vm2410_vm15 = vmor %vm2408_vm11, %vm2409_vm8  ;;  %v2415_v10 = vor.u32 1.1754944e-38, %v2414_v24  ;;  %v2429_v52 = vand.u32 2147483648, %v4528_v2 }
 0x674   : > { %v2405_v11 = vsub.f32 1.0, %v2404_v20  ;;  %vm2423_vm14 = vweird.f32 %v4528_v2 }
 0x675   : > { %v2320_v27 = vpop.f32.mrf.mxu3  ;;  %v2430_v25 = vor.u32 1.1754944e-38, %v2429_v52 }
 0x676   : > { %v2321_v62 = vadd.f32 %v2320_v27, %v2279_v63  ;;  %v2406_v60 = vmul.f32 %v4530_v18, %v2405_v11 }
 0x678   : > { %v2760_v14 = vmul.f32 -1.442695, %v2321_v62  ;;  %v2916_v58 = vpop.eup %2915  ;;  %v2407_v9 = vadd.f32 %v4530_v18, %v2406_v60 }
 0x679   : > { %v4549_v32 = vadd.f32 1.0, %v2916_v58  ;;  %v2918_v42 = vpop.eup %2917 }
 0x67a   : > { %2919 = vpow2.f32 %v2760_v14  ;;  %v2419_v53 = vmul.f32 %v2918_v42, %v4528_v2  ;;  %v2411_v27 = vsel %vm2410_vm15, %v4530_v18, %v2407_v9  ;;  %vm2424_vm13 = vweird.f32 %v2918_v42 }
 0x67b   : > { %2921 = vrcp.f32 %v4549_v32  ;;  %v2416_v36 = vsel %vm2413_vm9, %v2415_v10, %v2411_v27  ;;  %vm2425_vm10 = vmor %vm2423_vm14, %vm2424_vm13  ;;  %vm2438_vm4 = vweird.f32 %v4549_v32  ;;  %v2442_v58 = vand.u32 2147483647, %v4549_v32 }
 0x67c   : > { %v2420_v7 = vsub.f32 1.0, %v2419_v53 }
 0x67d   : > { %v2323_v39 = vpop.f32.mrf.mxu3  ;;  %vm2443_vm6 = vcmp.eq.f32.partialorder %v2442_v58, 8.507059e+37 }
 0x67e   : > { %v2421_v59 = vmul.f32 %v2918_v42, %v2420_v7 }
 0x680   : > { %v2920_v55 = vpop.eup %2919  ;;  %v2422_v13 = vadd.f32 %v2918_v42, %v2421_v59 }
 0x681   : > { %v2922_v3 = vpop.eup %2921 }
 0x682   : > { %v2434_v15 = vmul.f32 %v2922_v3, %v4549_v32  ;;  %vm2439_vm3 = vweird.f32 %v2922_v3 }
 0x683   : > { %vm2440_vm5 = vmor %vm2438_vm4, %vm2439_vm3 }
 0x684   : > { %v2435_v29 = vsub.f32 1.0, %v2434_v15 }
 0x689   : > { %v2210_v21 = vpop.f32.mrf.mxu1 }
 0x68a   : > { %v2478_v38 = vmul.f32 %v2371_v57, %v2210_v21  ;;  %v2427_v21 = vand.u32 2147483647, %v4528_v2  ;;  %v2426_v57 = vsel %vm2425_vm10, %v2918_v42, %v2422_v13  ;;  %v2444_v2 = vand.u32 2147483648, %v4549_v32 }
 0x68c   : > { %v2486_v1 = vadd.f32 %v2478_v38, %v4105_v31  ;;  %v2324_v31 = vadd.f32 %v2323_v39, %v2282_v54  ;;  %v2436_v38 = vmul.f32 %v2922_v3, %v2435_v29  ;;  %vm2428_vm2 = vcmp.eq.f32.partialorder %v2427_v21, 8.507059e+37 }
 0x68d   : > { %v2431_v17 = vsel %vm2428_vm2, %v2430_v25, %v2426_v57  ;;  %v2445_v54 = vor.u32 1.1754944e-38, %v2444_v2 }
 0x68e   : > { %2494 = vst.msk [vmem:[%s4537_s14] sm:$0xff] %vm267_vm0, %v2486_v1  ;;  %v2761_v37 = vmul.f32 -1.442695, %v2324_v31 }
 0x690   : > { %2923 = vpow2.f32 %v2761_v37 }
 0x691   : > { %v2213_v44 = vpop.f32.mrf.mxu1 }
 0x692   : > { %v2479_v45 = vmul.f32 %v2386_v5, %v2213_v44 }
 0x694   : > { %v2487_v22 = vadd.f32 %v2479_v45, %v4110_v40  ;;  %v4563_v40 = vadd.f32 1.0, %v2920_v55 }
 0x696   : > { %2495 = vst.msk [vmem:[%s4537_s14 + $0x8] sm:$0xff] %vm267_vm0, %v2487_v22  ;;  %2925 = vrcp.f32 %v4563_v40  ;;  %v2924_v26 = vpop.eup %2923  ;;  %v2459_v45 = vand.u32 2147483648, %v4563_v40  ;;  %vm2453_vm1 = vweird.f32 %v4563_v40  ;;  %v2457_v48 = vand.u32 2147483647, %v4563_v40 }
 0x697   : > { %v4576_v63 = vadd.f32 1.0, %v2924_v26 }
 0x698   : > { %v2460_v19 = vor.u32 1.1754944e-38, %v2459_v45  ;;  %vm2458_vm8 = vcmp.eq.f32.partialorder %v2457_v48, 8.507059e+37 }
 0x699   : > { %v2216_v47 = vpop.f32.mrf.mxu1  ;;  %2927 = vrcp.f32 %v4576_v63  ;;  %vm2468_vm15 = vweird.f32 %v4576_v63  ;;  %v2472_v60 = vand.u32 2147483647, %v4576_v63 }
 0x69a   : > { %v2480_v61 = vmul.f32 %v2401_v34, %v2216_v47 }
 0x69b   : > { %vm2473_vm13 = vcmp.eq.f32.partialorder %v2472_v60, 8.507059e+37 }
 0x69c   : > { %v2488_v49 = vadd.f32 %v2480_v61, %v4115_v23  ;;  %v2926_v56 = vpop.eup %2925 }
 0x69d   : > { %v2449_v50 = vmul.f32 %v2926_v56, %v4563_v40  ;;  %vm2454_vm12 = vweird.f32 %v2926_v56 }
 0x69e   : > { %2496 = vst.msk [vmem:[%s4537_s14 + $0x10] sm:$0xff] %vm267_vm0, %v2488_v49  ;;  %vm2455_vm7 = vmor %vm2453_vm1, %vm2454_vm12 }
 0x69f   : > { %v2450_v1 = vsub.f32 1.0, %v2449_v50  ;;  %v2928_v43 = vpop.eup %2927 }
 0x6a0   : > { %v2464_v20 = vmul.f32 %v2928_v43, %v4576_v63  ;;  %vm2469_vm11 = vweird.f32 %v2928_v43 }
 0x6a1   : > { %v2219_v23 = vpop.f32.mrf.mxu1  ;;  %v2451_v30 = vmul.f32 %v2926_v56, %v2450_v1  ;;  %vm2470_vm9 = vmor %vm2468_vm15, %vm2469_vm11 }
 0x6a2   : > { %v2481_v6 = vmul.f32 %v2416_v36, %v2219_v23 }
 0x6a3   : > { %v2452_v5 = vadd.f32 %v2926_v56, %v2451_v30 }
 0x6a4   : > { %v2489_v62 = vadd.f32 %v2481_v6, %v4135_v51  ;;  %v2437_v51 = vadd.f32 %v2922_v3, %v2436_v38 }
 0x6a5   : > { %v2456_v11 = vsel %vm2455_vm7, %v2926_v56, %v2452_v5 }
 0x6a6   : > { %2497 = vst.msk [vmem:[%s4537_s14 + $0x18] sm:$0xff] %vm267_vm0, %v2489_v62  ;;  %v2441_v4 = vsel %vm2440_vm5, %v2922_v3, %v2437_v51  ;;  %v2461_v22 = vsel %vm2458_vm8, %v2460_v19, %v2456_v11 }
 0x6a7   : > { %v2446_v31 = vsel %vm2443_vm6, %v2445_v54, %v2441_v4 }
 0x6a9   : > { %v2222_v18 = vpop.f32.mrf.mxu1 }
 0x6aa   : > { %v2482_v14 = vmul.f32 %v2431_v17, %v2222_v18 }
 0x6ac   : > { %v2490_v39 = vadd.f32 %v2482_v14, %v4120_v16  ;;  %v2465_v16 = vsub.f32 1.0, %v2464_v20 }
 0x6ae   : > { %2498 = vst.msk [vmem:[%s4537_s14 + $0x20] sm:$0xff] %vm267_vm0, %v2490_v39  ;;  %v2466_v42 = vmul.f32 %v2928_v43, %v2465_v16 }
 0x6b0   : > { %v2467_v55 = vadd.f32 %v2928_v43, %v2466_v42 }
 0x6b1   : > { %v2225_v0 = vpop.f32.mrf.mxu1 }
 0x6b2   : > { %v2483_v44 = vmul.f32 %v2446_v31, %v2225_v0  ;;  %v2471_v53 = vsel %vm2470_vm9, %v2928_v43, %v2467_v55 }
 0x6b4   : > { %v2491_v32 = vadd.f32 %v2483_v44, %v4125_v41  ;;  %v2474_v41 = vand.u32 2147483648, %v4576_v63 }
 0x6b6   : > { %2499 = vst.msk [vmem:[%s4537_s14 + $0x28] sm:$0xff] %vm267_vm0, %v2491_v32  ;;  %v2475_v8 = vor.u32 1.1754944e-38, %v2474_v41 }
 0x6b8   : > { %v2476_v47 = vsel %vm2473_vm13, %v2475_v8, %v2471_v53 }
 0x6b9   : > { %v2228_v37 = vpop.f32.mrf.mxu1 }
 0x6ba   : > { %v2484_v28 = vmul.f32 %v2461_v22, %v2228_v37 }
 0x6bc   : > { %v2492_v12 = vadd.f32 %v2484_v28, %v4140_v33 }
 0x6be   : > { %2500 = vst.msk [vmem:[%s4537_s14 + $0x30] sm:$0xff] %vm267_vm0, %v2492_v12 }
 0x6c1   : > { %v2231_v40 = vpop.f32.mrf.mxu1 }
 0x6c2   : > { %v2485_v34 = vmul.f32 %v2476_v47, %v2231_v40 }
 0x6c4   : > { %v2493_v61 = vadd.f32 %v2485_v34, %v4130_v46 }
 0x6c6   : > { %2501 = vst.msk [vmem:[%s4537_s14 + $0x38] sm:$0xff] %vm267_vm0, %v2493_v61 }
 0x6c7 PF: > { %s16_s21 = sadd.s32 1, %s2935_s21  }
 0x6c8   : > { %p13_p4 = scmp.ge.s32.totalorder %s16_s21, 4  }
 0x6ca   :  { %15 = sbr.rel (!%p13_p4) target bundleno = 1 (0x1), region = 86 }

</bundles_post_ra>
